<compile_context>
chip_gen: v5e
topology: v5e:2x2
jax: 0.10.0
libtpu: 0.0.40
codegen_flags: <defaults>
</compile_context>

<pallas_src>
import functools

import jax
import jax.numpy as jnp
from jax import lax
from jax.experimental import pallas as pl
from jax.experimental.pallas import tpu as pltpu


def _round_up(x, m):
    return ((x + m - 1) // m) * m


def _balanced_tile(dim, cap, align):
    """Largest tile <= cap, multiple of `align`, with minimal padding waste."""
    aligned = _round_up(max(dim, 1), align)
    if aligned <= cap:
        return aligned
    n_tiles = -(-aligned // cap)                    # ceil
    return _round_up(-(-aligned // n_tiles), align)  # <= cap (cap is align-mult)


def _vmem_capacity_bytes():
    try:
        return int(pltpu.get_tpu_info().vmem_capacity_bytes)
    except Exception:
        return 64 * 1024 * 1024  # conservative default (v7x per-TensorCore)


def _matmul_nt_kernel(x_ref, w_ref, o_ref, acc_ref):
    # Grid = (M tiles, N tiles, K tiles); K (last, "arbitrary") is the reduction.
    @pl.when(pl.program_id(2) == 0)
    def _init():
        acc_ref[...] = jnp.zeros_like(acc_ref)

    # x tile (tm, tk) contracted with w tile (tn, tk) over K -> (tm, tn).
    # The weight transpose is folded into the MXU contraction (NT matmul);
    # no materialized w.T in HBM or VMEM.
    acc_ref[...] += lax.dot_general(
        x_ref[...],
        w_ref[...],
        dimension_numbers=(((1,), (1,)), ((), ())),
        preferred_element_type=jnp.float32,
    )

    @pl.when(pl.program_id(2) == pl.num_programs(2) - 1)
    def _store():
        o_ref[...] = acc_ref[...].astype(o_ref.dtype)


@functools.partial(jax.jit, static_argnames=("tm", "tn", "tk"))
def _linear_pallas(g2d, w_rel, *, tm, tn, tk):
    m, k = g2d.shape
    n = w_rel.shape[0]

    m_pad = _round_up(m, tm)
    k_pad = _round_up(k, tk)
    n_pad = _round_up(n, tn)

    # Zero-pad only when necessary: padded K columns contribute nothing to the
    # dot; padded M rows / N cols are sliced off after the call.
    x = g2d if (m_pad == m and k_pad == k) else jnp.pad(
        g2d, ((0, m_pad - m), (0, k_pad - k)))
    w = w_rel if (n_pad == n and k_pad == k) else jnp.pad(
        w_rel, ((0, n_pad - n), (0, k_pad - k)))

    grid = (m_pad // tm, n_pad // tn, k_pad // tk)

    # Actual double-buffered VMEM footprint (2 bufs per operand + f32 acc),
    # plus headroom for compiler scratch; never claim the entire VMEM.
    in_isz = x.dtype.itemsize
    out_isz = g2d.dtype.itemsize
    footprint = (2 * (tm * tk + tn * tk) * in_isz
                 + 2 * tm * tn * out_isz
                 + tm * tn * 4)
    vmem_limit = min(footprint + (8 << 20), 48 << 20)

    cost = pl.CostEstimate(
        flops=2 * m_pad * k_pad * n_pad,
        transcendentals=0,
        bytes_accessed=(
            m_pad * k_pad * in_isz * grid[1]      # x re-streamed per N tile
            + n_pad * k_pad * in_isz * grid[0]    # w re-streamed per M tile
            + m_pad * n_pad * out_isz
        ),
    )

    out = pl.pallas_call(
        _matmul_nt_kernel,
        out_shape=jax.ShapeDtypeStruct((m_pad, n_pad), g2d.dtype),
        grid_spec=pltpu.PrefetchScalarGridSpec(
            num_scalar_prefetch=0,
            grid=grid,
            in_specs=[
                pl.BlockSpec((tm, tk), lambda i, j, kk: (i, kk)),
                pl.BlockSpec((tn, tk), lambda i, j, kk: (j, kk)),
            ],
            out_specs=pl.BlockSpec((tm, tn), lambda i, j, kk: (i, j)),
            scratch_shapes=[pltpu.VMEM((tm, tn), jnp.float32)],
        ),
        compiler_params=pltpu.CompilerParams(
            dimension_semantics=("parallel", "parallel", "arbitrary"),
            vmem_limit_bytes=vmem_limit,
        ),
        cost_estimate=cost,
    )(x, w)

    if m_pad == m and n_pad == n:
        return out
    return out[:m, :n]


# Below this much total work (m*k*n), launch/pad overhead dominates the matmul:
# let XLA's fused dot handle it.
_SMALL_WORK_THRESHOLD = 1 << 18


def simple_relation_layer(g, w_rel):
    """Forward pass of SimpleRelationLayer.

    g:      (..., in_size)       input
    w_rel:  (out_size, in_size)  nn.Linear weight (no bias)
    returns (..., out_size)      = g @ w_rel.T
    """
    in_size = g.shape[-1]
    out_size = w_rel.shape[0]
    lead_shape = g.shape[:-1]

    g2d = g.reshape(-1, in_size)
    m = g2d.shape[0]

    # Small-problem fast path (kernel launch / padding would dominate).
    if m * in_size * out_size < _SMALL_WORK_THRESHOLD:
        out2d = g2d @ w_rel.T
        return out2d.reshape(*lead_shape, out_size)

    itemsize = g2d.dtype.itemsize
    sublane = 16 if itemsize == 2 else 8
    # bf16 on v6e/v7x: 256-wide N/K tiles keep the 2x256x256 MXU fully fed
    # (only when the dim is large enough that 256-rounding isn't pure waste).
    n_align = 256 if (itemsize == 2 and out_size >= 256) else 128
    k_align = 256 if (itemsize == 2 and in_size >= 256) else 128

    # Generation-aware tile caps: keep the double-buffered footprint well
    # under the per-TensorCore VMEM (128 MiB on v5e/v6e, 64 MiB on v7x).
    vmem = _vmem_capacity_bytes()
    if vmem >= 96 * 1024 * 1024:        # v5e / v6e
        tm_max, tn_max, tk_max = 1024, 1024, 512
    else:                                # v7x
        tm_max, tn_max, tk_max = 1024, 1024, 256

    tm = _balanced_tile(m, tm_max, sublane)
    tn = _balanced_tile(out_size, tn_max, n_align)
    tk = _balanced_tile(in_size, tk_max, k_align)

    # Megacore: guarantee >= 2 blocks on the parallel (M, N) grid axes so
    # v7x's second TensorCore is never idle.
    grid_m = _round_up(m, tm) // tm
    grid_n = _round_up(out_size, tn) // tn
    if grid_m * grid_n == 1 and m >= 2 * sublane:
        tm = _round_up(-(-m // 2), sublane)

    # TODO(synk): optional bf16 cast of f32 operands (keeping the f32
    # accumulator) would roughly halve HBM bytes when accuracy permits.
    out2d = _linear_pallas(g2d, w_rel, tm=tm, tn=tn, tk=tk)
    return out2d.reshape(*lead_shape, out_size)


def init_weights_rel(key, in_size, out_size, gain=1.414):
    """Deterministic xavier_normal_ init, matching nn.init.xavier_normal_."""
    std = gain * (2.0 / (in_size + out_size)) ** 0.5
    return jax.random.normal(key, (out_size, in_size), dtype=jnp.float32) * std


if __name__ == "__main__":
    key = jax.random.PRNGKey(0)
    k_g, k_w, k_g2, k_w2 = jax.random.split(key, 4)

    # 1) Small shape consistent with the module (batch=2, seq=8, in=32, out=64):
    #    exercises the fast path.
    batch, seq, in_size, out_size = 2, 8, 32, 64
    g = jax.random.normal(k_g, (batch, seq, in_size), dtype=jnp.float32)
    w_rel = init_weights_rel(k_w, in_size, out_size)

    out = simple_relation_layer(g, w_rel)
    jax.block_until_ready(out)

    ref = jnp.einsum("bsi,oi->bso", g, w_rel)
    assert out.shape == (batch, seq, out_size)
    assert jnp.allclose(out, ref, atol=1e-4, rtol=1e-4)

    # 2) Moderate shape that exercises the Pallas kernel path (multi-step K
    #    reduction grid and megacore M split).
    b2, s2, in2, out2 = 4, 128, 768, 640
    g_big = jax.random.normal(k_g2, (b2, s2, in2), dtype=jnp.float32)
    w_big = init_weights_rel(k_w2, in2, out2)

    out_big = simple_relation_layer(g_big, w_big)
    jax.block_until_ready(out_big)

    ref_big = jnp.einsum("bsi,oi->bso", g_big, w_big,
                         precision=jax.lax.Precision.HIGHEST)
    assert out_big.shape == (b2, s2, out2)
    # Loose tolerance only to absorb MXU accumulation-order / pass-precision
    # differences; structural errors would be O(1).
    assert jnp.allclose(out_big, ref_big, atol=2e-2, rtol=2e-2)

    print("KERNEL_OK")
</pallas_src>

<mosaic_0001>
module attributes {stable_mosaic.version = 11 : i64} {
  func.func @_matmul_nt_kernel(%arg0: i32, %arg1: i32, %arg2: i32, %arg3: memref<256x256xf32, #tpu.memory_space<vmem>>, %arg4: memref<640x256xf32, #tpu.memory_space<vmem>>, %arg5: memref<256x640xf32, #tpu.memory_space<vmem>>, %arg6: memref<256x640xf32, #tpu.memory_space<vmem>>) attributes {dimension_semantics = [#tpu.dimension_semantics<parallel>, #tpu.dimension_semantics<parallel>, #tpu.dimension_semantics<arbitrary>], iteration_bounds = array<i64: 2, 1, 3>, scalar_prefetch = 0 : i64, scratch_operands = 1 : i64, tpu.core_type = #tpu.core_type<tc>, window_params = [{transform_indices = @transform_0, window_bounds = array<i64: 256, 256>}, {transform_indices = @transform_1, window_bounds = array<i64: 640, 256>}, {transform_indices = @transform_2, window_bounds = array<i64: 256, 640>}]} {
    %c0_i32 = arith.constant 0 : i32
    %0 = arith.cmpi eq, %arg2, %c0_i32 : i32
    %1 = arith.extui %0 : i1 to i32
    %c0_i32_0 = arith.constant 0 : i32
    %2 = arith.cmpi ne, %1, %c0_i32_0 : i32
    scf.if %2 {
      %cst_9 = arith.constant 0.000000e+00 : f32
      %12 = vector.broadcast %cst_9 : f32 to vector<256x640xf32>
      %c0_10 = arith.constant 0 : index
      %c0_11 = arith.constant 0 : index
      %13 = vector.load %arg6[%c0_10, %c0_11] : memref<256x640xf32, #tpu.memory_space<vmem>>, vector<256x640xf32>
      tpu.vector_store %arg6[%c0_10, %c0_11], %12 {strides = array<i32>} : memref<256x640xf32, #tpu.memory_space<vmem>>, vector<256x640xf32>,
    } else {
    }
    %c0 = arith.constant 0 : index
    %c0_1 = arith.constant 0 : index
    %3 = vector.load %arg6[%c0, %c0_1] : memref<256x640xf32, #tpu.memory_space<vmem>>, vector<256x640xf32>
    %c0_2 = arith.constant 0 : index
    %c0_3 = arith.constant 0 : index
    %4 = vector.load %arg3[%c0_2, %c0_3] : memref<256x256xf32, #tpu.memory_space<vmem>>, vector<256x256xf32>
    %c0_4 = arith.constant 0 : index
    %c0_5 = arith.constant 0 : index
    %5 = vector.load %arg4[%c0_4, %c0_5] : memref<640x256xf32, #tpu.memory_space<vmem>>, vector<640x256xf32>
    %cst = arith.constant dense<0.000000e+00> : vector<256x640xf32>
    %6 = tpu.matmul %4, %5, %cst {dimension_numbers = #tpu.dot_dimension_numbers<[1], [1], [0], [0], [0, 0, 1, 0], [], []>} : vector<256x256xf32>, vector<640x256xf32>, vector<256x640xf32> -> vector<256x640xf32>
    %7 = arith.addf %3, %6 : vector<256x640xf32>
    %c0_6 = arith.constant 0 : index
    %c0_7 = arith.constant 0 : index
    %8 = vector.load %arg6[%c0_6, %c0_7] : memref<256x640xf32, #tpu.memory_space<vmem>>, vector<256x640xf32>
    tpu.vector_store %arg6[%c0_6, %c0_7], %7 {strides = array<i32>} : memref<256x640xf32, #tpu.memory_space<vmem>>, vector<256x640xf32>,
    %c2_i32 = arith.constant 2 : i32
    %9 = arith.cmpi eq, %arg2, %c2_i32 : i32
    %10 = arith.extui %9 : i1 to i32
    %c0_i32_8 = arith.constant 0 : i32
    %11 = arith.cmpi ne, %10, %c0_i32_8 : i32
    scf.if %11 {
      %c0_9 = arith.constant 0 : index
      %c0_10 = arith.constant 0 : index
      %12 = vector.load %arg6[%c0_9, %c0_10] : memref<256x640xf32, #tpu.memory_space<vmem>>, vector<256x640xf32>
      %c0_11 = arith.constant 0 : index
      %c0_12 = arith.constant 0 : index
      %13 = vector.load %arg5[%c0_11, %c0_12] : memref<256x640xf32, #tpu.memory_space<vmem>>, vector<256x640xf32>
      tpu.vector_store %arg5[%c0_11, %c0_12], %12 {strides = array<i32>} : memref<256x640xf32, #tpu.memory_space<vmem>>, vector<256x640xf32>,
    } else {
    }
    return
  }
  func.func @transform_0(%arg0: i32, %arg1: i32, %arg2: i32) -> (i32, i32) {
    %c0_i32 = arith.constant 0 : i32
    return %arg0, %arg2 : i32, i32
  }
  func.func @transform_1(%arg0: i32, %arg1: i32, %arg2: i32) -> (i32, i32) {
    %c0_i32 = arith.constant 0 : i32
    return %arg1, %arg2 : i32, i32
  }
  func.func @transform_2(%arg0: i32, %arg1: i32, %arg2: i32) -> (i32, i32) {
    %c0_i32 = arith.constant 0 : i32
    return %arg0, %arg1 : i32, i32
  }
}

</mosaic_0001>

<bundles_post_ra>
// kernel: _linear_pallas.1
= control target key start
LH: loop header
LB: loop body
LE: loop exit
PB: predicated region body
PF: predicated region fallthrough
CT: control target
= control target key end

     0   :  { %s4286_s0 = inlined_call_operand.hbm [shape: f32[512,768], index: 0, kind: input, shape index: {}]   ;;  %s4287_s1 = inlined_call_operand.hbm [shape: f32[640,768], index: 1, kind: input, shape index: {}]   ;;  %s4288_s2 = inlined_call_operand.hbm [shape: f32[512,640], index: 2, kind: output, shape index: {}]  }
   0x1   :  { %4297 = sst [smem:[#allocation21_spill]] %s4286_s0 }
   0x2   :  { %4298 = sst [smem:[#allocation22_spill]] %s4288_s2 }
   0x3   :  { %7 = vsyncpa [#allocation4], 0 }
   0x4   :  { %9 = vsyncpa [#allocation4 + $0x1], 0 }
   0x5   :  { %10 = vsyncpa [#allocation7], 0 }
   0x6   :  { %12 = vsyncpa [#allocation7 + $0x1], 0 }
   0x7   :  { %13 = vsyncpa [#allocation5], 0 }
   0x8   :  { %15 = vsyncpa [#allocation5 + $0x1], 0  ;;  %s3227_s9 = smov 0   ;;  %s3229_s10 = smov 0  }
   0x9   :  { %s3231_s11 = smov 0   ;;  %s3233_s12 = smov 0  }
   0xa   :  { %s3235_s13 = smov 0   ;;  %s3237_s14 = smov 0  }
   0xb   :  { %s3239_s15 = smov 0   ;;  %s3241_s16 = smov 0  }
   0xc   :  { %s3243_s17 = smov 0   ;;  %s3245_s18 = smov 0  }
   0xd   :  { %s3247_s19 = smov 0   ;;  %s3249_s20 = smov 0  }
   0xe   :  { %s3251_s21 = smov 0   ;;  %s3253_s22 = smov 0  }
   0xf LB: > { %4299 = sst [smem:[#allocation12_spill]] %s3172_s14  ;;  %s2703_s23 = sadd.s32 4294967295, %s3204_s22   ;;  %s3204_s22 = sphi %s3253_s22, %s21_s22   ;;  %s3200_s21 = sphi %s3251_s21, %s4327_s21   ;;  %s3196_s20 = sphi %s3249_s20, %s4336_s20   ;;  %s3192_s19 = sphi %s3247_s19, %s4325_s19   ;;  %s3188_s18 = sphi %s3245_s18, %s4324_s18   ;;  %s3184_s17 = sphi %s3243_s17, %s4323_s17   ;;  %s3180_s16 = sphi %s3241_s16, %s4335_s16   ;;  %s3176_s15 = sphi %s3239_s15, %s4334_s15   ;;  %s3172_s14 = sphi %s3237_s14, %s4321_s14   ;;  %s3168_s13 = sphi %s3235_s13, %s4333_s13   ;;  %s3164_s12 = sphi %s3233_s12, %s4332_s12   ;;  %s3160_s11 = sphi %s3231_s11, %s4331_s11   ;;  %s3156_s10 = sphi %s3229_s10, %s4330_s10   ;;  %s3152_s9 = sphi %s3227_s9, %s4329_s9  }
  0x10   : > { %4300 = sst [smem:[#allocation13_spill]] %s3184_s17  ;;  %s2704_s24 = sadd.s32 4294967294, %s3204_s22  }
  0x11   : > { %4301 = sst [smem:[#allocation14_spill]] %s3196_s20  ;;  %s33_s25 = sadd.s32 1, %s3196_s20 }
  0x12   : > { %4302 = sst [smem:[#allocation15_spill]] %s3200_s21  ;;  %s40_s26 = sadd.s32 1, %s3200_s21 }
  0x13   : > { %p34_p0 = scmp.ge.s32.totalorder %s33_s25, 3  ;;  %s49_s27 = sadd.s32 1, %s3184_s17 }
  0x14   : > { %p56_p1 = scmp.ne.s32.totalorder %s3184_s17, %s3180_s16  ;;  %p57_p2 = scmp.eq.s32.totalorder %s3204_s22, 0 }
  0x15   : > { %s4338_s25 = smov (%p34_p0, %s33_s25), 0  ;;  %s4340_s26 = smov (!%p34_p0, %s40_s26), %s3200_s21 }
  0x16   : > { %4303 = sst [smem:[#allocation16_spill]] %s4338_s25  ;;  %s3308_s28 = ssub.s32 %s3196_s20, %s4338_s25 }
  0x17   : > { %p3312_p3 = por %p57_p2, %p56_p1  ;;  %p42_p4 = scmp.ge.s32.totalorder %s4340_s26, 2 }
  0x18   : > { %p62_p5 = scmp.ne.s32.totalorder %s3180_s16, %s3176_s15  ;;  %p3317_p6 = scmp.eq.s32.totalorder %s2703_s23, 0 }
  0x19   : > { %p75_p7 = scmp.eq.s32.totalorder %s3308_s28, 0  ;;  %s4342_s26 = smov (%p42_p4, %s4340_s26), 0 }
  0x1a   : > { %4306 = sst [smem:[#allocation17_spill]] %s4342_s26  ;;  %p3326_p8 = por %p3317_p6, %p62_p5 }
  0x1b   : > { %s105_s4 = sadd.s32 1, %s3160_s11  ;;  %s44_s5 = ssub.s32 %s3200_s21, %s4342_s26 }
  0x1c   : > { %p115_p9 = scmp.ne.s32.totalorder %s3160_s11, %s3156_s10  ;;  %s46_s6 = sor.u32 %s3308_s28, %s44_s5 }
  0x1d   : > { %p103_p10 = scmp.eq.s32.totalorder %s44_s5, 0  ;;  %p47_p11 = scmp.eq.s32.totalorder %s46_s6, 0 }
  0x1e   : > { %p116_p12 = scmp.eq.s32.totalorder %s2703_s23, 5  ;;  %p121_p0 = scmp.ne.s32.totalorder %s3156_s10, %s3152_s9 }
  0x1f   : > { %s3337_s7 = scalar_select %p103_p10, %s3160_s11, %s105_s4  }
  0x20   : > { %s3340_s8 = scalar_select %p47_p11, %s3184_s17, %s49_s27  }
  0x21   : > { %4308 = sst [smem:[#allocation18_spill]] %s3337_s7  ;;  %p3342_p13 = por %p116_p12, %p115_p9 }
  0x22   : > { %4309 = sst [smem:[#allocation19_spill]] %s3340_s8  ;;  %p122_p1 = scmp.eq.s32.totalorder %s2704_s24, 5 }
  0x23   : > { %p4294_p4 = scmp.lt.s32.totalorder %s3204_s22, 6  ;;  %s142_s26 = sand.u32 1, %s3184_s17  }
  0x24   : > { %p3350_p5 = por %p122_p1, %p121_p0  ;;  %s2707_s5 = sshll.u32 %s142_s26, 9 }
  0x25   : > { %s2709_s2 = sshll.u32 %s3196_s20, 1  ;;  %s2756_s23 = smul.u32 192, %s3200_s21 }
  0x26   : > { %s146_s4 = scalar_lea.vmem [#allocation3], %s2707_s5  ;;  %p2768_p9 = pnand %p4294_p4, %p3312_p3 }
  0x27   : > { %s157_s27 = sshll.u32 %s146_s4, 4  ;;  %s152_s24 = sadd.s32 %s2756_s23, %s2709_s2  ;;  %s158_s27 = int_to_ptr.vmem [resolvable:$true] %s157_s27 }
  0x28   : > { %s2711_s6 = sshll.u32 %s152_s24, 3  ;;  %s4312_s0 = sld [smem:[#allocation21_spill]] }
  0x29   : > { %s143_s29 = scalar_lea.sflag [#allocation4], %s142_s26  ;;  %s3206_s4 = smov 768  }
  0x2a   : > { %s3207_s7 = smov 256   ;;  %s3208_s2 = smov 16  }
  0x2b   : > { %p2714_p3 = scmp.ge.s32.totalorder %s3204_s22, 1  ;;  %p190_p10 = scmp.lt.s32.totalorder %s3204_s22, 7 }
  0x2c   : > { %s77_s17 = sadd.s32 1, %s3172_s14  ;;  %p84_p12 = scmp.ne.s32.totalorder %s3172_s14, %s3168_s13 }
  0x2d   : > { %p3365_p11 = pnand %p2714_p3, %p190_p10  ;;  %p90_p0 = scmp.ne.s32.totalorder %s3168_s13, %s3164_s12 }
  0x2e   : > { %s154_s21 = scalar_lea.hbm %s4312_s0, %s2711_s6  ;;  %s2723_s24 = sshll.u32 %s3196_s20, 4 }
  0x2f   : > { %s155_s5 = sshll.u32 %s154_s21, 4  ;;  %s167_s21 = sand.u32 1, %s3172_s14   ;;  %s156_s5 = int_to_ptr.hbm [resolvable:$true] %s155_s5 }
  0x30   : > { %2770 = dma.hbm_to_vmem [thread:$0]  (!%p2768_p9), %s156_s5, 8192, %s158_s27, %s143_s29, %s3206_s4, %s3207_s7, %s3208_s2  }
  0x31   : > { %s3373_s8 = scalar_select %p75_p7, %s3172_s14, %s77_s17  }
  0x32   : > { %p86_p1 = por %p84_p12, %p57_p2  ;;  %p3385_p4 = por %p90_p0, %p3317_p6 }
  0x33   : > { %4314 = sst [smem:[#allocation20_spill]] %s3373_s8  ;;  %s2757_s27 = smul.u32 1280, %s167_s21 }
  0x34   : > { %s179_s29 = scalar_lea.hbm %s4287_s1, %s2723_s24  ;;  %p4316_p9 = scmp.lt.s32.totalorder %s3204_s22, 6 }
  0x35   : > { %s180_s28 = sshll.u32 %s179_s29, 4  ;;  %s171_s17 = scalar_lea.vmem [#allocation6], %s2757_s27  ;;  %s181_s28 = int_to_ptr.hbm [resolvable:$true] %s180_s28 }
  0x36   : > { %p2771_p3 = pnand %p4316_p9, %p86_p1  ;;  %s182_s12 = sshll.u32 %s171_s17, 4  ;;  %s183_s12 = int_to_ptr.vmem [resolvable:$true] %s182_s12 }
  0x37   : > { %s168_s0 = scalar_lea.sflag [#allocation7], %s167_s21  ;;  %194 = sbr.rel (%p3365_p11) target bundleno = 1250 (0x4e2), region = 28 }
  0x38   : > { %2773 = dma.hbm_to_vmem [thread:$0]  (!%p2771_p3), %s181_s28, 20480, %s183_s12, %s168_s0, %s3206_s4, %s3207_s7, %s3208_s2  }
  0x39   : > { %s196_s30 = sand.u32 (!%p3365_p11), 1, %s3180_s16  }
  0x3a   : > { %s2715_s20 = sshll.u32 (!%p3365_p11), %s196_s30, 9  ;;  %s197_s8 = scalar_lea.sflag (!%p3365_p11), [#allocation4], %s196_s30 }
  0x3b   : > { %s3397_s14 = scalar_lea.vmem (!%p3365_p11), [#allocation3], %s2715_s20 }
  0x3c   : > { %3139 = dma.done.wait (%p3326_p8), %s197_s8, 8192  }
  0x3d   : > { %3141 = vsyncadd (%p3326_p8), %s197_s8, 4294959104  ;;  %s206_s24 = sand.u32 1, %s3168_s13  }
  0x3e   : > { %s2758_s21 = smul.u32 1280, %s206_s24  ;;  %s207_s0 = scalar_lea.sflag [#allocation7], %s206_s24 }
  0x40   : > { %s3404_s7 = scalar_lea.vmem [#allocation6], %s2758_s21 }
  0x41   : > { %3143 = dma.done.wait (%p3385_p4), %s207_s0, 20480  }
  0x42   : > { %3145 = vsyncadd (%p3385_p4), %s207_s0, 4294946816  ;;  %s234_s20 = sand.u32 1, %s3156_s10   ;;  %p2716_p2 = scmp.ne.s32.totalorder %s3188_s18, 0 }
  0x43   : > { %s2759_s4 = smul.u32 1280, %s234_s20 }
  0x44   : > { %246 = sbr.rel (%p2716_p2) target bundleno = 234 (0xea), region = 40 }
  0x45   : > { %s3413_s2 = scalar_lea.vmem [#allocation8], %s2759_s4 }
  0x49   : > { %v3209_v0 = vmov 0.0  }
  0x4a   : > { %247 = vst [vmem:[#allocation2 + $0x2b0] sm:$0xff] %v3209_v0 }
  0x4b   : > { %248 = vst [vmem:[#allocation2 + $0x3b0] sm:$0xff] %v3209_v0 }
  0x4c   : > { %249 = vst [vmem:[#allocation2 + $0x4d8] sm:$0xff] %v3209_v0 }
  0x4d   : > { %250 = vst [vmem:[#allocation2 + $0x18] sm:$0xff] %v3209_v0 }
  0x4e   : > { %251 = vst [vmem:[#allocation2 + $0x450] sm:$0xff] %v3209_v0 }
  0x4f   : > { %252 = vst [vmem:[#allocation2 + $0x328] sm:$0xff] %v3209_v0 }
  0x50   : > { %253 = vst [vmem:[#allocation2 + $0x440] sm:$0xff] %v3209_v0 }
  0x51   : > { %254 = vst [vmem:[#allocation2 + $0x378] sm:$0xff] %v3209_v0 }
  0x52   : > { %255 = vst [vmem:[#allocation2 + $0x108] sm:$0xff] %v3209_v0 }
  0x53   : > { %256 = vst [vmem:[#allocation2 + $0x488] sm:$0xff] %v3209_v0 }
  0x54   : > { %257 = vst [vmem:[#allocation2 + $0x310] sm:$0xff] %v3209_v0 }
  0x55   : > { %258 = vst [vmem:[#allocation2 + $0x4f0] sm:$0xff] %v3209_v0 }
  0x56   : > { %259 = vst [vmem:[#allocation2 + $0x308] sm:$0xff] %v3209_v0 }
  0x57   : > { %260 = vst [vmem:[#allocation2 + $0x2a8] sm:$0xff] %v3209_v0 }
  0x58   : > { %261 = vst [vmem:[#allocation2 + $0x398] sm:$0xff] %v3209_v0 }
  0x59   : > { %262 = vst [vmem:[#allocation2 + $0x60] sm:$0xff] %v3209_v0 }
  0x5a   : > { %263 = vst [vmem:[#allocation2 + $0xd8] sm:$0xff] %v3209_v0 }
  0x5b   : > { %264 = vst [vmem:[#allocation2 + $0x388] sm:$0xff] %v3209_v0 }
  0x5c   : > { %265 = vst [vmem:[#allocation2 + $0x160] sm:$0xff] %v3209_v0 }
  0x5d   : > { %266 = vst [vmem:[#allocation2 + $0x220] sm:$0xff] %v3209_v0 }
  0x5e   : > { %267 = vst [vmem:[#allocation2 + $0xa0] sm:$0xff] %v3209_v0 }
  0x5f   : > { %268 = vst [vmem:[#allocation2 + $0x360] sm:$0xff] %v3209_v0 }
  0x60   : > { %269 = vst [vmem:[#allocation2 + $0x4f8] sm:$0xff] %v3209_v0 }
  0x61   : > { %270 = vst [vmem:[#allocation2 + $0x380] sm:$0xff] %v3209_v0 }
  0x62   : > { %271 = vst [vmem:[#allocation2 + $0x458] sm:$0xff] %v3209_v0 }
  0x63   : > { %272 = vst [vmem:[#allocation2 + $0x4a0] sm:$0xff] %v3209_v0 }
  0x64   : > { %273 = vst [vmem:[#allocation2 + $0x390] sm:$0xff] %v3209_v0 }
  0x65   : > { %274 = vst [vmem:[#allocation2 + $0xb8] sm:$0xff] %v3209_v0 }
  0x66   : > { %275 = vst [vmem:[#allocation2 + $0x270] sm:$0xff] %v3209_v0 }
  0x67   : > { %276 = vst [vmem:[#allocation2 + $0x480] sm:$0xff] %v3209_v0 }
  0x68   : > { %277 = vst [vmem:[#allocation2 + $0x1a8] sm:$0xff] %v3209_v0 }
  0x69   : > { %278 = vst [vmem:[#allocation2 + $0x2a0] sm:$0xff] %v3209_v0 }
  0x6a   : > { %279 = vst [vmem:[#allocation2 + $0x38] sm:$0xff] %v3209_v0 }
  0x6b   : > { %280 = vst [vmem:[#allocation2 + $0x3f8] sm:$0xff] %v3209_v0 }
  0x6c   : > { %281 = vst [vmem:[#allocation2 + $0xb0] sm:$0xff] %v3209_v0 }
  0x6d   : > { %282 = vst [vmem:[#allocation2 + $0x320] sm:$0xff] %v3209_v0 }
  0x6e   : > { %283 = vst [vmem:[#allocation2 + $0x188] sm:$0xff] %v3209_v0 }
  0x6f   : > { %284 = vst [vmem:[#allocation2 + $0x210] sm:$0xff] %v3209_v0 }
  0x70   : > { %285 = vst [vmem:[#allocation2 + $0x78] sm:$0xff] %v3209_v0 }
  0x71   : > { %286 = vst [vmem:[#allocation2 + $0x20] sm:$0xff] %v3209_v0 }
  0x72   : > { %287 = vst [vmem:[#allocation2 + $0x3c8] sm:$0xff] %v3209_v0 }
  0x73   : > { %288 = vst [vmem:[#allocation2 + $0x280] sm:$0xff] %v3209_v0 }
  0x74   : > { %289 = vst [vmem:[#allocation2 + $0x3b8] sm:$0xff] %v3209_v0 }
  0x75   : > { %290 = vst [vmem:[#allocation2 + $0x8] sm:$0xff] %v3209_v0 }
  0x76   : > { %291 = vst [vmem:[#allocation2 + $0x48] sm:$0xff] %v3209_v0 }
  0x77   : > { %292 = vst [vmem:[#allocation2 + $0x300] sm:$0xff] %v3209_v0 }
  0x78   : > { %293 = vst [vmem:[#allocation2 + $0x4a8] sm:$0xff] %v3209_v0 }
  0x79   : > { %294 = vst [vmem:[#allocation2 + $0x218] sm:$0xff] %v3209_v0 }
  0x7a   : > { %295 = vst [vmem:[#allocation2 + $0x168] sm:$0xff] %v3209_v0 }
  0x7b   : > { %296 = vst [vmem:[#allocation2 + $0x1f0] sm:$0xff] %v3209_v0 }
  0x7c   : > { %297 = vst [vmem:[#allocation2 + $0x10] sm:$0xff] %v3209_v0 }
  0x7d   : > { %298 = vst [vmem:[#allocation2 + $0x1f8] sm:$0xff] %v3209_v0 }
  0x7e   : > { %299 = vst [vmem:[#allocation2 + $0x2e8] sm:$0xff] %v3209_v0 }
  0x7f   : > { %300 = vst [vmem:[#allocation2 + $0x258] sm:$0xff] %v3209_v0 }
  0x80   : > { %301 = vst [vmem:[#allocation2 + $0x260] sm:$0xff] %v3209_v0 }
  0x81   : > { %302 = vst [vmem:[#allocation2 + $0x2c0] sm:$0xff] %v3209_v0 }
  0x82   : > { %303 = vst [vmem:[#allocation2 + $0x140] sm:$0xff] %v3209_v0 }
  0x83   : > { %304 = vst [vmem:[#allocation2 + $0xf8] sm:$0xff] %v3209_v0 }
  0x84   : > { %305 = vst [vmem:[#allocation2 + $0x70] sm:$0xff] %v3209_v0 }
  0x85   : > { %306 = vst [vmem:[#allocation2 + $0x4c0] sm:$0xff] %v3209_v0 }
  0x86   : > { %307 = vst [vmem:[#allocation2 + $0x40] sm:$0xff] %v3209_v0 }
  0x87   : > { %308 = vst [vmem:[#allocation2 + $0x350] sm:$0xff] %v3209_v0 }
  0x88   : > { %309 = vst [vmem:[#allocation2 + $0x250] sm:$0xff] %v3209_v0 }
  0x89   : > { %310 = vst [vmem:[#allocation2 + $0x1e0] sm:$0xff] %v3209_v0 }
  0x8a   : > { %311 = vst [vmem:[#allocation2 + $0x318] sm:$0xff] %v3209_v0 }
  0x8b   : > { %312 = vst [vmem:[#allocation2 + $0x3a0] sm:$0xff] %v3209_v0 }
  0x8c   : > { %313 = vst [vmem:[#allocation2 + $0x80] sm:$0xff] %v3209_v0 }
  0x8d   : > { %314 = vst [vmem:[#allocation2 + $0x400] sm:$0xff] %v3209_v0 }
  0x8e   : > { %315 = vst [vmem:[#allocation2 + $0x228] sm:$0xff] %v3209_v0 }
  0x8f   : > { %316 = vst [vmem:[#allocation2 + $0x348] sm:$0xff] %v3209_v0 }
  0x90   : > { %317 = vst [vmem:[#allocation2 + $0x288] sm:$0xff] %v3209_v0 }
  0x91   : > { %318 = vst [vmem:[#allocation2 + $0x460] sm:$0xff] %v3209_v0 }
  0x92   : > { %319 = vst [vmem:[#allocation2 + $0x4b0] sm:$0xff] %v3209_v0 }
  0x93   : > { %320 = vst [vmem:[#allocation2 + $0x1d8] sm:$0xff] %v3209_v0 }
  0x94   : > { %321 = vst [vmem:[#allocation2 + $0x200] sm:$0xff] %v3209_v0 }
  0x95   : > { %322 = vst [vmem:[#allocation2 + $0x50] sm:$0xff] %v3209_v0 }
  0x96   : > { %323 = vst [vmem:[#allocation2 + $0x1b0] sm:$0xff] %v3209_v0 }
  0x97   : > { %324 = vst [vmem:[#allocation2 + $0x150] sm:$0xff] %v3209_v0 }
  0x98   : > { %325 = vst [vmem:[#allocation2 + $0x4e8] sm:$0xff] %v3209_v0 }
  0x99   : > { %326 = vst [vmem:[#allocation2 + $0x190] sm:$0xff] %v3209_v0 }
  0x9a   : > { %327 = vst [vmem:[#allocation2 + $0x418] sm:$0xff] %v3209_v0 }
  0x9b   : > { %328 = vst [vmem:[#allocation2 + $0x338] sm:$0xff] %v3209_v0 }
  0x9c   : > { %329 = vst [vmem:[#allocation2 + $0x358] sm:$0xff] %v3209_v0 }
  0x9d   : > { %330 = vst [vmem:[#allocation2 + $0x158] sm:$0xff] %v3209_v0 }
  0x9e   : > { %331 = vst [vmem:[#allocation2 + $0x88] sm:$0xff] %v3209_v0 }
  0x9f   : > { %332 = vst [vmem:[#allocation2 + $0x448] sm:$0xff] %v3209_v0 }
  0xa0   : > { %333 = vst [vmem:[#allocation2] sm:$0xff] %v3209_v0 }
  0xa1   : > { %334 = vst [vmem:[#allocation2 + $0x2d0] sm:$0xff] %v3209_v0 }
  0xa2   : > { %335 = vst [vmem:[#allocation2 + $0x278] sm:$0xff] %v3209_v0 }
  0xa3   : > { %336 = vst [vmem:[#allocation2 + $0x478] sm:$0xff] %v3209_v0 }
  0xa4   : > { %337 = vst [vmem:[#allocation2 + $0x90] sm:$0xff] %v3209_v0 }
  0xa5   : > { %338 = vst [vmem:[#allocation2 + $0x138] sm:$0xff] %v3209_v0 }
  0xa6   : > { %339 = vst [vmem:[#allocation2 + $0x438] sm:$0xff] %v3209_v0 }
  0xa7   : > { %340 = vst [vmem:[#allocation2 + $0x2c8] sm:$0xff] %v3209_v0 }
  0xa8   : > { %341 = vst [vmem:[#allocation2 + $0x3e0] sm:$0xff] %v3209_v0 }
  0xa9   : > { %342 = vst [vmem:[#allocation2 + $0x130] sm:$0xff] %v3209_v0 }
  0xaa   : > { %343 = vst [vmem:[#allocation2 + $0x298] sm:$0xff] %v3209_v0 }
  0xab   : > { %344 = vst [vmem:[#allocation2 + $0x2f8] sm:$0xff] %v3209_v0 }
  0xac   : > { %345 = vst [vmem:[#allocation2 + $0x68] sm:$0xff] %v3209_v0 }
  0xad   : > { %346 = vst [vmem:[#allocation2 + $0x3c0] sm:$0xff] %v3209_v0 }
  0xae   : > { %347 = vst [vmem:[#allocation2 + $0x368] sm:$0xff] %v3209_v0 }
  0xaf   : > { %348 = vst [vmem:[#allocation2 + $0x2e0] sm:$0xff] %v3209_v0 }
  0xb0   : > { %349 = vst [vmem:[#allocation2 + $0x3a8] sm:$0xff] %v3209_v0 }
  0xb1   : > { %350 = vst [vmem:[#allocation2 + $0x1c8] sm:$0xff] %v3209_v0 }
  0xb2   : > { %351 = vst [vmem:[#allocation2 + $0x3d8] sm:$0xff] %v3209_v0 }
  0xb3   : > { %352 = vst [vmem:[#allocation2 + $0x408] sm:$0xff] %v3209_v0 }
  0xb4   : > { %353 = vst [vmem:[#allocation2 + $0xe8] sm:$0xff] %v3209_v0 }
  0xb5   : > { %354 = vst [vmem:[#allocation2 + $0x98] sm:$0xff] %v3209_v0 }
  0xb6   : > { %355 = vst [vmem:[#allocation2 + $0x410] sm:$0xff] %v3209_v0 }
  0xb7   : > { %356 = vst [vmem:[#allocation2 + $0xc8] sm:$0xff] %v3209_v0 }
  0xb8   : > { %357 = vst [vmem:[#allocation2 + $0x420] sm:$0xff] %v3209_v0 }
  0xb9   : > { %358 = vst [vmem:[#allocation2 + $0x28] sm:$0xff] %v3209_v0 }
  0xba   : > { %359 = vst [vmem:[#allocation2 + $0x290] sm:$0xff] %v3209_v0 }
  0xbb   : > { %360 = vst [vmem:[#allocation2 + $0x330] sm:$0xff] %v3209_v0 }
  0xbc   : > { %361 = vst [vmem:[#allocation2 + $0x118] sm:$0xff] %v3209_v0 }
  0xbd   : > { %362 = vst [vmem:[#allocation2 + $0x490] sm:$0xff] %v3209_v0 }
  0xbe   : > { %363 = vst [vmem:[#allocation2 + $0x4c8] sm:$0xff] %v3209_v0 }
  0xbf   : > { %364 = vst [vmem:[#allocation2 + $0x120] sm:$0xff] %v3209_v0 }
  0xc0   : > { %365 = vst [vmem:[#allocation2 + $0x1d0] sm:$0xff] %v3209_v0 }
  0xc1   : > { %366 = vst [vmem:[#allocation2 + $0x208] sm:$0xff] %v3209_v0 }
  0xc2   : > { %367 = vst [vmem:[#allocation2 + $0xa8] sm:$0xff] %v3209_v0 }
  0xc3   : > { %368 = vst [vmem:[#allocation2 + $0x428] sm:$0xff] %v3209_v0 }
  0xc4   : > { %369 = vst [vmem:[#allocation2 + $0x268] sm:$0xff] %v3209_v0 }
  0xc5   : > { %370 = vst [vmem:[#allocation2 + $0x180] sm:$0xff] %v3209_v0 }
  0xc6   : > { %371 = vst [vmem:[#allocation2 + $0x4b8] sm:$0xff] %v3209_v0 }
  0xc7   : > { %372 = vst [vmem:[#allocation2 + $0x178] sm:$0xff] %v3209_v0 }
  0xc8   : > { %373 = vst [vmem:[#allocation2 + $0x1e8] sm:$0xff] %v3209_v0 }
  0xc9   : > { %374 = vst [vmem:[#allocation2 + $0x2f0] sm:$0xff] %v3209_v0 }
  0xca   : > { %375 = vst [vmem:[#allocation2 + $0x3f0] sm:$0xff] %v3209_v0 }
  0xcb   : > { %376 = vst [vmem:[#allocation2 + $0x170] sm:$0xff] %v3209_v0 }
  0xcc   : > { %377 = vst [vmem:[#allocation2 + $0x198] sm:$0xff] %v3209_v0 }
  0xcd   : > { %378 = vst [vmem:[#allocation2 + $0x1b8] sm:$0xff] %v3209_v0 }
  0xce   : > { %379 = vst [vmem:[#allocation2 + $0xf0] sm:$0xff] %v3209_v0 }
  0xcf   : > { %380 = vst [vmem:[#allocation2 + $0x238] sm:$0xff] %v3209_v0 }
  0xd0   : > { %381 = vst [vmem:[#allocation2 + $0x248] sm:$0xff] %v3209_v0 }
  0xd1   : > { %382 = vst [vmem:[#allocation2 + $0x4d0] sm:$0xff] %v3209_v0 }
  0xd2   : > { %383 = vst [vmem:[#allocation2 + $0x498] sm:$0xff] %v3209_v0 }
  0xd3   : > { %384 = vst [vmem:[#allocation2 + $0x240] sm:$0xff] %v3209_v0 }
  0xd4   : > { %385 = vst [vmem:[#allocation2 + $0x100] sm:$0xff] %v3209_v0 }
  0xd5   : > { %386 = vst [vmem:[#allocation2 + $0x2d8] sm:$0xff] %v3209_v0 }
  0xd6   : > { %387 = vst [vmem:[#allocation2 + $0x4e0] sm:$0xff] %v3209_v0 }
  0xd7   : > { %388 = vst [vmem:[#allocation2 + $0x30] sm:$0xff] %v3209_v0 }
  0xd8   : > { %389 = vst [vmem:[#allocation2 + $0x2b8] sm:$0xff] %v3209_v0 }
  0xd9   : > { %390 = vst [vmem:[#allocation2 + $0x1c0] sm:$0xff] %v3209_v0 }
  0xda   : > { %391 = vst [vmem:[#allocation2 + $0x468] sm:$0xff] %v3209_v0 }
  0xdb   : > { %392 = vst [vmem:[#allocation2 + $0xe0] sm:$0xff] %v3209_v0 }
  0xdc   : > { %393 = vst [vmem:[#allocation2 + $0x58] sm:$0xff] %v3209_v0 }
  0xdd   : > { %394 = vst [vmem:[#allocation2 + $0x3d0] sm:$0xff] %v3209_v0 }
  0xde   : > { %395 = vst [vmem:[#allocation2 + $0x340] sm:$0xff] %v3209_v0 }
  0xdf   : > { %396 = vst [vmem:[#allocation2 + $0x3e8] sm:$0xff] %v3209_v0 }
  0xe0   : > { %397 = vst [vmem:[#allocation2 + $0x128] sm:$0xff] %v3209_v0 }
  0xe1   : > { %398 = vst [vmem:[#allocation2 + $0x470] sm:$0xff] %v3209_v0 }
  0xe2   : > { %399 = vst [vmem:[#allocation2 + $0x148] sm:$0xff] %v3209_v0 }
  0xe3   : > { %400 = vst [vmem:[#allocation2 + $0xd0] sm:$0xff] %v3209_v0 }
  0xe4   : > { %401 = vst [vmem:[#allocation2 + $0x230] sm:$0xff] %v3209_v0 }
  0xe5   : > { %402 = vst [vmem:[#allocation2 + $0x430] sm:$0xff] %v3209_v0 }
  0xe6   : > { %403 = vst [vmem:[#allocation2 + $0x370] sm:$0xff] %v3209_v0 }
  0xe7   : > { %404 = vst [vmem:[#allocation2 + $0xc0] sm:$0xff] %v3209_v0 }
  0xe8   : > { %405 = vst [vmem:[#allocation2 + $0x110] sm:$0xff] %v3209_v0 }
  0xe9   : > { %406 = vst [vmem:[#allocation2 + $0x1a0] sm:$0xff] %v3209_v0 }
  0xea PF: > { %v661_v1 = vld [vmem:[%s3404_s7 + $0xf0] sm:$0xff]  ;;  %v662_v2 = vld [vmem:[%s3404_s7 + $0xf8] sm:$0xff]  ;;  %v659_v3 = vld [vmem:[%s3404_s7 + $0xe0] sm:$0xff]  ;;  %p2717_p6 = scmp.ne.s32.totalorder %s3188_s18, 2 }
  0xeb   : > { %2724 = vmatpush.xpose.msra.mxu2 %v661_v1  ;;  %2740 = vmatpush.xpose.msra.mxu3 %v662_v2  ;;  %v660_v4 = vld [vmem:[%s3404_s7 + $0xe8] sm:$0xff]  ;;  %v657_v5 = vld [vmem:[%s3404_s7 + $0xd0] sm:$0xff]  ;;  %v658_v6 = vld [vmem:[%s3404_s7 + $0xd8] sm:$0xff] }
  0xec   : > { %791 = vmatpush.xpose.msra.mxu0 %v661_v1  ;;  %904 = vmatpush.xpose.msra.mxu1 %v662_v2  ;;  %v655_v7 = vld [vmem:[%s3404_s7 + $0xc0] sm:$0xff]  ;;  %v656_v8 = vld [vmem:[%s3404_s7 + $0xc8] sm:$0xff]  ;;  %v653_v9 = vld [vmem:[%s3404_s7 + $0xb0] sm:$0xff] }
  0xed   : > { %v654_v10 = vld [vmem:[%s3404_s7 + $0xb8] sm:$0xff]  ;;  %v651_v11 = vld [vmem:[%s3404_s7 + $0xa0] sm:$0xff]  ;;  %v652_v12 = vld [vmem:[%s3404_s7 + $0xa8] sm:$0xff] }
  0xee   : > { %v649_v13 = vld [vmem:[%s3404_s7 + $0x90] sm:$0xff]  ;;  %v650_v14 = vld [vmem:[%s3404_s7 + $0x98] sm:$0xff]  ;;  %v647_v15 = vld [vmem:[%s3404_s7 + $0x80] sm:$0xff] }
  0xef   : > { %2725 = vmatpush.xpose.msra.mxu2 %v659_v3  ;;  %2741 = vmatpush.xpose.msra.mxu3 %v660_v4  ;;  %v648_v16 = vld [vmem:[%s3404_s7 + $0x88] sm:$0xff]  ;;  %v645_v17 = vld [vmem:[%s3404_s7 + $0x70] sm:$0xff]  ;;  %v646_v18 = vld [vmem:[%s3404_s7 + $0x78] sm:$0xff] }
  0xf0   : > { %792 = vmatpush.xpose.msra.mxu0 %v659_v3  ;;  %905 = vmatpush.xpose.msra.mxu1 %v660_v4  ;;  %v643_v19 = vld [vmem:[%s3404_s7 + $0x60] sm:$0xff]  ;;  %v644_v20 = vld [vmem:[%s3404_s7 + $0x68] sm:$0xff]  ;;  %v641_v21 = vld [vmem:[%s3404_s7 + $0x50] sm:$0xff] }
  0xf1   : > { %v642_v22 = vld [vmem:[%s3404_s7 + $0x58] sm:$0xff]  ;;  %v639_v23 = vld [vmem:[%s3404_s7 + $0x40] sm:$0xff]  ;;  %v640_v24 = vld [vmem:[%s3404_s7 + $0x48] sm:$0xff] }
  0xf2   : > { %v637_v25 = vld [vmem:[%s3404_s7 + $0x30] sm:$0xff]  ;;  %v638_v26 = vld [vmem:[%s3404_s7 + $0x38] sm:$0xff]  ;;  %v635_v27 = vld [vmem:[%s3404_s7 + $0x20] sm:$0xff] }
  0xf3   : > { %2726 = vmatpush.xpose.msra.mxu2 %v657_v5  ;;  %2742 = vmatpush.xpose.msra.mxu3 %v658_v6  ;;  %v636_v28 = vld [vmem:[%s3404_s7 + $0x28] sm:$0xff]  ;;  %v633_v29 = vld [vmem:[%s3404_s7 + $0x10] sm:$0xff]  ;;  %v634_v30 = vld [vmem:[%s3404_s7 + $0x18] sm:$0xff] }
  0xf4   : > { %793 = vmatpush.xpose.msra.mxu0 %v657_v5  ;;  %906 = vmatpush.xpose.msra.mxu1 %v658_v6  ;;  %v631_v31 = vld [vmem:[%s3404_s7] sm:$0xff]  ;;  %v632_v32 = vld [vmem:[%s3404_s7 + $0x8] sm:$0xff]  ;;  %v693_v33 = vld [vmem:[%s3404_s7 + $0x1f0] sm:$0xff] }
  0xf5   : > { %v694_v34 = vld [vmem:[%s3404_s7 + $0x1f8] sm:$0xff]  ;;  %v599_v35 = vld [vmem:[%s3397_s14 + $0x100] sm:$0xff]  ;;  %v600_v36 = vld [vmem:[%s3397_s14 + $0x108] sm:$0xff] }
  0xf6   : > { %v725_v37 = vld [vmem:[%s3404_s7 + $0x2f0] sm:$0xff]  ;;  %v726_v38 = vld [vmem:[%s3404_s7 + $0x2f8] sm:$0xff]  ;;  %v3615_v39 = vld [vmem:[%s3397_s14] sm:$0xff] }
  0xf7   : > { %2727 = vmatpush.xpose.msra.mxu2 %v655_v7  ;;  %2743 = vmatpush.xpose.msra.mxu3 %v656_v8  ;;  %v3618_v40 = vld [vmem:[%s3397_s14 + $0x8] sm:$0xff]  ;;  %v691_v41 = vld [vmem:[%s3404_s7 + $0x1e0] sm:$0xff]  ;;  %v689_v45 = vld [vmem:[%s3404_s7 + $0x1d0] sm:$0xff] }
  0xf8   : > { %794 = vmatpush.xpose.msra.mxu0 %v655_v7  ;;  %907 = vmatpush.xpose.msra.mxu1 %v656_v8  ;;  %v692_v42 = vld [vmem:[%s3404_s7 + $0x1e8] sm:$0xff]  ;;  %v723_v43 = vld [vmem:[%s3404_s7 + $0x2e0] sm:$0xff]  ;;  %v690_v46 = vld [vmem:[%s3404_s7 + $0x1d8] sm:$0xff] }
  0xf9   : > { %v724_v44 = vld [vmem:[%s3404_s7 + $0x2e8] sm:$0xff]  ;;  %v601_v47 = vld [vmem:[%s3397_s14 + $0x110] sm:$0xff]  ;;  %v602_v48 = vld [vmem:[%s3397_s14 + $0x118] sm:$0xff] }
  0xfa   : > { %v721_v49 = vld [vmem:[%s3404_s7 + $0x2d0] sm:$0xff]  ;;  %v722_v50 = vld [vmem:[%s3404_s7 + $0x2d8] sm:$0xff]  ;;  %v687_v53 = vld [vmem:[%s3404_s7 + $0x1c0] sm:$0xff] }
  0xfb   : > { %2728 = vmatpush.xpose.msra.mxu2 %v653_v9  ;;  %2744 = vmatpush.xpose.msra.mxu3 %v654_v10  ;;  %v3633_v51 = vld [vmem:[%s3397_s14 + $0x10] sm:$0xff]  ;;  %v3636_v52 = vld [vmem:[%s3397_s14 + $0x18] sm:$0xff]  ;;  %v688_v54 = vld [vmem:[%s3404_s7 + $0x1c8] sm:$0xff] }
  0xfc   : > { %795 = vmatpush.xpose.msra.mxu0 %v653_v9  ;;  %908 = vmatpush.xpose.msra.mxu1 %v654_v10  ;;  %v719_v55 = vld [vmem:[%s3404_s7 + $0x2c0] sm:$0xff]  ;;  %v720_v56 = vld [vmem:[%s3404_s7 + $0x2c8] sm:$0xff]  ;;  %v685_v57 = vld [vmem:[%s3404_s7 + $0x1b0] sm:$0xff] }
  0xfd   : > { %v686_v58 = vld [vmem:[%s3404_s7 + $0x1b8] sm:$0xff]  ;;  %v603_v59 = vld [vmem:[%s3397_s14 + $0x120] sm:$0xff]  ;;  %v604_v60 = vld [vmem:[%s3397_s14 + $0x128] sm:$0xff] }
  0xfe   : > { %v717_v61 = vld [vmem:[%s3404_s7 + $0x2b0] sm:$0xff]  ;;  %v718_v62 = vld [vmem:[%s3404_s7 + $0x2b8] sm:$0xff]  ;;  %v3651_v63 = vld [vmem:[%s3397_s14 + $0x20] sm:$0xff] }
  0xff   : > { %2729 = vmatpush.xpose.msra.mxu2 %v651_v11  ;;  %2745 = vmatpush.xpose.msra.mxu3 %v652_v12  ;;  %v3654_v0 = vld [vmem:[%s3397_s14 + $0x28] sm:$0xff]  ;;  %v683_v1 = vld [vmem:[%s3404_s7 + $0x1a0] sm:$0xff]  ;;  %v681_v5 = vld [vmem:[%s3404_s7 + $0x190] sm:$0xff] }
 0x100   : > { %796 = vmatpush.xpose.msra.mxu0 %v651_v11  ;;  %909 = vmatpush.xpose.msra.mxu1 %v652_v12  ;;  %v684_v2 = vld [vmem:[%s3404_s7 + $0x1a8] sm:$0xff]  ;;  %v715_v3 = vld [vmem:[%s3404_s7 + $0x2a0] sm:$0xff]  ;;  %v682_v6 = vld [vmem:[%s3404_s7 + $0x198] sm:$0xff] }
 0x101   : > { %v716_v4 = vld [vmem:[%s3404_s7 + $0x2a8] sm:$0xff]  ;;  %v605_v7 = vld [vmem:[%s3397_s14 + $0x130] sm:$0xff]  ;;  %v606_v8 = vld [vmem:[%s3397_s14 + $0x138] sm:$0xff] }
 0x102   : > { %v713_v9 = vld [vmem:[%s3404_s7 + $0x290] sm:$0xff]  ;;  %v714_v10 = vld [vmem:[%s3404_s7 + $0x298] sm:$0xff] }
 0x103   : > { %2730 = vmatpush.xpose.msra.mxu2 %v649_v13  ;;  %2746 = vmatpush.xpose.msra.mxu3 %v650_v14  ;;  %v3669_v11 = vld [vmem:[%s3397_s14 + $0x30] sm:$0xff]  ;;  %v3672_v12 = vld [vmem:[%s3397_s14 + $0x38] sm:$0xff] }
 0x104   : > { %797 = vmatpush.xpose.msra.mxu0 %v649_v13  ;;  %910 = vmatpush.xpose.msra.mxu1 %v650_v14  ;;  %v679_v13 = vld [vmem:[%s3404_s7 + $0x180] sm:$0xff]  ;;  %v680_v14 = vld [vmem:[%s3404_s7 + $0x188] sm:$0xff] }
 0x107   : > { %2731 = vmatpush.xpose.msra.mxu2 %v647_v15  ;;  %2747 = vmatpush.xpose.msra.mxu3 %v648_v16 }
 0x108   : > { %798 = vmatpush.xpose.msra.mxu0 %v647_v15  ;;  %911 = vmatpush.xpose.msra.mxu1 %v648_v16  ;;  %v711_v15 = vld [vmem:[%s3404_s7 + $0x280] sm:$0xff]  ;;  %v712_v16 = vld [vmem:[%s3404_s7 + $0x288] sm:$0xff] }
 0x10b   : > { %2732 = vmatpush.xpose.msra.mxu2 %v645_v17  ;;  %2748 = vmatpush.xpose.msra.mxu3 %v646_v18 }
 0x10c   : > { %799 = vmatpush.xpose.msra.mxu0 %v645_v17  ;;  %912 = vmatpush.xpose.msra.mxu1 %v646_v18  ;;  %v607_v17 = vld [vmem:[%s3397_s14 + $0x140] sm:$0xff]  ;;  %v608_v18 = vld [vmem:[%s3397_s14 + $0x148] sm:$0xff] }
 0x10f   : > { %2733 = vmatpush.xpose.msra.mxu2 %v643_v19  ;;  %2749 = vmatpush.xpose.msra.mxu3 %v644_v20 }
 0x110   : > { %800 = vmatpush.xpose.msra.mxu0 %v643_v19  ;;  %913 = vmatpush.xpose.msra.mxu1 %v644_v20  ;;  %v3683_v19 = vld [vmem:[%s3397_s14 + $0x40] sm:$0xff]  ;;  %v3686_v20 = vld [vmem:[%s3397_s14 + $0x48] sm:$0xff] }
 0x113   : > { %2734 = vmatpush.xpose.msra.mxu2 %v641_v21  ;;  %2750 = vmatpush.xpose.msra.mxu3 %v642_v22 }
 0x114   : > { %801 = vmatpush.xpose.msra.mxu0 %v641_v21  ;;  %914 = vmatpush.xpose.msra.mxu1 %v642_v22  ;;  %v677_v21 = vld [vmem:[%s3404_s7 + $0x170] sm:$0xff]  ;;  %v678_v22 = vld [vmem:[%s3404_s7 + $0x178] sm:$0xff] }
 0x117   : > { %2735 = vmatpush.xpose.msra.mxu2 %v639_v23  ;;  %2751 = vmatpush.xpose.msra.mxu3 %v640_v24 }
 0x118   : > { %802 = vmatpush.xpose.msra.mxu0 %v639_v23  ;;  %915 = vmatpush.xpose.msra.mxu1 %v640_v24  ;;  %v709_v23 = vld [vmem:[%s3404_s7 + $0x270] sm:$0xff]  ;;  %v710_v24 = vld [vmem:[%s3404_s7 + $0x278] sm:$0xff] }
 0x11b   : > { %2736 = vmatpush.xpose.msra.mxu2 %v637_v25  ;;  %2752 = vmatpush.xpose.msra.mxu3 %v638_v26 }
 0x11c   : > { %803 = vmatpush.xpose.msra.mxu0 %v637_v25  ;;  %916 = vmatpush.xpose.msra.mxu1 %v638_v26  ;;  %v609_v25 = vld [vmem:[%s3397_s14 + $0x150] sm:$0xff]  ;;  %v610_v26 = vld [vmem:[%s3397_s14 + $0x158] sm:$0xff] }
 0x11f   : > { %2737 = vmatpush.xpose.msra.mxu2 %v635_v27  ;;  %2753 = vmatpush.xpose.msra.mxu3 %v636_v28 }
 0x120   : > { %804 = vmatpush.xpose.msra.mxu0 %v635_v27  ;;  %917 = vmatpush.xpose.msra.mxu1 %v636_v28  ;;  %v3697_v27 = vld [vmem:[%s3397_s14 + $0x50] sm:$0xff]  ;;  %v3700_v28 = vld [vmem:[%s3397_s14 + $0x58] sm:$0xff] }
 0x123   : > { %2738 = vmatpush.xpose.msra.mxu2 %v633_v29  ;;  %2754 = vmatpush.xpose.msra.mxu3 %v634_v30 }
 0x124   : > { %805 = vmatpush.xpose.msra.mxu0 %v633_v29  ;;  %918 = vmatpush.xpose.msra.mxu1 %v634_v30  ;;  %v675_v29 = vld [vmem:[%s3404_s7 + $0x160] sm:$0xff]  ;;  %v676_v30 = vld [vmem:[%s3404_s7 + $0x168] sm:$0xff] }
 0x127   : > { %2739 = vmatpush.xpose.msra.mxu2 %v631_v31  ;;  %2755 = vmatpush.xpose.msra.mxu3 %v632_v32 }
 0x128   : > { %806 = vmatpush.xpose.msra.mxu0 %v631_v31  ;;  %919 = vmatpush.xpose.msra.mxu1 %v632_v32  ;;  %v707_v31 = vld [vmem:[%s3404_s7 + $0x260] sm:$0xff]  ;;  %v708_v32 = vld [vmem:[%s3404_s7 + $0x268] sm:$0xff] }
 0x12a   : > { %855 = vmatmul.f32.vlgmr.msra.gmra.mxu2 %v599_v35  ;;  %968 = vmatmul.f32.vlgmr.msra.gmra.mxu3 %v600_v36  ;;  %v3711_v35 = vld [vmem:[%s3397_s14 + $0x60] sm:$0xff]  ;;  %v3714_v36 = vld [vmem:[%s3397_s14 + $0x68] sm:$0xff] }
 0x12b   : > { %1017 = vmatpush.xpose.msrb.mxu2 %v693_v33  ;;  %1130 = vmatpush.xpose.msrb.mxu3 %v694_v34  ;;  %v611_v33 = vld [vmem:[%s3397_s14 + $0x160] sm:$0xff]  ;;  %v612_v34 = vld [vmem:[%s3397_s14 + $0x168] sm:$0xff] }
 0x12c   : > { %1243 = vmatpush.xpose.msrb.mxu0 %v725_v37  ;;  %1356 = vmatpush.xpose.msrb.mxu1 %v726_v38  ;;  %v673_v37 = vld [vmem:[%s3404_s7 + $0x150] sm:$0xff]  ;;  %v674_v38 = vld [vmem:[%s3404_s7 + $0x158] sm:$0xff] }
 0x12d   : > { %807 = vmatmul.f32.vlgmr.msra.gmra.mxu0 %v3615_v39  ;;  %920 = vmatmul.f32.vlgmr.msra.gmra.mxu1 %v3618_v40 }
 0x12f   : > { %1018 = vmatpush.xpose.msrb.mxu2 %v691_v41  ;;  %1131 = vmatpush.xpose.msrb.mxu3 %v692_v42  ;;  %v705_v41 = vld [vmem:[%s3404_s7 + $0x250] sm:$0xff]  ;;  %v706_v42 = vld [vmem:[%s3404_s7 + $0x258] sm:$0xff] }
 0x130   : > { %1244 = vmatpush.xpose.msrb.mxu0 %v723_v43  ;;  %1357 = vmatpush.xpose.msrb.mxu1 %v724_v44  ;;  %v613_v43 = vld [vmem:[%s3397_s14 + $0x170] sm:$0xff]  ;;  %v614_v44 = vld [vmem:[%s3397_s14 + $0x178] sm:$0xff] }
 0x132   : > { %858 = vmatmul.f32.gmra.mxu2 %v601_v47  ;;  %971 = vmatmul.f32.gmra.mxu3 %v602_v48  ;;  %v671_v47 = vld [vmem:[%s3404_s7 + $0x140] sm:$0xff]  ;;  %v672_v48 = vld [vmem:[%s3404_s7 + $0x148] sm:$0xff] }
 0x133   : > { %1019 = vmatpush.xpose.msrb.mxu2 %v689_v45  ;;  %1132 = vmatpush.xpose.msrb.mxu3 %v690_v46  ;;  %v3725_v45 = vld [vmem:[%s3397_s14 + $0x70] sm:$0xff]  ;;  %v3728_v46 = vld [vmem:[%s3397_s14 + $0x78] sm:$0xff] }
 0x134   : > { %1245 = vmatpush.xpose.msrb.mxu0 %v721_v49  ;;  %1358 = vmatpush.xpose.msrb.mxu1 %v722_v50  ;;  %v703_v49 = vld [vmem:[%s3404_s7 + $0x240] sm:$0xff]  ;;  %v704_v50 = vld [vmem:[%s3404_s7 + $0x248] sm:$0xff] }
 0x135   : > { %810 = vmatmul.f32.gmra.mxu0 %v3633_v51  ;;  %923 = vmatmul.f32.gmra.mxu1 %v3636_v52 }
 0x137   : > { %1020 = vmatpush.xpose.msrb.mxu2 %v687_v53  ;;  %1133 = vmatpush.xpose.msrb.mxu3 %v688_v54  ;;  %v615_v53 = vld [vmem:[%s3397_s14 + $0x180] sm:$0xff]  ;;  %v616_v54 = vld [vmem:[%s3397_s14 + $0x188] sm:$0xff] }
 0x138   : > { %1246 = vmatpush.xpose.msrb.mxu0 %v719_v55  ;;  %1359 = vmatpush.xpose.msrb.mxu1 %v720_v56  ;;  %v3739_v55 = vld [vmem:[%s3397_s14 + $0x80] sm:$0xff]  ;;  %v3742_v56 = vld [vmem:[%s3397_s14 + $0x88] sm:$0xff] }
 0x13a   : > { %861 = vmatmul.f32.gmra.mxu2 %v603_v59  ;;  %974 = vmatmul.f32.gmra.mxu3 %v604_v60  ;;  %v701_v59 = vld [vmem:[%s3404_s7 + $0x230] sm:$0xff]  ;;  %v702_v60 = vld [vmem:[%s3404_s7 + $0x238] sm:$0xff] }
 0x13b   : > { %1021 = vmatpush.xpose.msrb.mxu2 %v685_v57  ;;  %1134 = vmatpush.xpose.msrb.mxu3 %v686_v58  ;;  %v669_v57 = vld [vmem:[%s3404_s7 + $0x130] sm:$0xff]  ;;  %v670_v58 = vld [vmem:[%s3404_s7 + $0x138] sm:$0xff] }
 0x13c   : > { %1247 = vmatpush.xpose.msrb.mxu0 %v717_v61  ;;  %1360 = vmatpush.xpose.msrb.mxu1 %v718_v62  ;;  %v617_v61 = vld [vmem:[%s3397_s14 + $0x190] sm:$0xff]  ;;  %v618_v62 = vld [vmem:[%s3397_s14 + $0x198] sm:$0xff] }
 0x13d   : > { %813 = vmatmul.f32.gmra.mxu0 %v3651_v63  ;;  %926 = vmatmul.f32.gmra.mxu1 %v3654_v0 }
 0x13f   : > { %1022 = vmatpush.xpose.msrb.mxu2 %v683_v1  ;;  %1135 = vmatpush.xpose.msrb.mxu3 %v684_v2  ;;  %v3753_v1 = vld [vmem:[%s3397_s14 + $0x90] sm:$0xff]  ;;  %v3756_v2 = vld [vmem:[%s3397_s14 + $0x98] sm:$0xff] }
 0x140   : > { %1248 = vmatpush.xpose.msrb.mxu0 %v715_v3  ;;  %1361 = vmatpush.xpose.msrb.mxu1 %v716_v4  ;;  %v667_v3 = vld [vmem:[%s3404_s7 + $0x120] sm:$0xff]  ;;  %v668_v4 = vld [vmem:[%s3404_s7 + $0x128] sm:$0xff] }
 0x142   : > { %864 = vmatmul.f32.gmra.mxu2 %v605_v7  ;;  %977 = vmatmul.f32.gmra.mxu3 %v606_v8  ;;  %v619_v7 = vld [vmem:[%s3397_s14 + $0x1a0] sm:$0xff]  ;;  %v620_v8 = vld [vmem:[%s3397_s14 + $0x1a8] sm:$0xff] }
 0x143   : > { %1023 = vmatpush.xpose.msrb.mxu2 %v681_v5  ;;  %1136 = vmatpush.xpose.msrb.mxu3 %v682_v6  ;;  %v699_v5 = vld [vmem:[%s3404_s7 + $0x220] sm:$0xff]  ;;  %v700_v6 = vld [vmem:[%s3404_s7 + $0x228] sm:$0xff] }
 0x144   : > { %1249 = vmatpush.xpose.msrb.mxu0 %v713_v9  ;;  %1362 = vmatpush.xpose.msrb.mxu1 %v714_v10  ;;  %v3767_v9 = vld [vmem:[%s3397_s14 + $0xa0] sm:$0xff]  ;;  %v3770_v10 = vld [vmem:[%s3397_s14 + $0xa8] sm:$0xff] }
 0x145   : > { %816 = vmatmul.f32.gmra.mxu0 %v3669_v11  ;;  %929 = vmatmul.f32.gmra.mxu1 %v3672_v12 }
 0x147   : > { %1024 = vmatpush.xpose.msrb.mxu2 %v679_v13  ;;  %1137 = vmatpush.xpose.msrb.mxu3 %v680_v14  ;;  %v665_v13 = vld [vmem:[%s3404_s7 + $0x110] sm:$0xff]  ;;  %v666_v14 = vld [vmem:[%s3404_s7 + $0x118] sm:$0xff] }
 0x148   : > { %1250 = vmatpush.xpose.msrb.mxu0 %v711_v15  ;;  %1363 = vmatpush.xpose.msrb.mxu1 %v712_v16  ;;  %v697_v15 = vld [vmem:[%s3404_s7 + $0x210] sm:$0xff]  ;;  %v698_v16 = vld [vmem:[%s3404_s7 + $0x218] sm:$0xff] }
 0x14a   : > { %867 = vmatmul.f32.gmra.mxu2 %v607_v17  ;;  %980 = vmatmul.f32.gmra.mxu3 %v608_v18  ;;  %v621_v17 = vld [vmem:[%s3397_s14 + $0x1b0] sm:$0xff]  ;;  %v622_v18 = vld [vmem:[%s3397_s14 + $0x1b8] sm:$0xff] }
 0x14b   : > { %1025 = vmatpush.xpose.msrb.mxu2 %v677_v21  ;;  %1138 = vmatpush.xpose.msrb.mxu3 %v678_v22  ;;  %v3781_v21 = vld [vmem:[%s3397_s14 + $0xb0] sm:$0xff]  ;;  %v3784_v22 = vld [vmem:[%s3397_s14 + $0xb8] sm:$0xff] }
 0x14c   : > { %1251 = vmatpush.xpose.msrb.mxu0 %v709_v23  ;;  %1364 = vmatpush.xpose.msrb.mxu1 %v710_v24  ;;  %v663_v23 = vld [vmem:[%s3404_s7 + $0x100] sm:$0xff]  ;;  %v664_v24 = vld [vmem:[%s3404_s7 + $0x108] sm:$0xff] }
 0x14d   : > { %819 = vmatmul.f32.gmra.mxu0 %v3683_v19  ;;  %932 = vmatmul.f32.gmra.mxu1 %v3686_v20 }
 0x14f   : > { %1026 = vmatpush.xpose.msrb.mxu2 %v675_v29  ;;  %1139 = vmatpush.xpose.msrb.mxu3 %v676_v30  ;;  %v623_v29 = vld [vmem:[%s3397_s14 + $0x1c0] sm:$0xff]  ;;  %v624_v30 = vld [vmem:[%s3397_s14 + $0x1c8] sm:$0xff] }
 0x150   : > { %1252 = vmatpush.xpose.msrb.mxu0 %v707_v31  ;;  %1365 = vmatpush.xpose.msrb.mxu1 %v708_v32  ;;  %v3795_v31 = vld [vmem:[%s3397_s14 + $0xc0] sm:$0xff]  ;;  %v3798_v32 = vld [vmem:[%s3397_s14 + $0xc8] sm:$0xff] }
 0x152   : > { %870 = vmatmul.f32.gmra.mxu2 %v609_v25  ;;  %983 = vmatmul.f32.gmra.mxu3 %v610_v26  ;;  %v695_v25 = vld [vmem:[%s3404_s7 + $0x200] sm:$0xff]  ;;  %v696_v26 = vld [vmem:[%s3404_s7 + $0x208] sm:$0xff] }
 0x153   : > { %1027 = vmatpush.xpose.msrb.mxu2 %v673_v37  ;;  %1140 = vmatpush.xpose.msrb.mxu3 %v674_v38  ;;  %v625_v37 = vld [vmem:[%s3397_s14 + $0x1d0] sm:$0xff]  ;;  %v626_v38 = vld [vmem:[%s3397_s14 + $0x1d8] sm:$0xff] }
 0x154   : > { %1253 = vmatpush.xpose.msrb.mxu0 %v705_v41  ;;  %1366 = vmatpush.xpose.msrb.mxu1 %v706_v42  ;;  %v3807_v41 = vld [vmem:[%s3397_s14 + $0xd0] sm:$0xff]  ;;  %v3810_v42 = vld [vmem:[%s3397_s14 + $0xd8] sm:$0xff] }
 0x155   : > { %822 = vmatmul.f32.gmra.mxu0 %v3697_v27  ;;  %935 = vmatmul.f32.gmra.mxu1 %v3700_v28 }
 0x157   : > { %1028 = vmatpush.xpose.msrb.mxu2 %v671_v47  ;;  %1141 = vmatpush.xpose.msrb.mxu3 %v672_v48  ;;  %v627_v47 = vld [vmem:[%s3397_s14 + $0x1e0] sm:$0xff]  ;;  %v628_v48 = vld [vmem:[%s3397_s14 + $0x1e8] sm:$0xff] }
 0x158   : > { %1254 = vmatpush.xpose.msrb.mxu0 %v703_v49  ;;  %1367 = vmatpush.xpose.msrb.mxu1 %v704_v50  ;;  %v3819_v49 = vld [vmem:[%s3397_s14 + $0xe0] sm:$0xff]  ;;  %v3822_v50 = vld [vmem:[%s3397_s14 + $0xe8] sm:$0xff] }
 0x15a   : > { %873 = vmatmul.f32.gmra.mxu2 %v611_v33  ;;  %986 = vmatmul.f32.gmra.mxu3 %v612_v34  ;;  %v757_v33 = vld [vmem:[%s3404_s7 + $0x3f0] sm:$0xff]  ;;  %v758_v34 = vld [vmem:[%s3404_s7 + $0x3f8] sm:$0xff] }
 0x15b   : > { %1029 = vmatpush.xpose.msrb.mxu2 %v669_v57  ;;  %1142 = vmatpush.xpose.msrb.mxu3 %v670_v58  ;;  %v629_v57 = vld [vmem:[%s3397_s14 + $0x1f0] sm:$0xff]  ;;  %v630_v58 = vld [vmem:[%s3397_s14 + $0x1f8] sm:$0xff] }
 0x15c   : > { %1255 = vmatpush.xpose.msrb.mxu0 %v701_v59  ;;  %1368 = vmatpush.xpose.msrb.mxu1 %v702_v60  ;;  %v3831_v59 = vld [vmem:[%s3397_s14 + $0xf0] sm:$0xff]  ;;  %v3834_v60 = vld [vmem:[%s3397_s14 + $0xf8] sm:$0xff] }
 0x15d   : > { %825 = vmatmul.f32.gmra.mxu0 %v3711_v35  ;;  %938 = vmatmul.f32.gmra.mxu1 %v3714_v36 }
 0x15f   : > { %1030 = vmatpush.xpose.msrb.mxu2 %v667_v3  ;;  %1143 = vmatpush.xpose.msrb.mxu3 %v668_v4  ;;  %v407_v4 = vld [vmem:[#allocation2 + $0x2b0] sm:$0xff] }
 0x160   : > { %1256 = vmatpush.xpose.msrb.mxu0 %v699_v5  ;;  %1369 = vmatpush.xpose.msrb.mxu1 %v700_v6 }
 0x162   : > { %876 = vmatmul.f32.gmra.mxu2 %v613_v43  ;;  %989 = vmatmul.f32.gmra.mxu3 %v614_v44  ;;  %v789_v43 = vld [vmem:[%s3404_s7 + $0x4f0] sm:$0xff]  ;;  %v790_v44 = vld [vmem:[%s3404_s7 + $0x4f8] sm:$0xff] }
 0x163   : > { %1031 = vmatpush.xpose.msrb.mxu2 %v665_v13  ;;  %1144 = vmatpush.xpose.msrb.mxu3 %v666_v14 }
 0x164   : > { %1257 = vmatpush.xpose.msrb.mxu0 %v697_v15  ;;  %1370 = vmatpush.xpose.msrb.mxu1 %v698_v16  ;;  %v487_v15 = vld [vmem:[#allocation2 + $0x418] sm:$0xff] }
 0x165   : > { %828 = vmatmul.f32.gmra.mxu0 %v3725_v45  ;;  %941 = vmatmul.f32.gmra.mxu1 %v3728_v46 }
 0x167   : > { %1032 = vmatpush.xpose.msrb.mxu2 %v663_v23  ;;  %1145 = vmatpush.xpose.msrb.mxu3 %v664_v24  ;;  %v412_v24 = vld [vmem:[#allocation2 + $0x328] sm:$0xff] }
 0x168   : > { %1258 = vmatpush.xpose.msrb.mxu0 %v695_v25  ;;  %1371 = vmatpush.xpose.msrb.mxu1 %v696_v26 }
 0x16a   : > { %879 = vmatmul.f32.gmra.mxu2 %v615_v53  ;;  %992 = vmatmul.f32.gmra.mxu3 %v616_v54  ;;  %v755_v53 = vld [vmem:[%s3404_s7 + $0x3e0] sm:$0xff]  ;;  %v756_v54 = vld [vmem:[%s3404_s7 + $0x3e8] sm:$0xff] }
 0x16b   : > { %1469 = vmatpush.xpose.msra.mxu2 %v757_v33  ;;  %1582 = vmatpush.xpose.msra.mxu3 %v758_v34  ;;  %v492_v33 = vld [vmem:[#allocation2 + $0x448] sm:$0xff] }
 0x16c   : > { %1695 = vmatpush.xpose.msra.mxu0 %v789_v43  ;;  %1808 = vmatpush.xpose.msra.mxu1 %v790_v44  ;;  %v417_v44 = vld [vmem:[#allocation2 + $0x310] sm:$0xff] }
 0x16d   : > { %831 = vmatmul.f32.gmra.mxu0 %v3739_v55  ;;  %944 = vmatmul.f32.gmra.mxu1 %v3742_v56 }
 0x16f   : > { %1470 = vmatpush.xpose.msra.mxu2 %v755_v53  ;;  %1583 = vmatpush.xpose.msra.mxu3 %v756_v54  ;;  %v751_v53 = vld [vmem:[%s3404_s7 + $0x3c0] sm:$0xff] }
 0x172   : > { %882 = vmatmul.f32.gmra.mxu2 %v617_v61  ;;  %995 = vmatmul.f32.gmra.mxu3 %v618_v62  ;;  %v787_v61 = vld [vmem:[%s3404_s7 + $0x4e0] sm:$0xff]  ;;  %v788_v62 = vld [vmem:[%s3404_s7 + $0x4e8] sm:$0xff] }
 0x173   : > { %1696 = vmatpush.xpose.msra.mxu0 %v787_v61  ;;  %1809 = vmatpush.xpose.msra.mxu1 %v788_v62 }
 0x175   : > { %834 = vmatmul.f32.gmra.mxu0 %v3753_v1  ;;  %947 = vmatmul.f32.gmra.mxu1 %v3756_v2 }
 0x17a   : > { %885 = vmatmul.f32.gmra.mxu2 %v619_v7  ;;  %998 = vmatmul.f32.gmra.mxu3 %v620_v8  ;;  %v753_v7 = vld [vmem:[%s3404_s7 + $0x3d0] sm:$0xff]  ;;  %v754_v8 = vld [vmem:[%s3404_s7 + $0x3d8] sm:$0xff] }
 0x17b   : > { %1471 = vmatpush.xpose.msra.mxu2 %v753_v7  ;;  %1584 = vmatpush.xpose.msra.mxu3 %v754_v8  ;;  %v783_v7 = vld [vmem:[%s3404_s7 + $0x4c0] sm:$0xff] }
 0x17d   : > { %837 = vmatmul.f32.gmra.mxu0 %v3767_v9  ;;  %950 = vmatmul.f32.gmra.mxu1 %v3770_v10 }
 0x17f   : > { %1472 = vmatpush.xpose.msra.mxu2 %v751_v53 }
 0x182   : > { %888 = vmatmul.f32.gmra.mxu2 %v621_v17  ;;  %1001 = vmatmul.f32.gmra.mxu3 %v622_v18 }
 0x185   : > { %840 = vmatmul.f32.gmra.mxu0 %v3781_v21  ;;  %953 = vmatmul.f32.gmra.mxu1 %v3784_v22 }
 0x18a   : > { %891 = vmatmul.f32.gmra.mxu2 %v623_v29  ;;  %1004 = vmatmul.f32.gmra.mxu3 %v624_v30  ;;  %v785_v29 = vld [vmem:[%s3404_s7 + $0x4d0] sm:$0xff] }
 0x18b   : > { %1697 = vmatpush.xpose.msra.mxu0 %v785_v29  ;;  %v507_v29 = vld [vmem:[#allocation2 + $0x368] sm:$0xff] }
 0x18d   : > { %843 = vmatmul.f32.gmra.mxu0 %v3795_v31  ;;  %956 = vmatmul.f32.gmra.mxu1 %v3798_v32 }
 0x18f   : > { %1698 = vmatpush.xpose.msra.mxu0 %v783_v7 }
 0x192   : > { %894 = vmatmul.f32.gmra.mxu2 %v625_v37  ;;  %1007 = vmatmul.f32.gmra.mxu3 %v626_v38 }
 0x195   : > { %846 = vmatmul.f32.gmra.mxu0 %v3807_v41  ;;  %959 = vmatmul.f32.gmra.mxu1 %v3810_v42 }
 0x19a   : > { %897 = vmatmul.f32.gmra.mxu2 %v627_v47  ;;  %1010 = vmatmul.f32.gmra.mxu3 %v628_v48 }
 0x19d   : > { %849 = vmatmul.f32.gmra.mxu0 %v3819_v49  ;;  %962 = vmatmul.f32.gmra.mxu1 %v3822_v50 }
 0x1a2   : > { %900 = vmatmul.f32.gmra.mxu2 %v629_v57  ;;  %1013 = vmatmul.f32.gmra.mxu3 %v630_v58  ;;  %v497_v57 = vld [vmem:[#allocation2 + $0x90] sm:$0xff] }
 0x1a5   : > { %852 = vmatmul.f32.gmra.mxu0 %v3831_v59  ;;  %965 = vmatmul.f32.gmra.mxu1 %v3834_v60 }
 0x1aa   : > { %v808_v3 = vpop.f32.mrf.mxu0  ;;  %v921_v5 = vpop.f32.mrf.mxu1  ;;  %1033 = vmatmul.f32.vlgmr.msrb.gmra.mxu2 %v3615_v39  ;;  %1146 = vmatmul.f32.vlgmr.msrb.gmra.mxu3 %v3618_v40 }
 0x1ab   : > { %v922_v6 = vadd.f32 %v921_v5, %v808_v3 }
 0x1ad   : > { %v1921_v13 = vadd.f32 %v922_v6, %v407_v4  ;;  %1259 = vmatmul.f32.vlgmr.msrb.gmra.mxu0 %v3615_v39  ;;  %1372 = vmatmul.f32.vlgmr.msrb.gmra.mxu1 %v3618_v40  ;;  %v856_v14 = vpop.f32.mrf.mxu2  ;;  %v969_v16 = vpop.f32.mrf.mxu3  ;;  %v786_v39 = vld [vmem:[%s3404_s7 + $0x4d8] sm:$0xff]  ;;  %v422_v4 = vld [vmem:[#allocation2 + $0x60] sm:$0xff] }
 0x1ae   : > { %v970_v17 = vadd.f32 %v969_v16, %v856_v14  ;;  %1810 = vmatpush.xpose.msra.mxu1 %v786_v39 }
 0x1af   : > { %2081 = vst [vmem:[#allocation2 + $0x2b0] sm:$0xff] %v1921_v13  ;;  %v502_v13 = vld [vmem:[#allocation2 + $0x130] sm:$0xff] }
 0x1b0   : > { %v2001_v18 = vadd.f32 %v970_v17, %v487_v15 }
 0x1b2   : > { %v811_v23 = vpop.f32.mrf.mxu0  ;;  %v924_v25 = vpop.f32.mrf.mxu1  ;;  %2161 = vst [vmem:[#allocation2 + $0x418] sm:$0xff] %v2001_v18  ;;  %1036 = vmatmul.f32.gmra.mxu2 %v3633_v51  ;;  %1149 = vmatmul.f32.gmra.mxu3 %v3636_v52  ;;  %v427_v18 = vld [vmem:[#allocation2 + $0xa0] sm:$0xff] }
 0x1b3   : > { %v925_v26 = vadd.f32 %v924_v25, %v811_v23  ;;  %v749_v25 = vld [vmem:[%s3404_s7 + $0x3b0] sm:$0xff] }
 0x1b4   : > { %1473 = vmatpush.xpose.msra.mxu2 %v749_v25 }
 0x1b5   : > { %v1926_v40 = vadd.f32 %v925_v26, %v412_v24  ;;  %1262 = vmatmul.f32.gmra.mxu0 %v3633_v51  ;;  %1375 = vmatmul.f32.gmra.mxu1 %v3636_v52  ;;  %v859_v30 = vpop.f32.mrf.mxu2  ;;  %v972_v34 = vpop.f32.mrf.mxu3  ;;  %v752_v51 = vld [vmem:[%s3404_s7 + $0x3c8] sm:$0xff] }
 0x1b6   : > { %v973_v37 = vadd.f32 %v972_v34, %v859_v30  ;;  %1585 = vmatpush.xpose.msra.mxu3 %v752_v51  ;;  %v432_v34 = vld [vmem:[#allocation2 + $0x4a0] sm:$0xff] }
 0x1b7   : > { %2086 = vst [vmem:[#allocation2 + $0x328] sm:$0xff] %v1926_v40 }
 0x1b8   : > { %v2006_v38 = vadd.f32 %v973_v37, %v492_v33 }
 0x1ba   : > { %v814_v43 = vpop.f32.mrf.mxu0  ;;  %v927_v47 = vpop.f32.mrf.mxu1  ;;  %2166 = vst [vmem:[#allocation2 + $0x448] sm:$0xff] %v2006_v38  ;;  %1039 = vmatmul.f32.gmra.mxu2 %v3651_v63  ;;  %1152 = vmatmul.f32.gmra.mxu3 %v3654_v0 }
 0x1bb   : > { %v928_v48 = vadd.f32 %v927_v47, %v814_v43  ;;  %v781_v43 = vld [vmem:[%s3404_s7 + $0x4b0] sm:$0xff]  ;;  %v512_v47 = vld [vmem:[#allocation2 + $0x408] sm:$0xff] }
 0x1bc   : > { %1699 = vmatpush.xpose.msra.mxu0 %v781_v43  ;;  %v777_v43 = vld [vmem:[%s3404_s7 + $0x490] sm:$0xff] }
 0x1bd   : > { %v1931_v52 = vadd.f32 %v928_v48, %v417_v44  ;;  %1265 = vmatmul.f32.gmra.mxu0 %v3651_v63  ;;  %1378 = vmatmul.f32.gmra.mxu1 %v3654_v0  ;;  %v862_v54 = vpop.f32.mrf.mxu2  ;;  %v975_v58 = vpop.f32.mrf.mxu3  ;;  %v784_v63 = vld [vmem:[%s3404_s7 + $0x4c8] sm:$0xff] }
 0x1be   : > { %v976_v61 = vadd.f32 %v975_v58, %v862_v54  ;;  %1811 = vmatpush.xpose.msra.mxu1 %v784_v63  ;;  %v437_v54 = vld [vmem:[#allocation2 + $0x1a8] sm:$0xff]  ;;  %v442_v63 = vld [vmem:[#allocation2 + $0x320] sm:$0xff] }
 0x1bf   : > { %2091 = vst [vmem:[#allocation2 + $0x310] sm:$0xff] %v1931_v52 }
 0x1c0   : > { %v2011_v62 = vadd.f32 %v976_v61, %v497_v57  ;;  %v747_v61 = vld [vmem:[%s3404_s7 + $0x3a0] sm:$0xff] }
 0x1c1   : > { %1474 = vmatpush.xpose.msra.mxu2 %v747_v61  ;;  %v537_v61 = vld [vmem:[#allocation2 + $0x198] sm:$0xff] }
 0x1c2   : > { %v817_v3 = vpop.f32.mrf.mxu0  ;;  %v930_v5 = vpop.f32.mrf.mxu1  ;;  %2171 = vst [vmem:[#allocation2 + $0x90] sm:$0xff] %v2011_v62  ;;  %1042 = vmatmul.f32.gmra.mxu2 %v3669_v11  ;;  %1155 = vmatmul.f32.gmra.mxu3 %v3672_v12 }
 0x1c3   : > { %v931_v6 = vadd.f32 %v930_v5, %v817_v3  ;;  %v517_v3 = vld [vmem:[#allocation2 + $0x420] sm:$0xff] }
 0x1c5   : > { %v1936_v0 = vadd.f32 %v931_v6, %v422_v4  ;;  %1268 = vmatmul.f32.gmra.mxu0 %v3669_v11  ;;  %1381 = vmatmul.f32.gmra.mxu1 %v3672_v12  ;;  %v865_v8 = vpop.f32.mrf.mxu2  ;;  %v978_v14 = vpop.f32.mrf.mxu3  ;;  %v750_v11 = vld [vmem:[%s3404_s7 + $0x3b8] sm:$0xff] }
 0x1c6   : > { %v979_v15 = vadd.f32 %v978_v14, %v865_v8  ;;  %1586 = vmatpush.xpose.msra.mxu3 %v750_v11 }
 0x1c7   : > { %2096 = vst [vmem:[#allocation2 + $0x60] sm:$0xff] %v1936_v0 }
 0x1c8   : > { %v2016_v16 = vadd.f32 %v979_v15, %v502_v13  ;;  %v779_v13 = vld [vmem:[%s3404_s7 + $0x4a0] sm:$0xff]  ;;  %v522_v15 = vld [vmem:[#allocation2 + $0x490] sm:$0xff] }
 0x1c9   : > { %1700 = vmatpush.xpose.msra.mxu0 %v779_v13 }
 0x1ca   : > { %v820_v17 = vpop.f32.mrf.mxu0  ;;  %v933_v23 = vpop.f32.mrf.mxu1  ;;  %2176 = vst [vmem:[#allocation2 + $0x130] sm:$0xff] %v2016_v16  ;;  %1045 = vmatmul.f32.gmra.mxu2 %v3683_v19  ;;  %1158 = vmatmul.f32.gmra.mxu3 %v3686_v20 }
 0x1cb   : > { %v934_v24 = vadd.f32 %v933_v23, %v820_v17 }
 0x1cd   : > { %v1941_v12 = vadd.f32 %v934_v24, %v427_v18  ;;  %1271 = vmatmul.f32.gmra.mxu0 %v3683_v19  ;;  %1384 = vmatmul.f32.gmra.mxu1 %v3686_v20  ;;  %v868_v26 = vpop.f32.mrf.mxu2  ;;  %v981_v39 = vpop.f32.mrf.mxu3  ;;  %v782_v19 = vld [vmem:[%s3404_s7 + $0x4b8] sm:$0xff]  ;;  %v447_v24 = vld [vmem:[#allocation2 + $0x3c8] sm:$0xff] }
 0x1ce   : > { %v982_v40 = vadd.f32 %v981_v39, %v868_v26  ;;  %1812 = vmatpush.xpose.msra.mxu1 %v782_v19  ;;  %1701 = vmatpush.xpose.msra.mxu0 %v777_v43 }
 0x1cf   : > { %2101 = vst [vmem:[#allocation2 + $0xa0] sm:$0xff] %v1941_v12  ;;  %v745_v12 = vld [vmem:[%s3404_s7 + $0x390] sm:$0xff] }
 0x1d0   : > { %v2021_v30 = vadd.f32 %v982_v40, %v507_v29  ;;  %1475 = vmatpush.xpose.msra.mxu2 %v745_v12  ;;  %v527_v29 = vld [vmem:[#allocation2 + $0xa8] sm:$0xff] }
 0x1d2   : > { %v823_v33 = vpop.f32.mrf.mxu0  ;;  %v936_v37 = vpop.f32.mrf.mxu1  ;;  %2181 = vst [vmem:[#allocation2 + $0x368] sm:$0xff] %v2021_v30  ;;  %1048 = vmatmul.f32.gmra.mxu2 %v3697_v27  ;;  %1161 = vmatmul.f32.gmra.mxu3 %v3700_v28 }
 0x1d3   : > { %v937_v38 = vadd.f32 %v936_v37, %v823_v33 }
 0x1d5   : > { %v1946_v20 = vadd.f32 %v937_v38, %v432_v34  ;;  %1274 = vmatmul.f32.gmra.mxu0 %v3697_v27  ;;  %1387 = vmatmul.f32.gmra.mxu1 %v3700_v28  ;;  %v871_v44 = vpop.f32.mrf.mxu2  ;;  %v984_v48 = vpop.f32.mrf.mxu3  ;;  %v748_v27 = vld [vmem:[%s3404_s7 + $0x3a8] sm:$0xff]  ;;  %v452_v34 = vld [vmem:[#allocation2 + $0x300] sm:$0xff] }
 0x1d6   : > { %v985_v53 = vadd.f32 %v984_v48, %v871_v44  ;;  %1587 = vmatpush.xpose.msra.mxu3 %v748_v27 }
 0x1d7   : > { %2106 = vst [vmem:[#allocation2 + $0x4a0] sm:$0xff] %v1946_v20  ;;  %v532_v20 = vld [vmem:[#allocation2 + $0x178] sm:$0xff] }
 0x1d8   : > { %v2026_v51 = vadd.f32 %v985_v53, %v512_v47 }
 0x1da   : > { %v826_v52 = vpop.f32.mrf.mxu0  ;;  %v939_v57 = vpop.f32.mrf.mxu1  ;;  %2186 = vst [vmem:[#allocation2 + $0x408] sm:$0xff] %v2026_v51  ;;  %1051 = vmatmul.f32.gmra.mxu2 %v3711_v35  ;;  %1164 = vmatmul.f32.gmra.mxu3 %v3714_v36  ;;  %v457_v51 = vld [vmem:[#allocation2 + $0x10] sm:$0xff] }
 0x1db   : > { %v940_v58 = vadd.f32 %v939_v57, %v826_v52  ;;  %v743_v57 = vld [vmem:[%s3404_s7 + $0x380] sm:$0xff] }
 0x1dc   : > { %1476 = vmatpush.xpose.msra.mxu2 %v743_v57  ;;  %v771_v57 = vld [vmem:[%s3404_s7 + $0x460] sm:$0xff] }
 0x1dd   : > { %v1951_v28 = vadd.f32 %v940_v58, %v437_v54  ;;  %1277 = vmatmul.f32.gmra.mxu0 %v3711_v35  ;;  %1390 = vmatmul.f32.gmra.mxu1 %v3714_v36  ;;  %v874_v62 = vpop.f32.mrf.mxu2  ;;  %v987_v4 = vpop.f32.mrf.mxu3  ;;  %v780_v35 = vld [vmem:[%s3404_s7 + $0x4a8] sm:$0xff] }
 0x1de   : > { %v988_v5 = vadd.f32 %v987_v4, %v874_v62  ;;  %1813 = vmatpush.xpose.msra.mxu1 %v780_v35  ;;  %v462_v4 = vld [vmem:[#allocation2 + $0x2c0] sm:$0xff] }
 0x1df   : > { %2111 = vst [vmem:[#allocation2 + $0x1a8] sm:$0xff] %v1951_v28 }
 0x1e0   : > { %v2031_v6 = vadd.f32 %v988_v5, %v517_v3 }
 0x1e2   : > { %v829_v7 = vpop.f32.mrf.mxu0  ;;  %v942_v0 = vpop.f32.mrf.mxu1  ;;  %2191 = vst [vmem:[#allocation2 + $0x420] sm:$0xff] %v2031_v6  ;;  %1054 = vmatmul.f32.gmra.mxu2 %v3725_v45  ;;  %1167 = vmatmul.f32.gmra.mxu3 %v3728_v46 }
 0x1e3   : > { %v943_v8 = vadd.f32 %v942_v0, %v829_v7  ;;  %v775_v7 = vld [vmem:[%s3404_s7 + $0x480] sm:$0xff]  ;;  %v542_v0 = vld [vmem:[#allocation2 + $0x4d0] sm:$0xff] }
 0x1e4   : > { %1702 = vmatpush.xpose.msra.mxu0 %v775_v7  ;;  %v738_v7 = vld [vmem:[%s3404_s7 + $0x358] sm:$0xff] }
 0x1e5   : > { %v1956_v36 = vadd.f32 %v943_v8, %v442_v63  ;;  %1280 = vmatmul.f32.gmra.mxu0 %v3725_v45  ;;  %1393 = vmatmul.f32.gmra.mxu1 %v3728_v46  ;;  %v877_v14 = vpop.f32.mrf.mxu2  ;;  %v990_v16 = vpop.f32.mrf.mxu3  ;;  %v746_v45 = vld [vmem:[%s3404_s7 + $0x398] sm:$0xff] }
 0x1e6   : > { %v991_v17 = vadd.f32 %v990_v16, %v877_v14  ;;  %1588 = vmatpush.xpose.msra.mxu3 %v746_v45  ;;  %v467_v14 = vld [vmem:[#allocation2 + $0x40] sm:$0xff] }
 0x1e7   : > { %2116 = vst [vmem:[#allocation2 + $0x320] sm:$0xff] %v1956_v36  ;;  %v472_v45 = vld [vmem:[#allocation2 + $0x3a0] sm:$0xff] }
 0x1e8   : > { %v2036_v18 = vadd.f32 %v991_v17, %v522_v15  ;;  %v741_v17 = vld [vmem:[%s3404_s7 + $0x370] sm:$0xff] }
 0x1e9   : > { %1477 = vmatpush.xpose.msra.mxu2 %v741_v17  ;;  %v769_v17 = vld [vmem:[%s3404_s7 + $0x450] sm:$0xff] }
 0x1ea   : > { %v832_v23 = vpop.f32.mrf.mxu0  ;;  %v945_v25 = vpop.f32.mrf.mxu1  ;;  %2196 = vst [vmem:[#allocation2 + $0x490] sm:$0xff] %v2036_v18  ;;  %1057 = vmatmul.f32.gmra.mxu2 %v3739_v55  ;;  %1170 = vmatmul.f32.gmra.mxu3 %v3742_v56 }
 0x1eb   : > { %v946_v11 = vadd.f32 %v945_v25, %v832_v23  ;;  %v547_v23 = vld [vmem:[#allocation2 + $0x4e0] sm:$0xff] }
 0x1ed   : > { %v1961_v46 = vadd.f32 %v946_v11, %v447_v24  ;;  %1283 = vmatmul.f32.gmra.mxu0 %v3739_v55  ;;  %1396 = vmatmul.f32.gmra.mxu1 %v3742_v56  ;;  %v880_v26 = vpop.f32.mrf.mxu2  ;;  %v993_v39 = vpop.f32.mrf.mxu3  ;;  %v778_v55 = vld [vmem:[%s3404_s7 + $0x498] sm:$0xff] }
 0x1ee   : > { %v994_v40 = vadd.f32 %v993_v39, %v880_v26  ;;  %1814 = vmatpush.xpose.msra.mxu1 %v778_v55 }
 0x1ef   : > { %2121 = vst [vmem:[#allocation2 + $0x3c8] sm:$0xff] %v1961_v46 }
 0x1f0   : > { %v2041_v30 = vadd.f32 %v994_v40, %v527_v29  ;;  %v773_v29 = vld [vmem:[%s3404_s7 + $0x470] sm:$0xff]  ;;  %v552_v40 = vld [vmem:[#allocation2 + $0xe0] sm:$0xff] }
 0x1f1   : > { %1703 = vmatpush.xpose.msra.mxu0 %v773_v29  ;;  %v2903_v29 = vld [vmem:[%s3397_s14 + $0x128] sm:$0xff] }
 0x1f2   : > { %v835_v33 = vpop.f32.mrf.mxu0  ;;  %v948_v37 = vpop.f32.mrf.mxu1  ;;  %2201 = vst [vmem:[#allocation2 + $0xa8] sm:$0xff] %v2041_v30  ;;  %1060 = vmatmul.f32.gmra.mxu2 %v3753_v1  ;;  %1173 = vmatmul.f32.gmra.mxu3 %v3756_v2 }
 0x1f3   : > { %v949_v38 = vadd.f32 %v948_v37, %v835_v33 }
 0x1f5   : > { %v1966_v56 = vadd.f32 %v949_v38, %v452_v34  ;;  %1286 = vmatmul.f32.gmra.mxu0 %v3753_v1  ;;  %1399 = vmatmul.f32.gmra.mxu1 %v3756_v2  ;;  %v883_v19 = vpop.f32.mrf.mxu2  ;;  %v996_v44 = vpop.f32.mrf.mxu3  ;;  %v744_v1 = vld [vmem:[%s3404_s7 + $0x388] sm:$0xff] }
 0x1f6   : > { %v997_v47 = vadd.f32 %v996_v44, %v883_v19  ;;  %1589 = vmatpush.xpose.msra.mxu3 %v744_v1  ;;  %v477_v38 = vld [vmem:[#allocation2 + $0x288] sm:$0xff]  ;;  %1704 = vmatpush.xpose.msra.mxu0 %v771_v57 }
 0x1f7   : > { %2126 = vst [vmem:[#allocation2 + $0x300] sm:$0xff] %v1966_v56  ;;  %v739_v56 = vld [vmem:[%s3404_s7 + $0x360] sm:$0xff] }
 0x1f8   : > { %v2046_v48 = vadd.f32 %v997_v47, %v532_v20  ;;  %1478 = vmatpush.xpose.msra.mxu2 %v739_v56  ;;  %v557_v20 = vld [vmem:[#allocation2 + $0x128] sm:$0xff] }
 0x1fa   : > { %v838_v53 = vpop.f32.mrf.mxu0  ;;  %v951_v52 = vpop.f32.mrf.mxu1  ;;  %2206 = vst [vmem:[#allocation2 + $0x178] sm:$0xff] %v2046_v48  ;;  %1063 = vmatmul.f32.gmra.mxu2 %v3767_v9  ;;  %1176 = vmatmul.f32.gmra.mxu3 %v3770_v10 }
 0x1fb   : > { %v952_v54 = vadd.f32 %v951_v52, %v838_v53  ;;  %1705 = vmatpush.xpose.msra.mxu0 %v769_v17 }
 0x1fd   : > { %v1971_v2 = vadd.f32 %v952_v54, %v457_v51  ;;  %1289 = vmatmul.f32.gmra.mxu0 %v3767_v9  ;;  %1402 = vmatmul.f32.gmra.mxu1 %v3770_v10  ;;  %v886_v58 = vpop.f32.mrf.mxu2  ;;  %v999_v27 = vpop.f32.mrf.mxu3  ;;  %v776_v9 = vld [vmem:[%s3404_s7 + $0x488] sm:$0xff]  ;;  %v482_v51 = vld [vmem:[#allocation2 + $0x50] sm:$0xff] }
 0x1fe   : > { %v1000_v28 = vadd.f32 %v999_v27, %v886_v58  ;;  %1815 = vmatpush.xpose.msra.mxu1 %v776_v9 }
 0x1ff   : > { %2131 = vst [vmem:[#allocation2 + $0x10] sm:$0xff] %v1971_v2  ;;  %v562_v2 = vld [vmem:[#allocation2 + $0x430] sm:$0xff] }
 0x200   : > { %v2051_v62 = vadd.f32 %v1000_v28, %v537_v61 }
 0x202   : > { %v841_v3 = vpop.f32.mrf.mxu0  ;;  %v954_v5 = vpop.f32.mrf.mxu1  ;;  %2211 = vst [vmem:[#allocation2 + $0x198] sm:$0xff] %v2051_v62  ;;  %1066 = vmatmul.f32.gmra.mxu2 %v3781_v21  ;;  %1179 = vmatmul.f32.gmra.mxu3 %v3784_v22  ;;  %v409_v62 = vld [vmem:[#allocation2 + $0x4d8] sm:$0xff] }
 0x203   : > { %v955_v6 = vadd.f32 %v954_v5, %v841_v3  ;;  %v2899_v5 = vld [vmem:[%s3397_s14 + $0x108] sm:$0xff] }
 0x205   : > { %v1976_v10 = vadd.f32 %v955_v6, %v462_v4  ;;  %1292 = vmatmul.f32.gmra.mxu0 %v3781_v21  ;;  %1405 = vmatmul.f32.gmra.mxu1 %v3784_v22  ;;  %v889_v63 = vpop.f32.mrf.mxu2  ;;  %v1002_v8 = vpop.f32.mrf.mxu3  ;;  %v742_v21 = vld [vmem:[%s3404_s7 + $0x378] sm:$0xff]  ;;  %v2898_v4 = vld [vmem:[%s3397_s14 + $0x100] sm:$0xff] }
 0x206   : > { %v1003_v13 = vadd.f32 %v1002_v8, %v889_v63  ;;  %1590 = vmatpush.xpose.msra.mxu3 %v742_v21  ;;  %v770_v21 = vld [vmem:[%s3404_s7 + $0x458] sm:$0xff] }
 0x207   : > { %2136 = vst [vmem:[#allocation2 + $0x2c0] sm:$0xff] %v1976_v10  ;;  %v408_v10 = vld [vmem:[#allocation2 + $0x3b0] sm:$0xff] }
 0x208   : > { %v2056_v35 = vadd.f32 %v1003_v13, %v542_v0 }
 0x20a   : > { %v844_v36 = vpop.f32.mrf.mxu0  ;;  %v957_v15 = vpop.f32.mrf.mxu1  ;;  %2216 = vst [vmem:[#allocation2 + $0x4d0] sm:$0xff] %v2056_v35  ;;  %1069 = vmatmul.f32.gmra.mxu2 %v3795_v31  ;;  %1182 = vmatmul.f32.gmra.mxu3 %v3798_v32  ;;  %v414_v35 = vld [vmem:[#allocation2 + $0x378] sm:$0xff] }
 0x20b   : > { %v958_v16 = vadd.f32 %v957_v15, %v844_v36  ;;  %v2901_v15 = vld [vmem:[%s3397_s14 + $0x118] sm:$0xff] }
 0x20d   : > { %v1981_v22 = vadd.f32 %v958_v16, %v467_v14  ;;  %1295 = vmatmul.f32.gmra.mxu0 %v3795_v31  ;;  %1408 = vmatmul.f32.gmra.mxu1 %v3798_v32  ;;  %v892_v18 = vpop.f32.mrf.mxu2  ;;  %v1005_v24 = vpop.f32.mrf.mxu3  ;;  %v774_v31 = vld [vmem:[%s3404_s7 + $0x478] sm:$0xff]  ;;  %v2900_v14 = vld [vmem:[%s3397_s14 + $0x110] sm:$0xff] }
 0x20e   : > { %v1006_v25 = vadd.f32 %v1005_v24, %v892_v18  ;;  %1816 = vmatpush.xpose.msra.mxu1 %v774_v31 }
 0x20f   : > { %2141 = vst [vmem:[#allocation2 + $0x40] sm:$0xff] %v1981_v22 }
 0x210   : > { %v2061_v11 = vadd.f32 %v1006_v25, %v547_v23  ;;  %v413_v23 = vld [vmem:[#allocation2 + $0x440] sm:$0xff] }
 0x212   : > { %v847_v12 = vpop.f32.mrf.mxu0  ;;  %v960_v46 = vpop.f32.mrf.mxu1  ;;  %2221 = vst [vmem:[#allocation2 + $0x4e0] sm:$0xff] %v2061_v11  ;;  %1072 = vmatmul.f32.gmra.mxu2 %v3807_v41  ;;  %1185 = vmatmul.f32.gmra.mxu3 %v3810_v42 }
 0x213   : > { %v961_v26 = vadd.f32 %v960_v46, %v847_v12 }
 0x215   : > { %v1986_v32 = vadd.f32 %v961_v26, %v472_v45  ;;  %1298 = vmatmul.f32.gmra.mxu0 %v3807_v41  ;;  %1411 = vmatmul.f32.gmra.mxu1 %v3810_v42  ;;  %v895_v39 = vpop.f32.mrf.mxu2  ;;  %v1008_v30 = vpop.f32.mrf.mxu3  ;;  %v740_v41 = vld [vmem:[%s3404_s7 + $0x368] sm:$0xff]  ;;  %v2902_v26 = vld [vmem:[%s3397_s14 + $0x120] sm:$0xff] }
 0x216   : > { %v1009_v33 = vadd.f32 %v1008_v30, %v895_v39  ;;  %1591 = vmatpush.xpose.msra.mxu3 %v740_v41  ;;  %v419_v45 = vld [vmem:[#allocation2 + $0x308] sm:$0xff]  ;;  %v2904_v41 = vld [vmem:[%s3397_s14 + $0x130] sm:$0xff] }
 0x217   : > { %2146 = vst [vmem:[#allocation2 + $0x3a0] sm:$0xff] %v1986_v32  ;;  %v735_v32 = vld [vmem:[%s3404_s7 + $0x340] sm:$0xff]  ;;  %v736_v39 = vld [vmem:[%s3404_s7 + $0x348] sm:$0xff] }
 0x218   : > { %v2066_v34 = vadd.f32 %v1009_v33, %v552_v40  ;;  %v418_v33 = vld [vmem:[#allocation2 + $0x4f0] sm:$0xff] }
 0x21a   : > { %v850_v37 = vpop.f32.mrf.mxu0  ;;  %v963_v43 = vpop.f32.mrf.mxu1  ;;  %2226 = vst [vmem:[#allocation2 + $0xe0] sm:$0xff] %v2066_v34  ;;  %1075 = vmatmul.f32.gmra.mxu2 %v3819_v49  ;;  %1188 = vmatmul.f32.gmra.mxu3 %v3822_v50 }
 0x21b   : > { %v964_v55 = vadd.f32 %v963_v43, %v850_v37  ;;  %1592 = vmatpush.xpose.msra.mxu3 %v738_v7  ;;  %v434_v7 = vld [vmem:[#allocation2 + $0xb8] sm:$0xff] }
 0x21d   : > { %v1991_v42 = vadd.f32 %v964_v55, %v477_v38  ;;  %1301 = vmatmul.f32.gmra.mxu0 %v3819_v49  ;;  %1414 = vmatmul.f32.gmra.mxu1 %v3822_v50  ;;  %v898_v19 = vpop.f32.mrf.mxu2  ;;  %v1011_v44 = vpop.f32.mrf.mxu3  ;;  %v772_v49 = vld [vmem:[%s3404_s7 + $0x468] sm:$0xff] }
 0x21e   : > { %v1012_v47 = vadd.f32 %v1011_v44, %v898_v19  ;;  %1817 = vmatpush.xpose.msra.mxu1 %v772_v49  ;;  %v424_v55 = vld [vmem:[#allocation2 + $0x388] sm:$0xff]  ;;  %v429_v49 = vld [vmem:[#allocation2 + $0x4f8] sm:$0xff] }
 0x21f   : > { %2151 = vst [vmem:[#allocation2 + $0x288] sm:$0xff] %v1991_v42  ;;  %1593 = vmatpush.xpose.msra.mxu3 %v736_v39  ;;  %v2905_v42 = vld [vmem:[%s3397_s14 + $0x138] sm:$0xff]  ;;  %v768_v44 = vld [vmem:[%s3404_s7 + $0x448] sm:$0xff]  ;;  %v444_v39 = vld [vmem:[#allocation2 + $0x210] sm:$0xff] }
 0x220   : > { %v2071_v48 = vadd.f32 %v1012_v47, %v557_v20  ;;  %v767_v20 = vld [vmem:[%s3404_s7 + $0x440] sm:$0xff] }
 0x221   : > { %1706 = vmatpush.xpose.msra.mxu0 %v767_v20 }
 0x222   : > { %v853_v53 = vpop.f32.mrf.mxu0  ;;  %v966_v52 = vpop.f32.mrf.mxu1  ;;  %2231 = vst [vmem:[#allocation2 + $0x128] sm:$0xff] %v2071_v48  ;;  %1078 = vmatmul.f32.gmra.mxu2 %v3831_v59  ;;  %1191 = vmatmul.f32.gmra.mxu3 %v3834_v60 }
 0x223   : > { %v967_v54 = vadd.f32 %v966_v52, %v853_v53  ;;  %1818 = vmatpush.xpose.msra.mxu1 %v770_v21  ;;  %v423_v53 = vld [vmem:[#allocation2 + $0xd8] sm:$0xff] }
 0x224   : > { %v439_v21 = vld [vmem:[#allocation2 + $0x38] sm:$0xff] }
 0x225   : > { %v1996_v50 = vadd.f32 %v967_v54, %v482_v51  ;;  %1304 = vmatmul.f32.gmra.mxu0 %v3831_v59  ;;  %1417 = vmatmul.f32.gmra.mxu1 %v3834_v60  ;;  %v901_v1 = vpop.f32.mrf.mxu2  ;;  %v1014_v58 = vpop.f32.mrf.mxu3  ;;  %v737_v59 = vld [vmem:[%s3404_s7 + $0x350] sm:$0xff] }
 0x226   : > { %v1015_v61 = vadd.f32 %v1014_v58, %v901_v1  ;;  %1479 = vmatpush.xpose.msra.mxu2 %v737_v59  ;;  %v2906_v1 = vld [vmem:[%s3397_s14 + $0x140] sm:$0xff] }
 0x227   : > { %2156 = vst [vmem:[#allocation2 + $0x50] sm:$0xff] %v1996_v50  ;;  %1819 = vmatpush.xpose.msra.mxu1 %v768_v44  ;;  %v449_v44 = vld [vmem:[#allocation2 + $0x3b8] sm:$0xff] }
 0x228   : > { %v2076_v27 = vadd.f32 %v1015_v61, %v562_v2  ;;  %v2907_v2 = vld [vmem:[%s3397_s14 + $0x148] sm:$0xff]  ;;  %v733_v61 = vld [vmem:[%s3404_s7 + $0x330] sm:$0xff] }
 0x22a   : > { %v1260_v28 = vpop.f32.mrf.mxu0  ;;  %v1373_v3 = vpop.f32.mrf.mxu1  ;;  %2236 = vst [vmem:[#allocation2 + $0x430] sm:$0xff] %v2076_v27  ;;  %1081 = vmatmul.f32.gmra.mxu2 %v2898_v4  ;;  %1194 = vmatmul.f32.gmra.mxu3 %v2899_v5  ;;  %v734_v27 = vld [vmem:[%s3404_s7 + $0x338] sm:$0xff] }
 0x22b   : > { %v1374_v6 = vadd.f32 %v1373_v3, %v1260_v28  ;;  %1480 = vmatpush.xpose.msra.mxu2 %v735_v32  ;;  %1594 = vmatpush.xpose.msra.mxu3 %v734_v27  ;;  %v428_v3 = vld [vmem:[#allocation2 + $0x360] sm:$0xff]  ;;  %v454_v27 = vld [vmem:[#allocation2 + $0x218] sm:$0xff] }
 0x22d   : > { %v1923_v60 = vadd.f32 %v1374_v6, %v409_v62  ;;  %1307 = vmatmul.f32.gmra.mxu0 %v2898_v4  ;;  %1420 = vmatmul.f32.gmra.mxu1 %v2899_v5  ;;  %v1034_v9 = vpop.f32.mrf.mxu2  ;;  %v1147_v63 = vpop.f32.mrf.mxu3 }
 0x22e   : > { %v1148_v0 = vadd.f32 %v1147_v63, %v1034_v9  ;;  %v2908_v9 = vld [vmem:[%s3397_s14 + $0x150] sm:$0xff] }
 0x22f   : > { %2083 = vst [vmem:[#allocation2 + $0x4d8] sm:$0xff] %v1923_v60  ;;  %1481 = vmatpush.xpose.msra.mxu2 %v733_v61 }
 0x230   : > { %v1922_v8 = vadd.f32 %v1148_v0, %v408_v10  ;;  %v2909_v10 = vld [vmem:[%s3397_s14 + $0x158] sm:$0xff]  ;;  %v765_v0 = vld [vmem:[%s3404_s7 + $0x430] sm:$0xff] }
 0x231   : > { %1707 = vmatpush.xpose.msra.mxu0 %v765_v0 }
 0x232   : > { %v1263_v13 = vpop.f32.mrf.mxu0  ;;  %v1376_v36 = vpop.f32.mrf.mxu1  ;;  %2082 = vst [vmem:[#allocation2 + $0x3b0] sm:$0xff] %v1922_v8  ;;  %1084 = vmatmul.f32.gmra.mxu2 %v2900_v14  ;;  %1197 = vmatmul.f32.gmra.mxu3 %v2901_v15  ;;  %v766_v8 = vld [vmem:[%s3404_s7 + $0x438] sm:$0xff] }
 0x233   : > { %v1377_v16 = vadd.f32 %v1376_v36, %v1263_v13  ;;  %1820 = vmatpush.xpose.msra.mxu1 %v766_v8  ;;  %v433_v36 = vld [vmem:[#allocation2 + $0x390] sm:$0xff]  ;;  %v459_v8 = vld [vmem:[#allocation2 + $0x2e8] sm:$0xff] }
 0x235   : > { %v1928_v22 = vadd.f32 %v1377_v16, %v414_v35  ;;  %1310 = vmatmul.f32.gmra.mxu0 %v2900_v14  ;;  %1423 = vmatmul.f32.gmra.mxu1 %v2901_v15  ;;  %v1037_v18 = vpop.f32.mrf.mxu2  ;;  %v1150_v24 = vpop.f32.mrf.mxu3 }
 0x236   : > { %v1151_v25 = vadd.f32 %v1150_v24, %v1037_v18  ;;  %v2910_v18 = vld [vmem:[%s3397_s14 + $0x160] sm:$0xff] }
 0x237   : > { %2088 = vst [vmem:[#allocation2 + $0x378] sm:$0xff] %v1928_v22 }
 0x238   : > { %v1927_v11 = vadd.f32 %v1151_v25, %v413_v23  ;;  %v2911_v23 = vld [vmem:[%s3397_s14 + $0x168] sm:$0xff]  ;;  %v731_v25 = vld [vmem:[%s3404_s7 + $0x320] sm:$0xff] }
 0x239   : > { %1482 = vmatpush.xpose.msra.mxu2 %v731_v25 }
 0x23a   : > { %v1266_v12 = vpop.f32.mrf.mxu0  ;;  %v1379_v46 = vpop.f32.mrf.mxu1  ;;  %2087 = vst [vmem:[#allocation2 + $0x440] sm:$0xff] %v1927_v11  ;;  %1087 = vmatmul.f32.gmra.mxu2 %v2902_v26  ;;  %1200 = vmatmul.f32.gmra.mxu3 %v2903_v29  ;;  %v732_v11 = vld [vmem:[%s3404_s7 + $0x328] sm:$0xff] }
 0x23b   : > { %v1380_v31 = vadd.f32 %v1379_v46, %v1266_v12  ;;  %1595 = vmatpush.xpose.msra.mxu3 %v732_v11  ;;  %v438_v46 = vld [vmem:[#allocation2 + $0x2a0] sm:$0xff]  ;;  %v464_v11 = vld [vmem:[#allocation2 + $0xf8] sm:$0xff] }
 0x23d   : > { %v1933_v40 = vadd.f32 %v1380_v31, %v419_v45  ;;  %1313 = vmatmul.f32.gmra.mxu0 %v2902_v26  ;;  %1426 = vmatmul.f32.gmra.mxu1 %v2903_v29  ;;  %v1040_v30 = vpop.f32.mrf.mxu2  ;;  %v1153_v34 = vpop.f32.mrf.mxu3 }
 0x23e   : > { %v1154_v37 = vadd.f32 %v1153_v34, %v1040_v30  ;;  %v2912_v30 = vld [vmem:[%s3397_s14 + $0x170] sm:$0xff] }
 0x23f   : > { %2093 = vst [vmem:[#allocation2 + $0x308] sm:$0xff] %v1933_v40 }
 0x240   : > { %v1932_v38 = vadd.f32 %v1154_v37, %v418_v33  ;;  %v2913_v33 = vld [vmem:[%s3397_s14 + $0x178] sm:$0xff]  ;;  %v763_v37 = vld [vmem:[%s3404_s7 + $0x420] sm:$0xff] }
 0x241   : > { %1708 = vmatpush.xpose.msra.mxu0 %v763_v37 }
 0x242   : > { %v1269_v43 = vpop.f32.mrf.mxu0  ;;  %v1382_v56 = vpop.f32.mrf.mxu1  ;;  %2092 = vst [vmem:[#allocation2 + $0x4f0] sm:$0xff] %v1932_v38  ;;  %1090 = vmatmul.f32.gmra.mxu2 %v2904_v41  ;;  %1203 = vmatmul.f32.gmra.mxu3 %v2905_v42  ;;  %v764_v38 = vld [vmem:[%s3404_s7 + $0x428] sm:$0xff] }
 0x243   : > { %v1383_v19 = vadd.f32 %v1382_v56, %v1269_v43  ;;  %1821 = vmatpush.xpose.msra.mxu1 %v764_v38  ;;  %v443_v56 = vld [vmem:[#allocation2 + $0x188] sm:$0xff]  ;;  %v469_v38 = vld [vmem:[#allocation2 + $0x250] sm:$0xff] }
 0x245   : > { %v1938_v47 = vadd.f32 %v1383_v19, %v424_v55  ;;  %1316 = vmatmul.f32.gmra.mxu0 %v2904_v41  ;;  %1429 = vmatmul.f32.gmra.mxu1 %v2905_v42  ;;  %v1043_v48 = vpop.f32.mrf.mxu2  ;;  %v1156_v51 = vpop.f32.mrf.mxu3 }
 0x246   : > { %v1157_v52 = vadd.f32 %v1156_v51, %v1043_v48  ;;  %v2914_v48 = vld [vmem:[%s3397_s14 + $0x180] sm:$0xff] }
 0x247   : > { %2098 = vst [vmem:[#allocation2 + $0x388] sm:$0xff] %v1938_v47 }
 0x248   : > { %v1937_v54 = vadd.f32 %v1157_v52, %v423_v53  ;;  %v2915_v53 = vld [vmem:[%s3397_s14 + $0x188] sm:$0xff]  ;;  %v729_v52 = vld [vmem:[%s3404_s7 + $0x310] sm:$0xff] }
 0x249   : > { %1483 = vmatpush.xpose.msra.mxu2 %v729_v52 }
 0x24a   : > { %v1272_v57 = vpop.f32.mrf.mxu0  ;;  %v1385_v50 = vpop.f32.mrf.mxu1  ;;  %2097 = vst [vmem:[#allocation2 + $0xd8] sm:$0xff] %v1937_v54  ;;  %1093 = vmatmul.f32.gmra.mxu2 %v2906_v1  ;;  %1206 = vmatmul.f32.gmra.mxu3 %v2907_v2  ;;  %v730_v54 = vld [vmem:[%s3404_s7 + $0x318] sm:$0xff] }
 0x24b   : > { %v1386_v58 = vadd.f32 %v1385_v50, %v1272_v57  ;;  %1596 = vmatpush.xpose.msra.mxu3 %v730_v54  ;;  %v448_v50 = vld [vmem:[#allocation2 + $0x280] sm:$0xff]  ;;  %v2924_v54 = vld [vmem:[%s3397_s14 + $0x1d0] sm:$0xff] }
 0x24d   : > { %v1943_v28 = vadd.f32 %v1386_v58, %v429_v49  ;;  %1319 = vmatmul.f32.gmra.mxu0 %v2906_v1  ;;  %1432 = vmatmul.f32.gmra.mxu1 %v2907_v2  ;;  %v1046_v62 = vpop.f32.mrf.mxu2  ;;  %v1159_v4 = vpop.f32.mrf.mxu3 }
 0x24e   : > { %v1160_v5 = vadd.f32 %v1159_v4, %v1046_v62  ;;  %v2916_v62 = vld [vmem:[%s3397_s14 + $0x190] sm:$0xff] }
 0x24f   : > { %2103 = vst [vmem:[#allocation2 + $0x4f8] sm:$0xff] %v1943_v28 }
 0x250   : > { %v1942_v6 = vadd.f32 %v1160_v5, %v428_v3  ;;  %v2917_v3 = vld [vmem:[%s3397_s14 + $0x198] sm:$0xff]  ;;  %v761_v5 = vld [vmem:[%s3404_s7 + $0x410] sm:$0xff] }
 0x251   : > { %1709 = vmatpush.xpose.msra.mxu0 %v761_v5  ;;  %v2927_v5 = vld [vmem:[%s3397_s14 + $0x1e8] sm:$0xff] }
 0x252   : > { %v1275_v59 = vpop.f32.mrf.mxu0  ;;  %v1388_v60 = vpop.f32.mrf.mxu1  ;;  %2102 = vst [vmem:[#allocation2 + $0x360] sm:$0xff] %v1942_v6  ;;  %1096 = vmatmul.f32.gmra.mxu2 %v2908_v9  ;;  %1209 = vmatmul.f32.gmra.mxu3 %v2909_v10  ;;  %v762_v6 = vld [vmem:[%s3404_s7 + $0x418] sm:$0xff] }
 0x253   : > { %v1389_v63 = vadd.f32 %v1388_v60, %v1275_v59  ;;  %1822 = vmatpush.xpose.msra.mxu1 %v762_v6  ;;  %v453_v60 = vld [vmem:[#allocation2 + $0x4a8] sm:$0xff] }
 0x255   : > { %v1948_v13 = vadd.f32 %v1389_v63, %v434_v7  ;;  %1322 = vmatmul.f32.gmra.mxu0 %v2908_v9  ;;  %1435 = vmatmul.f32.gmra.mxu1 %v2909_v10  ;;  %v1049_v35 = vpop.f32.mrf.mxu2  ;;  %v1162_v14 = vpop.f32.mrf.mxu3 }
 0x256   : > { %v1163_v15 = vadd.f32 %v1162_v14, %v1049_v35  ;;  %v2918_v35 = vld [vmem:[%s3397_s14 + $0x1a0] sm:$0xff] }
 0x257   : > { %2108 = vst [vmem:[#allocation2 + $0xb8] sm:$0xff] %v1948_v13 }
 0x258   : > { %v1947_v16 = vadd.f32 %v1163_v15, %v433_v36  ;;  %v2919_v36 = vld [vmem:[%s3397_s14 + $0x1a8] sm:$0xff]  ;;  %v727_v15 = vld [vmem:[%s3404_s7 + $0x300] sm:$0xff] }
 0x259   : > { %1484 = vmatpush.xpose.msra.mxu2 %v727_v15 }
 0x25a   : > { %v1278_v17 = vpop.f32.mrf.mxu0  ;;  %v1391_v22 = vpop.f32.mrf.mxu1  ;;  %2107 = vst [vmem:[#allocation2 + $0x390] sm:$0xff] %v1947_v16  ;;  %1099 = vmatmul.f32.gmra.mxu2 %v2910_v18  ;;  %1212 = vmatmul.f32.gmra.mxu3 %v2911_v23  ;;  %v728_v16 = vld [vmem:[%s3404_s7 + $0x308] sm:$0xff] }
 0x25b   : > { %v1392_v24 = vadd.f32 %v1391_v22, %v1278_v17  ;;  %1597 = vmatpush.xpose.msra.mxu3 %v728_v16  ;;  %v458_v22 = vld [vmem:[#allocation2 + $0x1f8] sm:$0xff] }
 0x25d   : > { %v1953_v12 = vadd.f32 %v1392_v24, %v439_v21  ;;  %1325 = vmatmul.f32.gmra.mxu0 %v2910_v18  ;;  %1438 = vmatmul.f32.gmra.mxu1 %v2911_v23  ;;  %v1052_v45 = vpop.f32.mrf.mxu2  ;;  %v1165_v26 = vpop.f32.mrf.mxu3 }
 0x25e   : > { %v1166_v29 = vadd.f32 %v1165_v26, %v1052_v45  ;;  %v2920_v45 = vld [vmem:[%s3397_s14 + $0x1b0] sm:$0xff] }
 0x25f   : > { %2113 = vst [vmem:[#allocation2 + $0x38] sm:$0xff] %v1953_v12 }
 0x260   : > { %v1952_v31 = vadd.f32 %v1166_v29, %v438_v46  ;;  %v2921_v46 = vld [vmem:[%s3397_s14 + $0x1b8] sm:$0xff]  ;;  %v759_v29 = vld [vmem:[%s3404_s7 + $0x400] sm:$0xff] }
 0x261   : > { %1710 = vmatpush.xpose.msra.mxu0 %v759_v29  ;;  %v488_v29 = vld [vmem:[#allocation2 + $0x338] sm:$0xff] }
 0x262   : > { %v1281_v32 = vpop.f32.mrf.mxu0  ;;  %v1394_v40 = vpop.f32.mrf.mxu1  ;;  %2112 = vst [vmem:[#allocation2 + $0x2a0] sm:$0xff] %v1952_v31  ;;  %1102 = vmatmul.f32.gmra.mxu2 %v2912_v30  ;;  %1215 = vmatmul.f32.gmra.mxu3 %v2913_v33  ;;  %v760_v31 = vld [vmem:[%s3404_s7 + $0x408] sm:$0xff] }
 0x263   : > { %v1395_v34 = vadd.f32 %v1394_v40, %v1281_v32  ;;  %1823 = vmatpush.xpose.msra.mxu1 %v760_v31  ;;  %v463_v40 = vld [vmem:[#allocation2 + $0x140] sm:$0xff] }
 0x265   : > { %v1958_v43 = vadd.f32 %v1395_v34, %v444_v39  ;;  %1328 = vmatmul.f32.gmra.mxu0 %v2912_v30  ;;  %1441 = vmatmul.f32.gmra.mxu1 %v2913_v33  ;;  %v1055_v55 = vpop.f32.mrf.mxu2  ;;  %v1168_v41 = vpop.f32.mrf.mxu3 }
 0x266   : > { %v1169_v42 = vadd.f32 %v1168_v41, %v1055_v55  ;;  %v2922_v55 = vld [vmem:[%s3397_s14 + $0x1c0] sm:$0xff] }
 0x267   : > { %2118 = vst [vmem:[#allocation2 + $0x210] sm:$0xff] %v1958_v43 }
 0x268   : > { %v1957_v19 = vadd.f32 %v1169_v42, %v443_v56  ;;  %v2923_v56 = vld [vmem:[%s3397_s14 + $0x1c8] sm:$0xff] }
 0x26a   : > { %v1284_v20 = vpop.f32.mrf.mxu0  ;;  %v1397_v47 = vpop.f32.mrf.mxu1  ;;  %2117 = vst [vmem:[#allocation2 + $0x188] sm:$0xff] %v1957_v19  ;;  %1105 = vmatmul.f32.gmra.mxu2 %v2914_v48  ;;  %1218 = vmatmul.f32.gmra.mxu3 %v2915_v53 }
 0x26b   : > { %v1398_v51 = vadd.f32 %v1397_v47, %v1284_v20  ;;  %v468_v20 = vld [vmem:[#allocation2 + $0x350] sm:$0xff] }
 0x26d   : > { %v1963_v57 = vadd.f32 %v1398_v51, %v449_v44  ;;  %1331 = vmatmul.f32.gmra.mxu0 %v2914_v48  ;;  %1444 = vmatmul.f32.gmra.mxu1 %v2915_v53  ;;  %v1058_v49 = vpop.f32.mrf.mxu2  ;;  %v1171_v1 = vpop.f32.mrf.mxu3  ;;  %v474_v51 = vld [vmem:[#allocation2 + $0x400] sm:$0xff] }
 0x26e   : > { %v1172_v2 = vadd.f32 %v1171_v1, %v1058_v49 }
 0x26f   : > { %2123 = vst [vmem:[#allocation2 + $0x3b8] sm:$0xff] %v1963_v57  ;;  %v2925_v57 = vld [vmem:[%s3397_s14 + $0x1d8] sm:$0xff] }
 0x270   : > { %v1962_v58 = vadd.f32 %v1172_v2, %v448_v50  ;;  %v473_v2 = vld [vmem:[#allocation2 + $0x80] sm:$0xff] }
 0x272   : > { %v1287_v61 = vpop.f32.mrf.mxu0  ;;  %v1400_v28 = vpop.f32.mrf.mxu1  ;;  %2122 = vst [vmem:[#allocation2 + $0x280] sm:$0xff] %v1962_v58  ;;  %1108 = vmatmul.f32.gmra.mxu2 %v2916_v62  ;;  %1221 = vmatmul.f32.gmra.mxu3 %v2917_v3 }
 0x273   : > { %v1401_v4 = vadd.f32 %v1400_v28, %v1287_v61 }
 0x275   : > { %v1968_v59 = vadd.f32 %v1401_v4, %v454_v27  ;;  %1334 = vmatmul.f32.gmra.mxu0 %v2916_v62  ;;  %1447 = vmatmul.f32.gmra.mxu1 %v2917_v3  ;;  %v1061_v7 = vpop.f32.mrf.mxu2  ;;  %v1174_v9 = vpop.f32.mrf.mxu3  ;;  %v479_v62 = vld [vmem:[#allocation2 + $0x4b0] sm:$0xff]  ;;  %v2926_v4 = vld [vmem:[%s3397_s14 + $0x1e0] sm:$0xff] }
 0x276   : > { %v1175_v10 = vadd.f32 %v1174_v9, %v1061_v7 }
 0x277   : > { %2128 = vst [vmem:[#allocation2 + $0x218] sm:$0xff] %v1968_v59 }
 0x278   : > { %v1967_v63 = vadd.f32 %v1175_v10, %v453_v60  ;;  %v478_v60 = vld [vmem:[#allocation2 + $0x460] sm:$0xff] }
 0x27a   : > { %v1290_v0 = vpop.f32.mrf.mxu0  ;;  %v1403_v13 = vpop.f32.mrf.mxu1  ;;  %2127 = vst [vmem:[#allocation2 + $0x4a8] sm:$0xff] %v1967_v63  ;;  %1111 = vmatmul.f32.gmra.mxu2 %v2918_v35  ;;  %1224 = vmatmul.f32.gmra.mxu3 %v2919_v36 }
 0x27b   : > { %v1404_v14 = vadd.f32 %v1403_v13, %v1290_v0 }
 0x27d   : > { %v1973_v17 = vadd.f32 %v1404_v14, %v459_v8  ;;  %1337 = vmatmul.f32.gmra.mxu0 %v2918_v35  ;;  %1450 = vmatmul.f32.gmra.mxu1 %v2919_v36  ;;  %v1064_v21 = vpop.f32.mrf.mxu2  ;;  %v1177_v18 = vpop.f32.mrf.mxu3  ;;  %v484_v8 = vld [vmem:[#allocation2 + $0x150] sm:$0xff]  ;;  %v2929_v36 = vld [vmem:[%s3397_s14 + $0x1f8] sm:$0xff] }
 0x27e   : > { %v1178_v23 = vadd.f32 %v1177_v18, %v1064_v21  ;;  %v2928_v35 = vld [vmem:[%s3397_s14 + $0x1f0] sm:$0xff] }
 0x27f   : > { %2133 = vst [vmem:[#allocation2 + $0x2e8] sm:$0xff] %v1973_v17  ;;  %v483_v17 = vld [vmem:[#allocation2 + $0x1b0] sm:$0xff] }
 0x280   : > { %v1972_v24 = vadd.f32 %v1178_v23, %v458_v22 }
 0x282   : > { %v1293_v25 = vpop.f32.mrf.mxu0  ;;  %v1406_v12 = vpop.f32.mrf.mxu1  ;;  %2132 = vst [vmem:[#allocation2 + $0x1f8] sm:$0xff] %v1972_v24  ;;  %1114 = vmatmul.f32.gmra.mxu2 %v2920_v45  ;;  %1227 = vmatmul.f32.gmra.mxu3 %v2921_v46  ;;  %v489_v24 = vld [vmem:[#allocation2 + $0x358] sm:$0xff] }
 0x283   : > { %v1407_v26 = vadd.f32 %v1406_v12, %v1293_v25  ;;  %v2931_v12 = vld [vmem:[%s3397_s14 + $0x8] sm:$0xff] }
 0x285   : > { %v1978_v32 = vadd.f32 %v1407_v26, %v464_v11  ;;  %1340 = vmatmul.f32.gmra.mxu0 %v2920_v45  ;;  %1453 = vmatmul.f32.gmra.mxu1 %v2921_v46  ;;  %v1067_v39 = vpop.f32.mrf.mxu2  ;;  %v1180_v30 = vpop.f32.mrf.mxu3  ;;  %v2930_v11 = vld [vmem:[%s3397_s14] sm:$0xff] }
 0x286   : > { %v1181_v33 = vadd.f32 %v1180_v30, %v1067_v39  ;;  %v494_v30 = vld [vmem:[#allocation2 + $0x2d0] sm:$0xff] }
 0x287   : > { %2138 = vst [vmem:[#allocation2 + $0xf8] sm:$0xff] %v1978_v32 }
 0x288   : > { %v1977_v34 = vadd.f32 %v1181_v33, %v463_v40 }
 0x28a   : > { %v1296_v37 = vpop.f32.mrf.mxu0  ;;  %v1409_v43 = vpop.f32.mrf.mxu1  ;;  %2137 = vst [vmem:[#allocation2 + $0x140] sm:$0xff] %v1977_v34  ;;  %1117 = vmatmul.f32.gmra.mxu2 %v2922_v55  ;;  %1230 = vmatmul.f32.gmra.mxu3 %v2923_v56  ;;  %v2932_v34 = vld [vmem:[%s3397_s14 + $0x10] sm:$0xff] }
 0x28b   : > { %v1410_v41 = vadd.f32 %v1409_v43, %v1296_v37  ;;  %v2933_v37 = vld [vmem:[%s3397_s14 + $0x18] sm:$0xff] }
 0x28d   : > { %v1983_v42 = vadd.f32 %v1410_v41, %v469_v38  ;;  %1343 = vmatmul.f32.gmra.mxu0 %v2922_v55  ;;  %1456 = vmatmul.f32.gmra.mxu1 %v2923_v56  ;;  %v1070_v19 = vpop.f32.mrf.mxu2  ;;  %v1183_v44 = vpop.f32.mrf.mxu3  ;;  %v493_v56 = vld [vmem:[#allocation2] sm:$0xff] }
 0x28e   : > { %v1184_v47 = vadd.f32 %v1183_v44, %v1070_v19  ;;  %v499_v44 = vld [vmem:[#allocation2 + $0x438] sm:$0xff] }
 0x28f   : > { %2143 = vst [vmem:[#allocation2 + $0x250] sm:$0xff] %v1983_v42 }
 0x290   : > { %v1982_v48 = vadd.f32 %v1184_v47, %v468_v20 }
 0x292   : > { %v1299_v53 = vpop.f32.mrf.mxu0  ;;  %v1412_v52 = vpop.f32.mrf.mxu1  ;;  %2142 = vst [vmem:[#allocation2 + $0x350] sm:$0xff] %v1982_v48  ;;  %1120 = vmatmul.f32.gmra.mxu2 %v2924_v54  ;;  %1233 = vmatmul.f32.gmra.mxu3 %v2925_v57  ;;  %v2934_v48 = vld [vmem:[%s3397_s14 + $0x20] sm:$0xff] }
 0x293   : > { %v1413_v49 = vadd.f32 %v1412_v52, %v1299_v53  ;;  %v2935_v53 = vld [vmem:[%s3397_s14 + $0x28] sm:$0xff] }
 0x295   : > { %v1988_v50 = vadd.f32 %v1413_v49, %v474_v51  ;;  %1346 = vmatmul.f32.gmra.mxu0 %v2924_v54  ;;  %1459 = vmatmul.f32.gmra.mxu1 %v2925_v57  ;;  %v1073_v1 = vpop.f32.mrf.mxu2  ;;  %v1186_v58 = vpop.f32.mrf.mxu3  ;;  %v498_v57 = vld [vmem:[#allocation2 + $0x138] sm:$0xff] }
 0x296   : > { %v1187_v61 = vadd.f32 %v1186_v58, %v1073_v1  ;;  %v504_v58 = vld [vmem:[#allocation2 + $0x2f8] sm:$0xff] }
 0x297   : > { %2148 = vst [vmem:[#allocation2 + $0x400] sm:$0xff] %v1988_v50 }
 0x298   : > { %v1987_v27 = vadd.f32 %v1187_v61, %v473_v2 }
 0x29a   : > { %v1302_v28 = vpop.f32.mrf.mxu0  ;;  %v1415_v3 = vpop.f32.mrf.mxu1  ;;  %2147 = vst [vmem:[#allocation2 + $0x80] sm:$0xff] %v1987_v27  ;;  %1123 = vmatmul.f32.gmra.mxu2 %v2926_v4  ;;  %1236 = vmatmul.f32.gmra.mxu3 %v2927_v5  ;;  %v2936_v27 = vld [vmem:[%s3397_s14 + $0x30] sm:$0xff] }
 0x29b   : > { %v1416_v6 = vadd.f32 %v1415_v3, %v1302_v28  ;;  %v2937_v28 = vld [vmem:[%s3397_s14 + $0x38] sm:$0xff] }
 0x29d   : > { %v1993_v59 = vadd.f32 %v1416_v6, %v479_v62  ;;  %1349 = vmatmul.f32.gmra.mxu0 %v2926_v4  ;;  %1462 = vmatmul.f32.gmra.mxu1 %v2927_v5  ;;  %v1076_v7 = vpop.f32.mrf.mxu2  ;;  %v1189_v9 = vpop.f32.mrf.mxu3  ;;  %v503_v5 = vld [vmem:[#allocation2 + $0x298] sm:$0xff] }
 0x29e   : > { %v1190_v10 = vadd.f32 %v1189_v9, %v1076_v7  ;;  %v509_v9 = vld [vmem:[#allocation2 + $0x3a8] sm:$0xff] }
 0x29f   : > { %2153 = vst [vmem:[#allocation2 + $0x4b0] sm:$0xff] %v1993_v59 }
 0x2a0   : > { %v1992_v63 = vadd.f32 %v1190_v10, %v478_v60 }
 0x2a2   : > { %v1305_v0 = vpop.f32.mrf.mxu0  ;;  %v1418_v13 = vpop.f32.mrf.mxu1  ;;  %2152 = vst [vmem:[#allocation2 + $0x460] sm:$0xff] %v1992_v63  ;;  %1126 = vmatmul.f32.gmra.mxu2 %v2928_v35  ;;  %1239 = vmatmul.f32.gmra.mxu3 %v2929_v36  ;;  %v2938_v63 = vld [vmem:[%s3397_s14 + $0x40] sm:$0xff] }
 0x2a3   : > { %v1419_v14 = vadd.f32 %v1418_v13, %v1305_v0  ;;  %v2939_v0 = vld [vmem:[%s3397_s14 + $0x48] sm:$0xff] }
 0x2a5   : > { %v1998_v15 = vadd.f32 %v1419_v14, %v484_v8  ;;  %1352 = vmatmul.f32.gmra.mxu0 %v2928_v35  ;;  %1465 = vmatmul.f32.gmra.mxu1 %v2929_v36  ;;  %v1079_v16 = vpop.f32.mrf.mxu2  ;;  %v1192_v21 = vpop.f32.mrf.mxu3  ;;  %v508_v36 = vld [vmem:[#allocation2 + $0x2e0] sm:$0xff] }
 0x2a6   : > { %v1193_v22 = vadd.f32 %v1192_v21, %v1079_v16  ;;  %v514_v21 = vld [vmem:[#allocation2 + $0x98] sm:$0xff] }
 0x2a7   : > { %2158 = vst [vmem:[#allocation2 + $0x150] sm:$0xff] %v1998_v15 }
 0x2a8   : > { %v1997_v18 = vadd.f32 %v1193_v22, %v483_v17 }
 0x2aa   : > { %v1308_v23 = vpop.f32.mrf.mxu0  ;;  %v1421_v25 = vpop.f32.mrf.mxu1  ;;  %2157 = vst [vmem:[#allocation2 + $0x1b0] sm:$0xff] %v1997_v18  ;;  %1485 = vmatmul.f32.vlgmr.msra.gmra.mxu2 %v2930_v11  ;;  %1598 = vmatmul.f32.vlgmr.msra.gmra.mxu3 %v2931_v12  ;;  %v2940_v18 = vld [vmem:[%s3397_s14 + $0x50] sm:$0xff] }
 0x2ab   : > { %v1422_v45 = vadd.f32 %v1421_v25, %v1308_v23  ;;  %v2941_v23 = vld [vmem:[%s3397_s14 + $0x58] sm:$0xff] }
 0x2ad   : > { %v2003_v46 = vadd.f32 %v1422_v45, %v489_v24  ;;  %1711 = vmatmul.f32.vlgmr.msra.gmra.mxu0 %v2930_v11  ;;  %1824 = vmatmul.f32.vlgmr.msra.gmra.mxu1 %v2931_v12  ;;  %v1082_v26 = vpop.f32.mrf.mxu2  ;;  %v1195_v31 = vpop.f32.mrf.mxu3  ;;  %v513_v12 = vld [vmem:[#allocation2 + $0xe8] sm:$0xff] }
 0x2ae   : > { %v1196_v32 = vadd.f32 %v1195_v31, %v1082_v26  ;;  %v519_v31 = vld [vmem:[#allocation2 + $0x290] sm:$0xff] }
 0x2af   : > { %2163 = vst [vmem:[#allocation2 + $0x358] sm:$0xff] %v2003_v46 }
 0x2b0   : > { %v2002_v39 = vadd.f32 %v1196_v32, %v488_v29 }
 0x2b2   : > { %v1311_v40 = vpop.f32.mrf.mxu0  ;;  %v1424_v33 = vpop.f32.mrf.mxu1  ;;  %2162 = vst [vmem:[#allocation2 + $0x338] sm:$0xff] %v2002_v39  ;;  %1488 = vmatmul.f32.gmra.mxu2 %v2932_v34  ;;  %1601 = vmatmul.f32.gmra.mxu3 %v2933_v37  ;;  %v2942_v39 = vld [vmem:[%s3397_s14 + $0x60] sm:$0xff] }
 0x2b3   : > { %v1425_v38 = vadd.f32 %v1424_v33, %v1311_v40  ;;  %v2943_v40 = vld [vmem:[%s3397_s14 + $0x68] sm:$0xff] }
 0x2b5   : > { %v2008_v43 = vadd.f32 %v1425_v38, %v494_v30  ;;  %1714 = vmatmul.f32.gmra.mxu0 %v2932_v34  ;;  %1827 = vmatmul.f32.gmra.mxu1 %v2933_v37  ;;  %v1085_v55 = vpop.f32.mrf.mxu2  ;;  %v1198_v41 = vpop.f32.mrf.mxu3  ;;  %v518_v37 = vld [vmem:[#allocation2 + $0x28] sm:$0xff] }
 0x2b6   : > { %v1199_v42 = vadd.f32 %v1198_v41, %v1085_v55  ;;  %v524_v41 = vld [vmem:[#allocation2 + $0x120] sm:$0xff] }
 0x2b7   : > { %2168 = vst [vmem:[#allocation2 + $0x2d0] sm:$0xff] %v2008_v43 }
 0x2b8   : > { %v2007_v19 = vadd.f32 %v1199_v42, %v493_v56 }
 0x2ba   : > { %v1314_v20 = vpop.f32.mrf.mxu0  ;;  %v1427_v47 = vpop.f32.mrf.mxu1  ;;  %2167 = vst [vmem:[#allocation2] sm:$0xff] %v2007_v19  ;;  %1491 = vmatmul.f32.gmra.mxu2 %v2934_v48  ;;  %1604 = vmatmul.f32.gmra.mxu3 %v2935_v53  ;;  %v2944_v19 = vld [vmem:[%s3397_s14 + $0x70] sm:$0xff] }
 0x2bb   : > { %v1428_v51 = vadd.f32 %v1427_v47, %v1314_v20  ;;  %v2945_v20 = vld [vmem:[%s3397_s14 + $0x78] sm:$0xff] }
 0x2bd   : > { %v2013_v52 = vadd.f32 %v1428_v51, %v499_v44  ;;  %1717 = vmatmul.f32.gmra.mxu0 %v2934_v48  ;;  %1830 = vmatmul.f32.gmra.mxu1 %v2935_v53  ;;  %v1088_v54 = vpop.f32.mrf.mxu2  ;;  %v1201_v49 = vpop.f32.mrf.mxu3  ;;  %v523_v53 = vld [vmem:[#allocation2 + $0x4c8] sm:$0xff] }
 0x2be   : > { %v1202_v50 = vadd.f32 %v1201_v49, %v1088_v54  ;;  %v529_v49 = vld [vmem:[#allocation2 + $0x268] sm:$0xff] }
 0x2bf   : > { %2173 = vst [vmem:[#allocation2 + $0x438] sm:$0xff] %v2013_v52 }
 0x2c0   : > { %v2012_v1 = vadd.f32 %v1202_v50, %v498_v57 }
 0x2c2   : > { %v1317_v2 = vpop.f32.mrf.mxu0  ;;  %v1430_v61 = vpop.f32.mrf.mxu1  ;;  %2172 = vst [vmem:[#allocation2 + $0x138] sm:$0xff] %v2012_v1  ;;  %1494 = vmatmul.f32.gmra.mxu2 %v2936_v27  ;;  %1607 = vmatmul.f32.gmra.mxu3 %v2937_v28  ;;  %v2946_v1 = vld [vmem:[%s3397_s14 + $0x80] sm:$0xff] }
 0x2c3   : > { %v1431_v62 = vadd.f32 %v1430_v61, %v1317_v2  ;;  %v2947_v2 = vld [vmem:[%s3397_s14 + $0x88] sm:$0xff] }
 0x2c5   : > { %v2018_v3 = vadd.f32 %v1431_v62, %v504_v58  ;;  %1720 = vmatmul.f32.gmra.mxu0 %v2936_v27  ;;  %1833 = vmatmul.f32.gmra.mxu1 %v2937_v28  ;;  %v1091_v4 = vpop.f32.mrf.mxu2  ;;  %v1204_v6 = vpop.f32.mrf.mxu3  ;;  %v528_v28 = vld [vmem:[#allocation2 + $0x428] sm:$0xff] }
 0x2c6   : > { %v1205_v59 = vadd.f32 %v1204_v6, %v1091_v4  ;;  %v534_v6 = vld [vmem:[#allocation2 + $0x2f0] sm:$0xff] }
 0x2c7   : > { %2178 = vst [vmem:[#allocation2 + $0x2f8] sm:$0xff] %v2018_v3 }
 0x2c8   : > { %v2017_v7 = vadd.f32 %v1205_v59, %v503_v5 }
 0x2ca   : > { %v1320_v60 = vpop.f32.mrf.mxu0  ;;  %v1433_v10 = vpop.f32.mrf.mxu1  ;;  %2177 = vst [vmem:[#allocation2 + $0x298] sm:$0xff] %v2017_v7  ;;  %1497 = vmatmul.f32.gmra.mxu2 %v2938_v63  ;;  %1610 = vmatmul.f32.gmra.mxu3 %v2939_v0  ;;  %v2948_v7 = vld [vmem:[%s3397_s14 + $0x90] sm:$0xff] }
 0x2cb   : > { %v1434_v8 = vadd.f32 %v1433_v10, %v1320_v60  ;;  %v2949_v60 = vld [vmem:[%s3397_s14 + $0x98] sm:$0xff] }
 0x2cd   : > { %v2023_v13 = vadd.f32 %v1434_v8, %v509_v9  ;;  %1723 = vmatmul.f32.gmra.mxu0 %v2938_v63  ;;  %1836 = vmatmul.f32.gmra.mxu1 %v2939_v0  ;;  %v1094_v35 = vpop.f32.mrf.mxu2  ;;  %v1207_v14 = vpop.f32.mrf.mxu3  ;;  %v533_v0 = vld [vmem:[#allocation2 + $0x1e8] sm:$0xff] }
 0x2ce   : > { %v1208_v15 = vadd.f32 %v1207_v14, %v1094_v35  ;;  %v539_v14 = vld [vmem:[#allocation2 + $0xf0] sm:$0xff] }
 0x2cf   : > { %2183 = vst [vmem:[#allocation2 + $0x3a8] sm:$0xff] %v2023_v13 }
 0x2d0   : > { %v2022_v16 = vadd.f32 %v1208_v15, %v508_v36 }
 0x2d2   : > { %v1323_v17 = vpop.f32.mrf.mxu0  ;;  %v1436_v22 = vpop.f32.mrf.mxu1  ;;  %2182 = vst [vmem:[#allocation2 + $0x2e0] sm:$0xff] %v2022_v16  ;;  %1500 = vmatmul.f32.gmra.mxu2 %v2940_v18  ;;  %1613 = vmatmul.f32.gmra.mxu3 %v2941_v23  ;;  %v2950_v16 = vld [vmem:[%s3397_s14 + $0xa0] sm:$0xff] }
 0x2d3   : > { %v1437_v24 = vadd.f32 %v1436_v22, %v1323_v17  ;;  %v2951_v17 = vld [vmem:[%s3397_s14 + $0xa8] sm:$0xff] }
 0x2d5   : > { %v2028_v25 = vadd.f32 %v1437_v24, %v514_v21  ;;  %1726 = vmatmul.f32.gmra.mxu0 %v2940_v18  ;;  %1839 = vmatmul.f32.gmra.mxu1 %v2941_v23  ;;  %v1097_v11 = vpop.f32.mrf.mxu2  ;;  %v1210_v45 = vpop.f32.mrf.mxu3  ;;  %v538_v23 = vld [vmem:[#allocation2 + $0x1b8] sm:$0xff] }
 0x2d6   : > { %v1211_v46 = vadd.f32 %v1210_v45, %v1097_v11  ;;  %v544_v45 = vld [vmem:[#allocation2 + $0x240] sm:$0xff] }
 0x2d7   : > { %2188 = vst [vmem:[#allocation2 + $0x98] sm:$0xff] %v2028_v25 }
 0x2d8   : > { %v2027_v26 = vadd.f32 %v1211_v46, %v513_v12 }
 0x2da   : > { %v1326_v29 = vpop.f32.mrf.mxu0  ;;  %v1439_v32 = vpop.f32.mrf.mxu1  ;;  %2187 = vst [vmem:[#allocation2 + $0xe8] sm:$0xff] %v2027_v26  ;;  %1503 = vmatmul.f32.gmra.mxu2 %v2942_v39  ;;  %1616 = vmatmul.f32.gmra.mxu3 %v2943_v40  ;;  %v2952_v26 = vld [vmem:[%s3397_s14 + $0xb0] sm:$0xff] }
 0x2db   : > { %v1440_v30 = vadd.f32 %v1439_v32, %v1326_v29  ;;  %v2953_v29 = vld [vmem:[%s3397_s14 + $0xb8] sm:$0xff] }
 0x2dd   : > { %v2033_v33 = vadd.f32 %v1440_v30, %v519_v31  ;;  %1729 = vmatmul.f32.gmra.mxu0 %v2942_v39  ;;  %1842 = vmatmul.f32.gmra.mxu1 %v2943_v40  ;;  %v1100_v34 = vpop.f32.mrf.mxu2  ;;  %v1213_v38 = vpop.f32.mrf.mxu3  ;;  %v543_v40 = vld [vmem:[#allocation2 + $0x498] sm:$0xff] }
 0x2de   : > { %v1214_v43 = vadd.f32 %v1213_v38, %v1100_v34  ;;  %v549_v38 = vld [vmem:[#allocation2 + $0x2b8] sm:$0xff] }
 0x2df   : > { %2193 = vst [vmem:[#allocation2 + $0x290] sm:$0xff] %v2033_v33 }
 0x2e0   : > { %v2032_v55 = vadd.f32 %v1214_v43, %v518_v37 }
 0x2e2   : > { %v1329_v56 = vpop.f32.mrf.mxu0  ;;  %v1442_v42 = vpop.f32.mrf.mxu1  ;;  %2192 = vst [vmem:[#allocation2 + $0x28] sm:$0xff] %v2032_v55  ;;  %1506 = vmatmul.f32.gmra.mxu2 %v2944_v19  ;;  %1619 = vmatmul.f32.gmra.mxu3 %v2945_v20  ;;  %v2954_v55 = vld [vmem:[%s3397_s14 + $0xc0] sm:$0xff] }
 0x2e3   : > { %v1443_v44 = vadd.f32 %v1442_v42, %v1329_v56  ;;  %v2955_v56 = vld [vmem:[%s3397_s14 + $0xc8] sm:$0xff] }
 0x2e5   : > { %v2038_v47 = vadd.f32 %v1443_v44, %v524_v41  ;;  %1732 = vmatmul.f32.gmra.mxu0 %v2944_v19  ;;  %1845 = vmatmul.f32.gmra.mxu1 %v2945_v20  ;;  %v1103_v48 = vpop.f32.mrf.mxu2  ;;  %v1216_v51 = vpop.f32.mrf.mxu3  ;;  %v548_v20 = vld [vmem:[#allocation2 + $0x30] sm:$0xff] }
 0x2e6   : > { %v1217_v52 = vadd.f32 %v1216_v51, %v1103_v48  ;;  %v554_v51 = vld [vmem:[#allocation2 + $0x3d0] sm:$0xff] }
 0x2e7   : > { %2198 = vst [vmem:[#allocation2 + $0x120] sm:$0xff] %v2038_v47 }
 0x2e8   : > { %v2037_v54 = vadd.f32 %v1217_v52, %v523_v53 }
 0x2ea   : > { %v1332_v57 = vpop.f32.mrf.mxu0  ;;  %v1445_v50 = vpop.f32.mrf.mxu1  ;;  %2197 = vst [vmem:[#allocation2 + $0x4c8] sm:$0xff] %v2037_v54  ;;  %1509 = vmatmul.f32.gmra.mxu2 %v2946_v1  ;;  %1622 = vmatmul.f32.gmra.mxu3 %v2947_v2  ;;  %v2956_v54 = vld [vmem:[%s3397_s14 + $0xd0] sm:$0xff] }
 0x2eb   : > { %v1446_v58 = vadd.f32 %v1445_v50, %v1332_v57  ;;  %v2957_v57 = vld [vmem:[%s3397_s14 + $0xd8] sm:$0xff] }
 0x2ed   : > { %v2043_v61 = vadd.f32 %v1446_v58, %v529_v49  ;;  %1735 = vmatmul.f32.gmra.mxu0 %v2946_v1  ;;  %1848 = vmatmul.f32.gmra.mxu1 %v2947_v2  ;;  %v1106_v27 = vpop.f32.mrf.mxu2  ;;  %v1219_v62 = vpop.f32.mrf.mxu3  ;;  %v553_v2 = vld [vmem:[#allocation2 + $0x58] sm:$0xff] }
 0x2ee   : > { %v1220_v3 = vadd.f32 %v1219_v62, %v1106_v27  ;;  %v559_v62 = vld [vmem:[#allocation2 + $0x148] sm:$0xff] }
 0x2ef   : > { %2203 = vst [vmem:[#allocation2 + $0x268] sm:$0xff] %v2043_v61 }
 0x2f0   : > { %v2042_v4 = vadd.f32 %v1220_v3, %v528_v28 }
 0x2f2   : > { %v1335_v5 = vpop.f32.mrf.mxu0  ;;  %v1448_v59 = vpop.f32.mrf.mxu1  ;;  %2202 = vst [vmem:[#allocation2 + $0x428] sm:$0xff] %v2042_v4  ;;  %1512 = vmatmul.f32.gmra.mxu2 %v2948_v7  ;;  %1625 = vmatmul.f32.gmra.mxu3 %v2949_v60  ;;  %v2958_v4 = vld [vmem:[%s3397_s14 + $0xe0] sm:$0xff] }
 0x2f3   : > { %v1449_v9 = vadd.f32 %v1448_v59, %v1335_v5  ;;  %v2959_v5 = vld [vmem:[%s3397_s14 + $0xe8] sm:$0xff] }
 0x2f5   : > { %v2048_v10 = vadd.f32 %v1449_v9, %v534_v6  ;;  %1738 = vmatmul.f32.gmra.mxu0 %v2948_v7  ;;  %1851 = vmatmul.f32.gmra.mxu1 %v2949_v60  ;;  %v1109_v63 = vpop.f32.mrf.mxu2  ;;  %v1222_v8 = vpop.f32.mrf.mxu3  ;;  %v558_v60 = vld [vmem:[#allocation2 + $0x470] sm:$0xff] }
 0x2f6   : > { %v1223_v13 = vadd.f32 %v1222_v8, %v1109_v63  ;;  %v564_v8 = vld [vmem:[#allocation2 + $0xc0] sm:$0xff] }
 0x2f7   : > { %2208 = vst [vmem:[#allocation2 + $0x2f0] sm:$0xff] %v2048_v10 }
 0x2f8   : > { %v2047_v35 = vadd.f32 %v1223_v13, %v533_v0 }
 0x2fa   : > { %v1338_v36 = vpop.f32.mrf.mxu0  ;;  %v1451_v15 = vpop.f32.mrf.mxu1  ;;  %2207 = vst [vmem:[#allocation2 + $0x1e8] sm:$0xff] %v2047_v35  ;;  %1515 = vmatmul.f32.gmra.mxu2 %v2950_v16  ;;  %1628 = vmatmul.f32.gmra.mxu3 %v2951_v17  ;;  %v2960_v35 = vld [vmem:[%s3397_s14 + $0xf0] sm:$0xff] }
 0x2fb   : > { %v1452_v21 = vadd.f32 %v1451_v15, %v1338_v36  ;;  %v2961_v36 = vld [vmem:[%s3397_s14 + $0xf8] sm:$0xff] }
 0x2fd   : > { %v2053_v22 = vadd.f32 %v1452_v21, %v539_v14  ;;  %1741 = vmatmul.f32.gmra.mxu0 %v2950_v16  ;;  %1854 = vmatmul.f32.gmra.mxu1 %v2951_v17  ;;  %v1112_v18 = vpop.f32.mrf.mxu2  ;;  %v1225_v24 = vpop.f32.mrf.mxu3  ;;  %v563_v17 = vld [vmem:[#allocation2 + $0x370] sm:$0xff] }
 0x2fe   : > { %v1226_v25 = vadd.f32 %v1225_v24, %v1112_v18  ;;  %v411_v24 = vld [vmem:[#allocation2 + $0x450] sm:$0xff] }
 0x2ff   : > { %2213 = vst [vmem:[#allocation2 + $0xf0] sm:$0xff] %v2053_v22 }
 0x300   : > { %v2052_v11 = vadd.f32 %v1226_v25, %v538_v23 }
 0x302   : > { %v1341_v12 = vpop.f32.mrf.mxu0  ;;  %v1454_v46 = vpop.f32.mrf.mxu1  ;;  %2212 = vst [vmem:[#allocation2 + $0x1b8] sm:$0xff] %v2052_v11  ;;  %1518 = vmatmul.f32.gmra.mxu2 %v2952_v26  ;;  %1631 = vmatmul.f32.gmra.mxu3 %v2953_v29  ;;  %v2962_v11 = vld [vmem:[%s3397_s14 + $0x100] sm:$0xff] }
 0x303   : > { %v1455_v31 = vadd.f32 %v1454_v46, %v1341_v12  ;;  %v2963_v12 = vld [vmem:[%s3397_s14 + $0x108] sm:$0xff] }
 0x305   : > { %v2058_v32 = vadd.f32 %v1455_v31, %v544_v45  ;;  %1744 = vmatmul.f32.gmra.mxu0 %v2952_v26  ;;  %1857 = vmatmul.f32.gmra.mxu1 %v2953_v29  ;;  %v1115_v39 = vpop.f32.mrf.mxu2  ;;  %v1228_v30 = vpop.f32.mrf.mxu3  ;;  %v410_v29 = vld [vmem:[#allocation2 + $0x18] sm:$0xff] }
 0x306   : > { %v1229_v33 = vadd.f32 %v1228_v30, %v1115_v39  ;;  %v416_v30 = vld [vmem:[#allocation2 + $0x488] sm:$0xff] }
 0x307   : > { %2218 = vst [vmem:[#allocation2 + $0x240] sm:$0xff] %v2058_v32 }
 0x308   : > { %v2057_v34 = vadd.f32 %v1229_v33, %v543_v40 }
 0x30a   : > { %v1344_v37 = vpop.f32.mrf.mxu0  ;;  %v1457_v43 = vpop.f32.mrf.mxu1  ;;  %2217 = vst [vmem:[#allocation2 + $0x498] sm:$0xff] %v2057_v34  ;;  %1521 = vmatmul.f32.gmra.mxu2 %v2954_v55  ;;  %1634 = vmatmul.f32.gmra.mxu3 %v2955_v56  ;;  %v2964_v34 = vld [vmem:[%s3397_s14 + $0x110] sm:$0xff] }
 0x30b   : > { %v1458_v41 = vadd.f32 %v1457_v43, %v1344_v37  ;;  %v2965_v37 = vld [vmem:[%s3397_s14 + $0x118] sm:$0xff] }
 0x30d   : > { %v2063_v42 = vadd.f32 %v1458_v41, %v549_v38  ;;  %1747 = vmatmul.f32.gmra.mxu0 %v2954_v55  ;;  %1860 = vmatmul.f32.gmra.mxu1 %v2955_v56  ;;  %v1118_v19 = vpop.f32.mrf.mxu2  ;;  %v1231_v44 = vpop.f32.mrf.mxu3  ;;  %v415_v56 = vld [vmem:[#allocation2 + $0x108] sm:$0xff] }
 0x30e   : > { %v1232_v47 = vadd.f32 %v1231_v44, %v1118_v19  ;;  %v421_v44 = vld [vmem:[#allocation2 + $0x398] sm:$0xff] }
 0x30f   : > { %2223 = vst [vmem:[#allocation2 + $0x2b8] sm:$0xff] %v2063_v42 }
 0x310   : > { %v2062_v48 = vadd.f32 %v1232_v47, %v548_v20 }
 0x312   : > { %v1347_v53 = vpop.f32.mrf.mxu0  ;;  %v1460_v52 = vpop.f32.mrf.mxu1  ;;  %2222 = vst [vmem:[#allocation2 + $0x30] sm:$0xff] %v2062_v48  ;;  %1524 = vmatmul.f32.gmra.mxu2 %v2956_v54  ;;  %1637 = vmatmul.f32.gmra.mxu3 %v2957_v57  ;;  %v2966_v48 = vld [vmem:[%s3397_s14 + $0x120] sm:$0xff] }
 0x313   : > { %v1461_v49 = vadd.f32 %v1460_v52, %v1347_v53  ;;  %v2967_v53 = vld [vmem:[%s3397_s14 + $0x128] sm:$0xff] }
 0x315   : > { %v2068_v50 = vadd.f32 %v1461_v49, %v554_v51  ;;  %1750 = vmatmul.f32.gmra.mxu0 %v2956_v54  ;;  %1863 = vmatmul.f32.gmra.mxu1 %v2957_v57  ;;  %v1121_v1 = vpop.f32.mrf.mxu2  ;;  %v1234_v58 = vpop.f32.mrf.mxu3  ;;  %v420_v57 = vld [vmem:[#allocation2 + $0x2a8] sm:$0xff] }
 0x316   : > { %v1235_v61 = vadd.f32 %v1234_v58, %v1121_v1  ;;  %v426_v58 = vld [vmem:[#allocation2 + $0x220] sm:$0xff] }
 0x317   : > { %2228 = vst [vmem:[#allocation2 + $0x3d0] sm:$0xff] %v2068_v50 }
 0x318   : > { %v2067_v27 = vadd.f32 %v1235_v61, %v553_v2 }
 0x31a   : > { %v1350_v28 = vpop.f32.mrf.mxu0  ;;  %v1463_v3 = vpop.f32.mrf.mxu1  ;;  %2227 = vst [vmem:[#allocation2 + $0x58] sm:$0xff] %v2067_v27  ;;  %1527 = vmatmul.f32.gmra.mxu2 %v2958_v4  ;;  %1640 = vmatmul.f32.gmra.mxu3 %v2959_v5  ;;  %v2968_v27 = vld [vmem:[%s3397_s14 + $0x130] sm:$0xff] }
 0x31b   : > { %v1464_v6 = vadd.f32 %v1463_v3, %v1350_v28  ;;  %v2969_v28 = vld [vmem:[%s3397_s14 + $0x138] sm:$0xff] }
 0x31d   : > { %v2073_v59 = vadd.f32 %v1464_v6, %v559_v62  ;;  %1753 = vmatmul.f32.gmra.mxu0 %v2958_v4  ;;  %1866 = vmatmul.f32.gmra.mxu1 %v2959_v5  ;;  %v1124_v7 = vpop.f32.mrf.mxu2  ;;  %v1237_v9 = vpop.f32.mrf.mxu3  ;;  %v425_v5 = vld [vmem:[#allocation2 + $0x160] sm:$0xff] }
 0x31e   : > { %v1238_v10 = vadd.f32 %v1237_v9, %v1124_v7  ;;  %v431_v9 = vld [vmem:[#allocation2 + $0x458] sm:$0xff] }
 0x31f   : > { %2233 = vst [vmem:[#allocation2 + $0x148] sm:$0xff] %v2073_v59 }
 0x320   : > { %v2072_v63 = vadd.f32 %v1238_v10, %v558_v60 }
 0x322   : > { %v1353_v0 = vpop.f32.mrf.mxu0  ;;  %v1466_v13 = vpop.f32.mrf.mxu1  ;;  %2232 = vst [vmem:[#allocation2 + $0x470] sm:$0xff] %v2072_v63  ;;  %1530 = vmatmul.f32.gmra.mxu2 %v2960_v35  ;;  %1643 = vmatmul.f32.gmra.mxu3 %v2961_v36  ;;  %v2970_v63 = vld [vmem:[%s3397_s14 + $0x140] sm:$0xff] }
 0x323   : > { %v1467_v14 = vadd.f32 %v1466_v13, %v1353_v0  ;;  %v2971_v0 = vld [vmem:[%s3397_s14 + $0x148] sm:$0xff] }
 0x325   : > { %v2078_v15 = vadd.f32 %v1467_v14, %v564_v8  ;;  %1756 = vmatmul.f32.gmra.mxu0 %v2960_v35  ;;  %1869 = vmatmul.f32.gmra.mxu1 %v2961_v36  ;;  %v1127_v16 = vpop.f32.mrf.mxu2  ;;  %v1240_v21 = vpop.f32.mrf.mxu3  ;;  %v430_v36 = vld [vmem:[#allocation2 + $0x380] sm:$0xff] }
 0x326   : > { %v1241_v22 = vadd.f32 %v1240_v21, %v1127_v16  ;;  %v436_v21 = vld [vmem:[#allocation2 + $0x480] sm:$0xff] }
 0x327   : > { %2238 = vst [vmem:[#allocation2 + $0xc0] sm:$0xff] %v2078_v15 }
 0x328   : > { %v2077_v18 = vadd.f32 %v1241_v22, %v563_v17 }
 0x32a   : > { %v1712_v23 = vpop.f32.mrf.mxu0  ;;  %v1825_v25 = vpop.f32.mrf.mxu1  ;;  %2237 = vst [vmem:[#allocation2 + $0x370] sm:$0xff] %v2077_v18  ;;  %1533 = vmatmul.f32.gmra.mxu2 %v2962_v11  ;;  %1646 = vmatmul.f32.gmra.mxu3 %v2963_v12  ;;  %v2972_v18 = vld [vmem:[%s3397_s14 + $0x150] sm:$0xff] }
 0x32b   : > { %v1826_v45 = vadd.f32 %v1825_v25, %v1712_v23  ;;  %v2973_v23 = vld [vmem:[%s3397_s14 + $0x158] sm:$0xff] }
 0x32d   : > { %v1925_v46 = vadd.f32 %v1826_v45, %v411_v24  ;;  %1759 = vmatmul.f32.gmra.mxu0 %v2962_v11  ;;  %1872 = vmatmul.f32.gmra.mxu1 %v2963_v12  ;;  %v1486_v26 = vpop.f32.mrf.mxu2  ;;  %v1599_v31 = vpop.f32.mrf.mxu3  ;;  %v435_v12 = vld [vmem:[#allocation2 + $0x270] sm:$0xff] }
 0x32e   : > { %v1600_v32 = vadd.f32 %v1599_v31, %v1486_v26  ;;  %v441_v31 = vld [vmem:[#allocation2 + $0xb0] sm:$0xff] }
 0x32f   : > { %2085 = vst [vmem:[#allocation2 + $0x450] sm:$0xff] %v1925_v46 }
 0x330   : > { %v1924_v39 = vadd.f32 %v1600_v32, %v410_v29 }
 0x332   : > { %v1715_v40 = vpop.f32.mrf.mxu0  ;;  %v1828_v33 = vpop.f32.mrf.mxu1  ;;  %2084 = vst [vmem:[#allocation2 + $0x18] sm:$0xff] %v1924_v39  ;;  %1536 = vmatmul.f32.gmra.mxu2 %v2964_v34  ;;  %1649 = vmatmul.f32.gmra.mxu3 %v2965_v37  ;;  %v2974_v39 = vld [vmem:[%s3397_s14 + $0x160] sm:$0xff] }
 0x333   : > { %v1829_v38 = vadd.f32 %v1828_v33, %v1715_v40  ;;  %v2975_v40 = vld [vmem:[%s3397_s14 + $0x168] sm:$0xff] }
 0x335   : > { %v1930_v43 = vadd.f32 %v1829_v38, %v416_v30  ;;  %1762 = vmatmul.f32.gmra.mxu0 %v2964_v34  ;;  %1875 = vmatmul.f32.gmra.mxu1 %v2965_v37  ;;  %v1489_v55 = vpop.f32.mrf.mxu2  ;;  %v1602_v41 = vpop.f32.mrf.mxu3  ;;  %v440_v37 = vld [vmem:[#allocation2 + $0x3f8] sm:$0xff] }
 0x336   : > { %v1603_v42 = vadd.f32 %v1602_v41, %v1489_v55  ;;  %v446_v41 = vld [vmem:[#allocation2 + $0x20] sm:$0xff] }
 0x337   : > { %2090 = vst [vmem:[#allocation2 + $0x488] sm:$0xff] %v1930_v43 }
 0x338   : > { %v1929_v19 = vadd.f32 %v1603_v42, %v415_v56 }
 0x33a   : > { %v1718_v20 = vpop.f32.mrf.mxu0  ;;  %v1831_v47 = vpop.f32.mrf.mxu1  ;;  %2089 = vst [vmem:[#allocation2 + $0x108] sm:$0xff] %v1929_v19  ;;  %1539 = vmatmul.f32.gmra.mxu2 %v2966_v48  ;;  %1652 = vmatmul.f32.gmra.mxu3 %v2967_v53  ;;  %v2976_v19 = vld [vmem:[%s3397_s14 + $0x170] sm:$0xff] }
 0x33b   : > { %v1832_v51 = vadd.f32 %v1831_v47, %v1718_v20  ;;  %v2977_v20 = vld [vmem:[%s3397_s14 + $0x178] sm:$0xff] }
 0x33d   : > { %v1935_v52 = vadd.f32 %v1832_v51, %v421_v44  ;;  %1765 = vmatmul.f32.gmra.mxu0 %v2966_v48  ;;  %1878 = vmatmul.f32.gmra.mxu1 %v2967_v53  ;;  %v1492_v54 = vpop.f32.mrf.mxu2  ;;  %v1605_v49 = vpop.f32.mrf.mxu3  ;;  %v445_v53 = vld [vmem:[#allocation2 + $0x78] sm:$0xff] }
 0x33e   : > { %v1606_v50 = vadd.f32 %v1605_v49, %v1492_v54  ;;  %v451_v49 = vld [vmem:[#allocation2 + $0x48] sm:$0xff] }
 0x33f   : > { %2095 = vst [vmem:[#allocation2 + $0x398] sm:$0xff] %v1935_v52 }
 0x340   : > { %v1934_v1 = vadd.f32 %v1606_v50, %v420_v57 }
 0x342   : > { %v1721_v2 = vpop.f32.mrf.mxu0  ;;  %v1834_v61 = vpop.f32.mrf.mxu1  ;;  %2094 = vst [vmem:[#allocation2 + $0x2a8] sm:$0xff] %v1934_v1  ;;  %1542 = vmatmul.f32.gmra.mxu2 %v2968_v27  ;;  %1655 = vmatmul.f32.gmra.mxu3 %v2969_v28  ;;  %v2978_v1 = vld [vmem:[%s3397_s14 + $0x180] sm:$0xff] }
 0x343   : > { %v1835_v62 = vadd.f32 %v1834_v61, %v1721_v2  ;;  %v2979_v2 = vld [vmem:[%s3397_s14 + $0x188] sm:$0xff] }
 0x345   : > { %v1940_v3 = vadd.f32 %v1835_v62, %v426_v58  ;;  %1768 = vmatmul.f32.gmra.mxu0 %v2968_v27  ;;  %1881 = vmatmul.f32.gmra.mxu1 %v2969_v28  ;;  %v1495_v4 = vpop.f32.mrf.mxu2  ;;  %v1608_v6 = vpop.f32.mrf.mxu3  ;;  %v450_v28 = vld [vmem:[#allocation2 + $0x8] sm:$0xff] }
 0x346   : > { %v1609_v59 = vadd.f32 %v1608_v6, %v1495_v4  ;;  %v456_v6 = vld [vmem:[#allocation2 + $0x1f0] sm:$0xff] }
 0x347   : > { %2100 = vst [vmem:[#allocation2 + $0x220] sm:$0xff] %v1940_v3 }
 0x348   : > { %v1939_v7 = vadd.f32 %v1609_v59, %v425_v5 }
 0x34a   : > { %v1724_v60 = vpop.f32.mrf.mxu0  ;;  %v1837_v10 = vpop.f32.mrf.mxu1  ;;  %2099 = vst [vmem:[#allocation2 + $0x160] sm:$0xff] %v1939_v7  ;;  %1545 = vmatmul.f32.gmra.mxu2 %v2970_v63  ;;  %1658 = vmatmul.f32.gmra.mxu3 %v2971_v0  ;;  %v2980_v7 = vld [vmem:[%s3397_s14 + $0x190] sm:$0xff] }
 0x34b   : > { %v1838_v8 = vadd.f32 %v1837_v10, %v1724_v60  ;;  %v2981_v60 = vld [vmem:[%s3397_s14 + $0x198] sm:$0xff] }
 0x34d   : > { %v1945_v13 = vadd.f32 %v1838_v8, %v431_v9  ;;  %1771 = vmatmul.f32.gmra.mxu0 %v2970_v63  ;;  %1884 = vmatmul.f32.gmra.mxu1 %v2971_v0  ;;  %v1498_v35 = vpop.f32.mrf.mxu2  ;;  %v1611_v14 = vpop.f32.mrf.mxu3  ;;  %v455_v0 = vld [vmem:[#allocation2 + $0x168] sm:$0xff] }
 0x34e   : > { %v1612_v15 = vadd.f32 %v1611_v14, %v1498_v35  ;;  %v461_v14 = vld [vmem:[#allocation2 + $0x260] sm:$0xff] }
 0x34f   : > { %2105 = vst [vmem:[#allocation2 + $0x458] sm:$0xff] %v1945_v13 }
 0x350   : > { %v1944_v16 = vadd.f32 %v1612_v15, %v430_v36 }
 0x352   : > { %v1727_v17 = vpop.f32.mrf.mxu0  ;;  %v1840_v22 = vpop.f32.mrf.mxu1  ;;  %2104 = vst [vmem:[#allocation2 + $0x380] sm:$0xff] %v1944_v16  ;;  %1548 = vmatmul.f32.gmra.mxu2 %v2972_v18  ;;  %1661 = vmatmul.f32.gmra.mxu3 %v2973_v23  ;;  %v2982_v16 = vld [vmem:[%s3397_s14 + $0x1a0] sm:$0xff] }
 0x353   : > { %v1841_v24 = vadd.f32 %v1840_v22, %v1727_v17  ;;  %v2983_v17 = vld [vmem:[%s3397_s14 + $0x1a8] sm:$0xff] }
 0x355   : > { %v1950_v25 = vadd.f32 %v1841_v24, %v436_v21  ;;  %1774 = vmatmul.f32.gmra.mxu0 %v2972_v18  ;;  %1887 = vmatmul.f32.gmra.mxu1 %v2973_v23  ;;  %v1501_v11 = vpop.f32.mrf.mxu2  ;;  %v1614_v45 = vpop.f32.mrf.mxu3  ;;  %v460_v23 = vld [vmem:[#allocation2 + $0x258] sm:$0xff] }
 0x356   : > { %v1615_v46 = vadd.f32 %v1614_v45, %v1501_v11  ;;  %v466_v45 = vld [vmem:[#allocation2 + $0x4c0] sm:$0xff] }
 0x357   : > { %2110 = vst [vmem:[#allocation2 + $0x480] sm:$0xff] %v1950_v25 }
 0x358   : > { %v1949_v26 = vadd.f32 %v1615_v46, %v435_v12 }
 0x35a   : > { %v1730_v29 = vpop.f32.mrf.mxu0  ;;  %v1843_v32 = vpop.f32.mrf.mxu1  ;;  %2109 = vst [vmem:[#allocation2 + $0x270] sm:$0xff] %v1949_v26  ;;  %1551 = vmatmul.f32.gmra.mxu2 %v2974_v39  ;;  %1664 = vmatmul.f32.gmra.mxu3 %v2975_v40  ;;  %v2984_v26 = vld [vmem:[%s3397_s14 + $0x1b0] sm:$0xff] }
 0x35b   : > { %v1844_v30 = vadd.f32 %v1843_v32, %v1730_v29  ;;  %v2985_v29 = vld [vmem:[%s3397_s14 + $0x1b8] sm:$0xff] }
 0x35d   : > { %v1955_v33 = vadd.f32 %v1844_v30, %v441_v31  ;;  %1777 = vmatmul.f32.gmra.mxu0 %v2974_v39  ;;  %1890 = vmatmul.f32.gmra.mxu1 %v2975_v40  ;;  %v1504_v34 = vpop.f32.mrf.mxu2  ;;  %v1617_v38 = vpop.f32.mrf.mxu3  ;;  %v465_v40 = vld [vmem:[#allocation2 + $0x70] sm:$0xff] }
 0x35e   : > { %v1618_v43 = vadd.f32 %v1617_v38, %v1504_v34  ;;  %v471_v38 = vld [vmem:[#allocation2 + $0x318] sm:$0xff] }
 0x35f   : > { %2115 = vst [vmem:[#allocation2 + $0xb0] sm:$0xff] %v1955_v33 }
 0x360   : > { %v1954_v55 = vadd.f32 %v1618_v43, %v440_v37 }
 0x362   : > { %v1733_v56 = vpop.f32.mrf.mxu0  ;;  %v1846_v42 = vpop.f32.mrf.mxu1  ;;  %2114 = vst [vmem:[#allocation2 + $0x3f8] sm:$0xff] %v1954_v55  ;;  %1554 = vmatmul.f32.gmra.mxu2 %v2976_v19  ;;  %1667 = vmatmul.f32.gmra.mxu3 %v2977_v20  ;;  %v2986_v55 = vld [vmem:[%s3397_s14 + $0x1c0] sm:$0xff] }
 0x363   : > { %v1847_v44 = vadd.f32 %v1846_v42, %v1733_v56  ;;  %v2987_v56 = vld [vmem:[%s3397_s14 + $0x1c8] sm:$0xff] }
 0x365   : > { %v1960_v47 = vadd.f32 %v1847_v44, %v446_v41  ;;  %1780 = vmatmul.f32.gmra.mxu0 %v2976_v19  ;;  %1893 = vmatmul.f32.gmra.mxu1 %v2977_v20  ;;  %v1507_v48 = vpop.f32.mrf.mxu2  ;;  %v1620_v51 = vpop.f32.mrf.mxu3  ;;  %v470_v20 = vld [vmem:[#allocation2 + $0x1e0] sm:$0xff] }
 0x366   : > { %v1621_v52 = vadd.f32 %v1620_v51, %v1507_v48  ;;  %v476_v51 = vld [vmem:[#allocation2 + $0x348] sm:$0xff] }
 0x367   : > { %2120 = vst [vmem:[#allocation2 + $0x20] sm:$0xff] %v1960_v47 }
 0x368   : > { %v1959_v54 = vadd.f32 %v1621_v52, %v445_v53 }
 0x36a   : > { %v1736_v57 = vpop.f32.mrf.mxu0  ;;  %v1849_v50 = vpop.f32.mrf.mxu1  ;;  %2119 = vst [vmem:[#allocation2 + $0x78] sm:$0xff] %v1959_v54  ;;  %1557 = vmatmul.f32.gmra.mxu2 %v2978_v1  ;;  %1670 = vmatmul.f32.gmra.mxu3 %v2979_v2  ;;  %v2988_v54 = vld [vmem:[%s3397_s14 + $0x1d0] sm:$0xff] }
 0x36b   : > { %v1850_v58 = vadd.f32 %v1849_v50, %v1736_v57  ;;  %v2989_v57 = vld [vmem:[%s3397_s14 + $0x1d8] sm:$0xff] }
 0x36d   : > { %v1965_v61 = vadd.f32 %v1850_v58, %v451_v49  ;;  %1783 = vmatmul.f32.gmra.mxu0 %v2978_v1  ;;  %1896 = vmatmul.f32.gmra.mxu1 %v2979_v2  ;;  %v1510_v27 = vpop.f32.mrf.mxu2  ;;  %v1623_v62 = vpop.f32.mrf.mxu3  ;;  %v475_v2 = vld [vmem:[#allocation2 + $0x228] sm:$0xff] }
 0x36e   : > { %v1624_v3 = vadd.f32 %v1623_v62, %v1510_v27  ;;  %v481_v62 = vld [vmem:[#allocation2 + $0x200] sm:$0xff] }
 0x36f   : > { %2125 = vst [vmem:[#allocation2 + $0x48] sm:$0xff] %v1965_v61 }
 0x370   : > { %v1964_v4 = vadd.f32 %v1624_v3, %v450_v28 }
 0x372   : > { %v1739_v5 = vpop.f32.mrf.mxu0  ;;  %v1852_v59 = vpop.f32.mrf.mxu1  ;;  %2124 = vst [vmem:[#allocation2 + $0x8] sm:$0xff] %v1964_v4  ;;  %1560 = vmatmul.f32.gmra.mxu2 %v2980_v7  ;;  %1673 = vmatmul.f32.gmra.mxu3 %v2981_v60  ;;  %v2990_v4 = vld [vmem:[%s3397_s14 + $0x1e0] sm:$0xff] }
 0x373   : > { %v1853_v9 = vadd.f32 %v1852_v59, %v1739_v5  ;;  %v2991_v5 = vld [vmem:[%s3397_s14 + $0x1e8] sm:$0xff] }
 0x375   : > { %v1970_v10 = vadd.f32 %v1853_v9, %v456_v6  ;;  %1786 = vmatmul.f32.gmra.mxu0 %v2980_v7  ;;  %1899 = vmatmul.f32.gmra.mxu1 %v2981_v60  ;;  %v1513_v63 = vpop.f32.mrf.mxu2  ;;  %v1626_v8 = vpop.f32.mrf.mxu3  ;;  %v480_v60 = vld [vmem:[#allocation2 + $0x1d8] sm:$0xff] }
 0x376   : > { %v1627_v13 = vadd.f32 %v1626_v8, %v1513_v63  ;;  %v486_v8 = vld [vmem:[#allocation2 + $0x190] sm:$0xff] }
 0x377   : > { %2130 = vst [vmem:[#allocation2 + $0x1f0] sm:$0xff] %v1970_v10 }
 0x378   : > { %v1969_v35 = vadd.f32 %v1627_v13, %v455_v0 }
 0x37a   : > { %v1742_v36 = vpop.f32.mrf.mxu0  ;;  %v1855_v15 = vpop.f32.mrf.mxu1  ;;  %2129 = vst [vmem:[#allocation2 + $0x168] sm:$0xff] %v1969_v35  ;;  %1563 = vmatmul.f32.gmra.mxu2 %v2982_v16  ;;  %1676 = vmatmul.f32.gmra.mxu3 %v2983_v17  ;;  %v2992_v35 = vld [vmem:[%s3397_s14 + $0x1f0] sm:$0xff] }
 0x37b   : > { %v1856_v21 = vadd.f32 %v1855_v15, %v1742_v36  ;;  %v2993_v36 = vld [vmem:[%s3397_s14 + $0x1f8] sm:$0xff] }
 0x37d   : > { %v1975_v22 = vadd.f32 %v1856_v21, %v461_v14  ;;  %1789 = vmatmul.f32.gmra.mxu0 %v2982_v16  ;;  %1902 = vmatmul.f32.gmra.mxu1 %v2983_v17  ;;  %v1516_v18 = vpop.f32.mrf.mxu2  ;;  %v1629_v24 = vpop.f32.mrf.mxu3  ;;  %v485_v17 = vld [vmem:[#allocation2 + $0x4e8] sm:$0xff] }
 0x37e   : > { %v1630_v25 = vadd.f32 %v1629_v24, %v1516_v18  ;;  %v491_v24 = vld [vmem:[#allocation2 + $0x88] sm:$0xff] }
 0x37f   : > { %2135 = vst [vmem:[#allocation2 + $0x260] sm:$0xff] %v1975_v22 }
 0x380   : > { %v1974_v11 = vadd.f32 %v1630_v25, %v460_v23 }
 0x382   : > { %v1745_v12 = vpop.f32.mrf.mxu0  ;;  %v1858_v46 = vpop.f32.mrf.mxu1  ;;  %2134 = vst [vmem:[#allocation2 + $0x258] sm:$0xff] %v1974_v11  ;;  %1566 = vmatmul.f32.gmra.mxu2 %v2984_v26  ;;  %1679 = vmatmul.f32.gmra.mxu3 %v2985_v29 }
 0x383   : > { %v1859_v31 = vadd.f32 %v1858_v46, %v1745_v12  ;;  %v490_v46 = vld [vmem:[#allocation2 + $0x158] sm:$0xff] }
 0x385   : > { %v1980_v32 = vadd.f32 %v1859_v31, %v466_v45  ;;  %1792 = vmatmul.f32.gmra.mxu0 %v2984_v26  ;;  %1905 = vmatmul.f32.gmra.mxu1 %v2985_v29  ;;  %v1519_v39 = vpop.f32.mrf.mxu2  ;;  %v1632_v30 = vpop.f32.mrf.mxu3 }
 0x386   : > { %v1633_v33 = vadd.f32 %v1632_v30, %v1519_v39  ;;  %v496_v39 = vld [vmem:[#allocation2 + $0x478] sm:$0xff] }
 0x387   : > { %2140 = vst [vmem:[#allocation2 + $0x4c0] sm:$0xff] %v1980_v32 }
 0x388   : > { %v1979_v34 = vadd.f32 %v1633_v33, %v465_v40 }
 0x38a   : > { %v1748_v37 = vpop.f32.mrf.mxu0  ;;  %v1861_v43 = vpop.f32.mrf.mxu1  ;;  %2139 = vst [vmem:[#allocation2 + $0x70] sm:$0xff] %v1979_v34  ;;  %1569 = vmatmul.f32.gmra.mxu2 %v2986_v55  ;;  %1682 = vmatmul.f32.gmra.mxu3 %v2987_v56 }
 0x38b   : > { %v1862_v41 = vadd.f32 %v1861_v43, %v1748_v37  ;;  %v495_v37 = vld [vmem:[#allocation2 + $0x278] sm:$0xff] }
 0x38d   : > { %v1985_v42 = vadd.f32 %v1862_v41, %v471_v38  ;;  %1795 = vmatmul.f32.gmra.mxu0 %v2986_v55  ;;  %1908 = vmatmul.f32.gmra.mxu1 %v2987_v56  ;;  %v1522_v19 = vpop.f32.mrf.mxu2  ;;  %v1635_v44 = vpop.f32.mrf.mxu3  ;;  %v501_v41 = vld [vmem:[#allocation2 + $0x3e0] sm:$0xff] }
 0x38e   : > { %v1636_v47 = vadd.f32 %v1635_v44, %v1522_v19 }
 0x38f   : > { %2145 = vst [vmem:[#allocation2 + $0x318] sm:$0xff] %v1985_v42 }
 0x390   : > { %v1984_v48 = vadd.f32 %v1636_v47, %v470_v20  ;;  %v500_v47 = vld [vmem:[#allocation2 + $0x2c8] sm:$0xff] }
 0x392   : > { %v1751_v53 = vpop.f32.mrf.mxu0  ;;  %v1864_v52 = vpop.f32.mrf.mxu1  ;;  %2144 = vst [vmem:[#allocation2 + $0x1e0] sm:$0xff] %v1984_v48  ;;  %1572 = vmatmul.f32.gmra.mxu2 %v2988_v54  ;;  %1685 = vmatmul.f32.gmra.mxu3 %v2989_v57 }
 0x393   : > { %v1865_v49 = vadd.f32 %v1864_v52, %v1751_v53 }
 0x395   : > { %v1990_v50 = vadd.f32 %v1865_v49, %v476_v51  ;;  %1798 = vmatmul.f32.gmra.mxu0 %v2988_v54  ;;  %1911 = vmatmul.f32.gmra.mxu1 %v2989_v57  ;;  %v1525_v1 = vpop.f32.mrf.mxu2  ;;  %v1638_v58 = vpop.f32.mrf.mxu3  ;;  %v506_v54 = vld [vmem:[#allocation2 + $0x3c0] sm:$0xff] }
 0x396   : > { %v1639_v61 = vadd.f32 %v1638_v58, %v1525_v1 }
 0x397   : > { %2150 = vst [vmem:[#allocation2 + $0x348] sm:$0xff] %v1990_v50 }
 0x398   : > { %v1989_v27 = vadd.f32 %v1639_v61, %v475_v2  ;;  %v505_v2 = vld [vmem:[#allocation2 + $0x68] sm:$0xff] }
 0x39a   : > { %v1754_v28 = vpop.f32.mrf.mxu0  ;;  %v1867_v3 = vpop.f32.mrf.mxu1  ;;  %2149 = vst [vmem:[#allocation2 + $0x228] sm:$0xff] %v1989_v27  ;;  %1575 = vmatmul.f32.gmra.mxu2 %v2990_v4  ;;  %1688 = vmatmul.f32.gmra.mxu3 %v2991_v5 }
 0x39b   : > { %v1868_v6 = vadd.f32 %v1867_v3, %v1754_v28 }
 0x39d   : > { %v1995_v59 = vadd.f32 %v1868_v6, %v481_v62  ;;  %1801 = vmatmul.f32.gmra.mxu0 %v2990_v4  ;;  %1914 = vmatmul.f32.gmra.mxu1 %v2991_v5  ;;  %v1528_v7 = vpop.f32.mrf.mxu2  ;;  %v1641_v9 = vpop.f32.mrf.mxu3  ;;  %v511_v62 = vld [vmem:[#allocation2 + $0x3d8] sm:$0xff] }
 0x39e   : > { %v1642_v10 = vadd.f32 %v1641_v9, %v1528_v7 }
 0x39f   : > { %2155 = vst [vmem:[#allocation2 + $0x200] sm:$0xff] %v1995_v59  ;;  %v510_v59 = vld [vmem:[#allocation2 + $0x1c8] sm:$0xff] }
 0x3a0   : > { %v1994_v63 = vadd.f32 %v1642_v10, %v480_v60 }
 0x3a2   : > { %v1757_v0 = vpop.f32.mrf.mxu0  ;;  %v1870_v13 = vpop.f32.mrf.mxu1  ;;  %2154 = vst [vmem:[#allocation2 + $0x1d8] sm:$0xff] %v1994_v63  ;;  %1578 = vmatmul.f32.gmra.mxu2 %v2992_v35  ;;  %1691 = vmatmul.f32.gmra.mxu3 %v2993_v36  ;;  %v516_v63 = vld [vmem:[#allocation2 + $0xc8] sm:$0xff] }
 0x3a3   : > { %v1871_v14 = vadd.f32 %v1870_v13, %v1757_v0 }
 0x3a5   : > { %v2000_v15 = vadd.f32 %v1871_v14, %v486_v8  ;;  %1804 = vmatmul.f32.gmra.mxu0 %v2992_v35  ;;  %1917 = vmatmul.f32.gmra.mxu1 %v2993_v36  ;;  %v1531_v16 = vpop.f32.mrf.mxu2  ;;  %v1644_v21 = vpop.f32.mrf.mxu3  ;;  %v515_v36 = vld [vmem:[#allocation2 + $0x410] sm:$0xff] }
 0x3a6   : > { %v1645_v22 = vadd.f32 %v1644_v21, %v1531_v16  ;;  %v521_v21 = vld [vmem:[#allocation2 + $0x118] sm:$0xff] }
 0x3a7   : > { %2160 = vst [vmem:[#allocation2 + $0x190] sm:$0xff] %v2000_v15 }
 0x3a8   : > { %v1999_v18 = vadd.f32 %v1645_v22, %v485_v17 }
 0x3aa   : > { %v1760_v23 = vpop.f32.mrf.mxu0  ;;  %v1873_v25 = vpop.f32.mrf.mxu1  ;;  %2159 = vst [vmem:[#allocation2 + $0x4e8] sm:$0xff] %v1999_v18 }
 0x3ab   : > { %v1874_v11 = vadd.f32 %v1873_v25, %v1760_v23  ;;  %v520_v25 = vld [vmem:[#allocation2 + $0x330] sm:$0xff] }
 0x3ad   : > { %v2005_v12 = vadd.f32 %v1874_v11, %v491_v24  ;;  %v1534_v45 = vpop.f32.mrf.mxu2  ;;  %v1647_v26 = vpop.f32.mrf.mxu3 }
 0x3ae   : > { %v1648_v29 = vadd.f32 %v1647_v26, %v1534_v45  ;;  %v526_v26 = vld [vmem:[#allocation2 + $0x208] sm:$0xff] }
 0x3af   : > { %2165 = vst [vmem:[#allocation2 + $0x88] sm:$0xff] %v2005_v12 }
 0x3b0   : > { %v2004_v31 = vadd.f32 %v1648_v29, %v490_v46 }
 0x3b2   : > { %v1763_v32 = vpop.f32.mrf.mxu0  ;;  %v1876_v40 = vpop.f32.mrf.mxu1  ;;  %2164 = vst [vmem:[#allocation2 + $0x158] sm:$0xff] %v2004_v31 }
 0x3b3   : > { %v1877_v30 = vadd.f32 %v1876_v40, %v1763_v32  ;;  %v525_v40 = vld [vmem:[#allocation2 + $0x1d0] sm:$0xff] }
 0x3b5   : > { %v2010_v33 = vadd.f32 %v1877_v30, %v496_v39  ;;  %v1537_v34 = vpop.f32.mrf.mxu2  ;;  %v1650_v38 = vpop.f32.mrf.mxu3 }
 0x3b6   : > { %v1651_v43 = vadd.f32 %v1650_v38, %v1537_v34  ;;  %v531_v38 = vld [vmem:[#allocation2 + $0x4b8] sm:$0xff] }
 0x3b7   : > { %2170 = vst [vmem:[#allocation2 + $0x478] sm:$0xff] %v2010_v33 }
 0x3b8   : > { %v2009_v55 = vadd.f32 %v1651_v43, %v495_v37 }
 0x3ba   : > { %v1766_v56 = vpop.f32.mrf.mxu0  ;;  %v1879_v42 = vpop.f32.mrf.mxu1  ;;  %2169 = vst [vmem:[#allocation2 + $0x278] sm:$0xff] %v2009_v55 }
 0x3bb   : > { %v1880_v19 = vadd.f32 %v1879_v42, %v1766_v56  ;;  %v530_v42 = vld [vmem:[#allocation2 + $0x180] sm:$0xff] }
 0x3bd   : > { %v2015_v20 = vadd.f32 %v1880_v19, %v501_v41  ;;  %v1540_v44 = vpop.f32.mrf.mxu2  ;;  %v1653_v48 = vpop.f32.mrf.mxu3 }
 0x3be   : > { %v1654_v53 = vadd.f32 %v1653_v48, %v1540_v44  ;;  %v536_v48 = vld [vmem:[#allocation2 + $0x170] sm:$0xff] }
 0x3bf   : > { %2175 = vst [vmem:[#allocation2 + $0x3e0] sm:$0xff] %v2015_v20 }
 0x3c0   : > { %v2014_v51 = vadd.f32 %v1654_v53, %v500_v47 }
 0x3c2   : > { %v1769_v52 = vpop.f32.mrf.mxu0  ;;  %v1882_v57 = vpop.f32.mrf.mxu1  ;;  %2174 = vst [vmem:[#allocation2 + $0x2c8] sm:$0xff] %v2014_v51 }
 0x3c3   : > { %v1883_v49 = vadd.f32 %v1882_v57, %v1769_v52  ;;  %v535_v57 = vld [vmem:[#allocation2 + $0x3f0] sm:$0xff] }
 0x3c5   : > { %v2020_v50 = vadd.f32 %v1883_v49, %v506_v54  ;;  %v1543_v1 = vpop.f32.mrf.mxu2  ;;  %v1656_v58 = vpop.f32.mrf.mxu3 }
 0x3c6   : > { %v1657_v61 = vadd.f32 %v1656_v58, %v1543_v1  ;;  %v541_v58 = vld [vmem:[#allocation2 + $0x248] sm:$0xff] }
 0x3c7   : > { %2180 = vst [vmem:[#allocation2 + $0x3c0] sm:$0xff] %v2020_v50 }
 0x3c8   : > { %v2019_v27 = vadd.f32 %v1657_v61, %v505_v2 }
 0x3ca   : > { %v1772_v28 = vpop.f32.mrf.mxu0  ;;  %v1885_v3 = vpop.f32.mrf.mxu1  ;;  %2179 = vst [vmem:[#allocation2 + $0x68] sm:$0xff] %v2019_v27 }
 0x3cb   : > { %v1886_v4 = vadd.f32 %v1885_v3, %v1772_v28  ;;  %v540_v3 = vld [vmem:[#allocation2 + $0x238] sm:$0xff] }
 0x3cd   : > { %v2025_v5 = vadd.f32 %v1886_v4, %v511_v62  ;;  %v1546_v6 = vpop.f32.mrf.mxu2  ;;  %v1659_v7 = vpop.f32.mrf.mxu3 }
 0x3ce   : > { %v1660_v60 = vadd.f32 %v1659_v7, %v1546_v6  ;;  %v546_v7 = vld [vmem:[#allocation2 + $0x2d8] sm:$0xff] }
 0x3cf   : > { %2185 = vst [vmem:[#allocation2 + $0x3d8] sm:$0xff] %v2025_v5 }
 0x3d0   : > { %v2024_v9 = vadd.f32 %v1660_v60, %v510_v59 }
 0x3d2   : > { %v1775_v10 = vpop.f32.mrf.mxu0  ;;  %v1888_v0 = vpop.f32.mrf.mxu1  ;;  %2184 = vst [vmem:[#allocation2 + $0x1c8] sm:$0xff] %v2024_v9 }
 0x3d3   : > { %v1889_v8 = vadd.f32 %v1888_v0, %v1775_v10  ;;  %v545_v0 = vld [vmem:[#allocation2 + $0x100] sm:$0xff] }
 0x3d5   : > { %v2030_v13 = vadd.f32 %v1889_v8, %v516_v63  ;;  %v1549_v35 = vpop.f32.mrf.mxu2  ;;  %v1662_v14 = vpop.f32.mrf.mxu3 }
 0x3d6   : > { %v1663_v15 = vadd.f32 %v1662_v14, %v1549_v35  ;;  %v551_v14 = vld [vmem:[#allocation2 + $0x468] sm:$0xff] }
 0x3d7   : > { %2190 = vst [vmem:[#allocation2 + $0xc8] sm:$0xff] %v2030_v13 }
 0x3d8   : > { %v2029_v16 = vadd.f32 %v1663_v15, %v515_v36 }
 0x3da   : > { %v1778_v17 = vpop.f32.mrf.mxu0  ;;  %v1891_v22 = vpop.f32.mrf.mxu1  ;;  %2189 = vst [vmem:[#allocation2 + $0x410] sm:$0xff] %v2029_v16 }
 0x3db   : > { %v1892_v18 = vadd.f32 %v1891_v22, %v1778_v17  ;;  %v550_v22 = vld [vmem:[#allocation2 + $0x1c0] sm:$0xff] }
 0x3dd   : > { %v2035_v23 = vadd.f32 %v1892_v18, %v521_v21  ;;  %v1552_v24 = vpop.f32.mrf.mxu2  ;;  %v1665_v11 = vpop.f32.mrf.mxu3 }
 0x3de   : > { %v1666_v12 = vadd.f32 %v1665_v11, %v1552_v24  ;;  %v556_v11 = vld [vmem:[#allocation2 + $0x3e8] sm:$0xff] }
 0x3df   : > { %2195 = vst [vmem:[#allocation2 + $0x118] sm:$0xff] %v2035_v23 }
 0x3e0   : > { %v2034_v45 = vadd.f32 %v1666_v12, %v520_v25 }
 0x3e2   : > { %v1781_v46 = vpop.f32.mrf.mxu0  ;;  %v1894_v29 = vpop.f32.mrf.mxu1  ;;  %2194 = vst [vmem:[#allocation2 + $0x330] sm:$0xff] %v2034_v45 }
 0x3e3   : > { %v1895_v31 = vadd.f32 %v1894_v29, %v1781_v46  ;;  %v555_v29 = vld [vmem:[#allocation2 + $0x340] sm:$0xff] }
 0x3e5   : > { %v2040_v32 = vadd.f32 %v1895_v31, %v526_v26  ;;  %v1555_v39 = vpop.f32.mrf.mxu2  ;;  %v1668_v30 = vpop.f32.mrf.mxu3 }
 0x3e6   : > { %v1669_v33 = vadd.f32 %v1668_v30, %v1555_v39  ;;  %v561_v30 = vld [vmem:[#allocation2 + $0x230] sm:$0xff] }
 0x3e7   : > { %2200 = vst [vmem:[#allocation2 + $0x208] sm:$0xff] %v2040_v32 }
 0x3e8   : > { %v2039_v34 = vadd.f32 %v1669_v33, %v525_v40 }
 0x3ea   : > { %v1784_v37 = vpop.f32.mrf.mxu0  ;;  %v1897_v43 = vpop.f32.mrf.mxu1  ;;  %2199 = vst [vmem:[#allocation2 + $0x1d0] sm:$0xff] %v2039_v34 }
 0x3eb   : > { %v1898_v55 = vadd.f32 %v1897_v43, %v1784_v37  ;;  %v560_v43 = vld [vmem:[#allocation2 + $0xd0] sm:$0xff] }
 0x3ed   : > { %v2045_v56 = vadd.f32 %v1898_v55, %v531_v38  ;;  %v1558_v41 = vpop.f32.mrf.mxu2  ;;  %v1671_v19 = vpop.f32.mrf.mxu3 }
 0x3ee   : > { %v1672_v20 = vadd.f32 %v1671_v19, %v1558_v41  ;;  %v566_v19 = vld [vmem:[#allocation2 + $0x1a0] sm:$0xff] }
 0x3ef   : > { %2205 = vst [vmem:[#allocation2 + $0x4b8] sm:$0xff] %v2045_v56 }
 0x3f0   : > { %v2044_v44 = vadd.f32 %v1672_v20, %v530_v42 }
 0x3f2   : > { %v1787_v47 = vpop.f32.mrf.mxu0  ;;  %v1900_v53 = vpop.f32.mrf.mxu1  ;;  %2204 = vst [vmem:[#allocation2 + $0x180] sm:$0xff] %v2044_v44 }
 0x3f3   : > { %v1901_v51 = vadd.f32 %v1900_v53, %v1787_v47  ;;  %v565_v53 = vld [vmem:[#allocation2 + $0x110] sm:$0xff] }
 0x3f5   : > { %v2050_v52 = vadd.f32 %v1901_v51, %v536_v48  ;;  %v1561_v54 = vpop.f32.mrf.mxu2  ;;  %v1674_v49 = vpop.f32.mrf.mxu3 }
 0x3f6   : > { %v1675_v50 = vadd.f32 %v1674_v49, %v1561_v54 }
 0x3f7   : > { %2210 = vst [vmem:[#allocation2 + $0x170] sm:$0xff] %v2050_v52 }
 0x3f8   : > { %v2049_v1 = vadd.f32 %v1675_v50, %v535_v57 }
 0x3fa   : > { %v1790_v2 = vpop.f32.mrf.mxu0  ;;  %v1903_v61 = vpop.f32.mrf.mxu1  ;;  %2209 = vst [vmem:[#allocation2 + $0x3f0] sm:$0xff] %v2049_v1 }
 0x3fb   : > { %v1904_v27 = vadd.f32 %v1903_v61, %v1790_v2 }
 0x3fd   : > { %v2055_v28 = vadd.f32 %v1904_v27, %v541_v58  ;;  %v1564_v62 = vpop.f32.mrf.mxu2  ;;  %v1677_v4 = vpop.f32.mrf.mxu3 }
 0x3fe   : > { %v1678_v5 = vadd.f32 %v1677_v4, %v1564_v62 }
 0x3ff   : > { %2215 = vst [vmem:[#allocation2 + $0x248] sm:$0xff] %v2055_v28 }
 0x400   : > { %v2054_v6 = vadd.f32 %v1678_v5, %v540_v3 }
 0x402   : > { %v1793_v59 = vpop.f32.mrf.mxu0  ;;  %v1906_v60 = vpop.f32.mrf.mxu1  ;;  %2214 = vst [vmem:[#allocation2 + $0x238] sm:$0xff] %v2054_v6 }
 0x403   : > { %v1907_v9 = vadd.f32 %v1906_v60, %v1793_v59 }
 0x405   : > { %v2060_v10 = vadd.f32 %v1907_v9, %v546_v7  ;;  %v1567_v63 = vpop.f32.mrf.mxu2  ;;  %v1680_v8 = vpop.f32.mrf.mxu3 }
 0x406   : > { %v1681_v13 = vadd.f32 %v1680_v8, %v1567_v63 }
 0x407   : > { %2220 = vst [vmem:[#allocation2 + $0x2d8] sm:$0xff] %v2060_v10 }
 0x408   : > { %v2059_v35 = vadd.f32 %v1681_v13, %v545_v0 }
 0x40a   : > { %v1796_v36 = vpop.f32.mrf.mxu0  ;;  %v1909_v15 = vpop.f32.mrf.mxu1  ;;  %2219 = vst [vmem:[#allocation2 + $0x100] sm:$0xff] %v2059_v35 }
 0x40b   : > { %v1910_v16 = vadd.f32 %v1909_v15, %v1796_v36 }
 0x40d   : > { %v2065_v17 = vadd.f32 %v1910_v16, %v551_v14  ;;  %v1570_v21 = vpop.f32.mrf.mxu2  ;;  %v1683_v18 = vpop.f32.mrf.mxu3 }
 0x40e   : > { %v1684_v23 = vadd.f32 %v1683_v18, %v1570_v21 }
 0x40f   : > { %2225 = vst [vmem:[#allocation2 + $0x468] sm:$0xff] %v2065_v17 }
 0x410   : > { %v2064_v24 = vadd.f32 %v1684_v23, %v550_v22 }
 0x412   : > { %v1799_v25 = vpop.f32.mrf.mxu0  ;;  %v1912_v12 = vpop.f32.mrf.mxu1  ;;  %2224 = vst [vmem:[#allocation2 + $0x1c0] sm:$0xff] %v2064_v24 }
 0x413   : > { %v1913_v45 = vadd.f32 %v1912_v12, %v1799_v25 }
 0x415   : > { %v2070_v46 = vadd.f32 %v1913_v45, %v556_v11  ;;  %v1573_v26 = vpop.f32.mrf.mxu2  ;;  %v1686_v31 = vpop.f32.mrf.mxu3 }
 0x416   : > { %v1687_v32 = vadd.f32 %v1686_v31, %v1573_v26 }
 0x417   : > { %2230 = vst [vmem:[#allocation2 + $0x3e8] sm:$0xff] %v2070_v46 }
 0x418   : > { %v2069_v39 = vadd.f32 %v1687_v32, %v555_v29 }
 0x41a   : > { %v1802_v40 = vpop.f32.mrf.mxu0  ;;  %v1915_v33 = vpop.f32.mrf.mxu1  ;;  %2229 = vst [vmem:[#allocation2 + $0x340] sm:$0xff] %v2069_v39 }
 0x41b   : > { %v1916_v34 = vadd.f32 %v1915_v33, %v1802_v40 }
 0x41d   : > { %v2075_v37 = vadd.f32 %v1916_v34, %v561_v30  ;;  %v1576_v38 = vpop.f32.mrf.mxu2  ;;  %v1689_v55 = vpop.f32.mrf.mxu3 }
 0x41e   : > { %v1690_v56 = vadd.f32 %v1689_v55, %v1576_v38 }
 0x41f   : > { %2235 = vst [vmem:[#allocation2 + $0x230] sm:$0xff] %v2075_v37 }
 0x420   : > { %v2074_v41 = vadd.f32 %v1690_v56, %v560_v43 }
 0x422   : > { %v1805_v42 = vpop.f32.mrf.mxu0  ;;  %v1918_v20 = vpop.f32.mrf.mxu1  ;;  %2234 = vst [vmem:[#allocation2 + $0xd0] sm:$0xff] %v2074_v41 }
 0x423   : > { %v1919_v44 = vadd.f32 %v1918_v20, %v1805_v42 }
 0x425   : > { %v2080_v47 = vadd.f32 %v1919_v44, %v566_v19  ;;  %v1579_v48 = vpop.f32.mrf.mxu2  ;;  %v1692_v51 = vpop.f32.mrf.mxu3 }
 0x426   : > { %v1693_v52 = vadd.f32 %v1692_v51, %v1579_v48  ;;  %2244 = sbr.rel (%p2717_p6) target bundleno = 1228 (0x4cc), region = 44 }
 0x427   : > { %2240 = vst [vmem:[#allocation2 + $0x1a0] sm:$0xff] %v2080_v47 }
 0x428   : > { %v2079_v54 = vadd.f32 %v1693_v52, %v565_v53 }
 0x42a   : > { %2239 = vst [vmem:[#allocation2 + $0x110] sm:$0xff] %v2079_v54 }
 0x42b   : > { %v2245_v57 = vld [vmem:[#allocation2 + $0x2b0] sm:$0xff]  ;;  %v2247_v50 = vld [vmem:[#allocation2 + $0x4d8] sm:$0xff]  ;;  %v2250_v58 = vld [vmem:[#allocation2 + $0x328] sm:$0xff] }
 0x42c   : > { %v2246_v49 = vld [vmem:[#allocation2 + $0x3b0] sm:$0xff]  ;;  %2405 = vst [vmem:[%s3413_s2] sm:$0xff] %v2245_v57  ;;  %v2248_v1 = vld [vmem:[#allocation2 + $0x18] sm:$0xff]  ;;  %v2251_v61 = vld [vmem:[#allocation2 + $0x440] sm:$0xff] }
 0x42d   : > { %2406 = vst [vmem:[%s3413_s2 + $0x8] sm:$0xff] %v2246_v49  ;;  %v2249_v2 = vld [vmem:[#allocation2 + $0x450] sm:$0xff]  ;;  %v2252_v27 = vld [vmem:[#allocation2 + $0x378] sm:$0xff]  ;;  %v2253_v28 = vld [vmem:[#allocation2 + $0x108] sm:$0xff] }
 0x42e   : > { %2407 = vst [vmem:[%s3413_s2 + $0x10] sm:$0xff] %v2247_v50  ;;  %v2254_v62 = vld [vmem:[#allocation2 + $0x488] sm:$0xff]  ;;  %v2255_v3 = vld [vmem:[#allocation2 + $0x310] sm:$0xff]  ;;  %v2259_v59 = vld [vmem:[#allocation2 + $0x398] sm:$0xff] }
 0x42f   : > { %2408 = vst [vmem:[%s3413_s2 + $0x18] sm:$0xff] %v2248_v1  ;;  %v2256_v4 = vld [vmem:[#allocation2 + $0x4f0] sm:$0xff]  ;;  %v2257_v5 = vld [vmem:[#allocation2 + $0x308] sm:$0xff]  ;;  %v2260_v7 = vld [vmem:[#allocation2 + $0x60] sm:$0xff] }
 0x430   : > { %2409 = vst [vmem:[%s3413_s2 + $0x20] sm:$0xff] %v2249_v2  ;;  %v2258_v6 = vld [vmem:[#allocation2 + $0x2a8] sm:$0xff]  ;;  %v2261_v60 = vld [vmem:[#allocation2 + $0xd8] sm:$0xff]  ;;  %v2263_v10 = vld [vmem:[#allocation2 + $0x160] sm:$0xff] }
 0x431   : > { %2410 = vst [vmem:[%s3413_s2 + $0x28] sm:$0xff] %v2250_v58  ;;  %v2262_v9 = vld [vmem:[#allocation2 + $0x388] sm:$0xff]  ;;  %v2264_v63 = vld [vmem:[#allocation2 + $0x220] sm:$0xff]  ;;  %v2267_v13 = vld [vmem:[#allocation2 + $0x4f8] sm:$0xff] }
 0x432   : > { %2411 = vst [vmem:[%s3413_s2 + $0x30] sm:$0xff] %v2251_v61  ;;  %v2265_v0 = vld [vmem:[#allocation2 + $0xa0] sm:$0xff]  ;;  %v2269_v36 = vld [vmem:[#allocation2 + $0x458] sm:$0xff]  ;;  %v2271_v15 = vld [vmem:[#allocation2 + $0x390] sm:$0xff] }
 0x433   : > { %2412 = vst [vmem:[%s3413_s2 + $0x38] sm:$0xff] %v2252_v27  ;;  %v2266_v8 = vld [vmem:[#allocation2 + $0x360] sm:$0xff]  ;;  %v2272_v16 = vld [vmem:[#allocation2 + $0xb8] sm:$0xff]  ;;  %v2273_v17 = vld [vmem:[#allocation2 + $0x270] sm:$0xff] }
 0x434   : > { %2413 = vst [vmem:[%s3413_s2 + $0x40] sm:$0xff] %v2253_v28  ;;  %v2268_v35 = vld [vmem:[#allocation2 + $0x380] sm:$0xff]  ;;  %v2275_v22 = vld [vmem:[#allocation2 + $0x1a8] sm:$0xff]  ;;  %v2277_v23 = vld [vmem:[#allocation2 + $0x38] sm:$0xff] }
 0x435   : > { %2414 = vst [vmem:[%s3413_s2 + $0x48] sm:$0xff] %v2254_v62  ;;  %v2270_v14 = vld [vmem:[#allocation2 + $0x4a0] sm:$0xff]  ;;  %v2278_v24 = vld [vmem:[#allocation2 + $0x3f8] sm:$0xff]  ;;  %v2279_v25 = vld [vmem:[#allocation2 + $0xb0] sm:$0xff] }
 0x436   : > { %2415 = vst [vmem:[%s3413_s2 + $0x50] sm:$0xff] %v2255_v3  ;;  %v2274_v21 = vld [vmem:[#allocation2 + $0x480] sm:$0xff]  ;;  %v2281_v12 = vld [vmem:[#allocation2 + $0x188] sm:$0xff]  ;;  %v2282_v45 = vld [vmem:[#allocation2 + $0x210] sm:$0xff] }
 0x437   : > { %2416 = vst [vmem:[%s3413_s2 + $0x58] sm:$0xff] %v2256_v4  ;;  %v2276_v18 = vld [vmem:[#allocation2 + $0x2a0] sm:$0xff]  ;;  %v2283_v46 = vld [vmem:[#allocation2 + $0x78] sm:$0xff]  ;;  %v2285_v29 = vld [vmem:[#allocation2 + $0x3c8] sm:$0xff] }
 0x438   : > { %2417 = vst [vmem:[%s3413_s2 + $0x60] sm:$0xff] %v2257_v5  ;;  %v2280_v11 = vld [vmem:[#allocation2 + $0x320] sm:$0xff]  ;;  %v2287_v32 = vld [vmem:[#allocation2 + $0x3b8] sm:$0xff]  ;;  %v2288_v39 = vld [vmem:[#allocation2 + $0x8] sm:$0xff] }
 0x439   : > { %2418 = vst [vmem:[%s3413_s2 + $0x68] sm:$0xff] %v2258_v6  ;;  %v2284_v26 = vld [vmem:[#allocation2 + $0x20] sm:$0xff]  ;;  %v2289_v40 = vld [vmem:[#allocation2 + $0x48] sm:$0xff]  ;;  %v2292_v34 = vld [vmem:[#allocation2 + $0x218] sm:$0xff] }
 0x43a   : > { %2419 = vst [vmem:[%s3413_s2 + $0x70] sm:$0xff] %v2259_v59  ;;  %v2286_v31 = vld [vmem:[#allocation2 + $0x280] sm:$0xff]  ;;  %v2291_v33 = vld [vmem:[#allocation2 + $0x4a8] sm:$0xff]  ;;  %v2294_v38 = vld [vmem:[#allocation2 + $0x1f0] sm:$0xff] }
 0x43b   : > { %2420 = vst [vmem:[%s3413_s2 + $0x78] sm:$0xff] %v2260_v7  ;;  %v2290_v30 = vld [vmem:[#allocation2 + $0x300] sm:$0xff]  ;;  %v2293_v37 = vld [vmem:[#allocation2 + $0x168] sm:$0xff]  ;;  %v2295_v43 = vld [vmem:[#allocation2 + $0x10] sm:$0xff] }
 0x43c   : > { %2421 = vst [vmem:[%s3413_s2 + $0x80] sm:$0xff] %v2261_v60  ;;  %v2296_v55 = vld [vmem:[#allocation2 + $0x1f8] sm:$0xff]  ;;  %v2297_v56 = vld [vmem:[#allocation2 + $0x2e8] sm:$0xff]  ;;  %v2299_v42 = vld [vmem:[#allocation2 + $0x260] sm:$0xff] }
 0x43d   : > { %2422 = vst [vmem:[%s3413_s2 + $0x88] sm:$0xff] %v2262_v9  ;;  %v2298_v41 = vld [vmem:[#allocation2 + $0x258] sm:$0xff]  ;;  %v2300_v19 = vld [vmem:[#allocation2 + $0x2c0] sm:$0xff]  ;;  %v2303_v47 = vld [vmem:[#allocation2 + $0x70] sm:$0xff] }
 0x43e   : > { %2423 = vst [vmem:[%s3413_s2 + $0x90] sm:$0xff] %v2263_v10  ;;  %v2301_v20 = vld [vmem:[#allocation2 + $0x140] sm:$0xff]  ;;  %v2302_v44 = vld [vmem:[#allocation2 + $0xf8] sm:$0xff]  ;;  %v2306_v51 = vld [vmem:[#allocation2 + $0x350] sm:$0xff] }
 0x43f   : > { %2424 = vst [vmem:[%s3413_s2 + $0x98] sm:$0xff] %v2264_v63  ;;  %v2304_v48 = vld [vmem:[#allocation2 + $0x4c0] sm:$0xff]  ;;  %v2307_v52 = vld [vmem:[#allocation2 + $0x250] sm:$0xff]  ;;  %v2309_v57 = vld [vmem:[#allocation2 + $0x318] sm:$0xff] }
 0x440   : > { %2425 = vst [vmem:[%s3413_s2 + $0xa0] sm:$0xff] %v2265_v0  ;;  %v2305_v53 = vld [vmem:[#allocation2 + $0x40] sm:$0xff]  ;;  %v2313_v2 = vld [vmem:[#allocation2 + $0x228] sm:$0xff]  ;;  %v2317_v28 = vld [vmem:[#allocation2 + $0x4b0] sm:$0xff] }
 0x441   : > { %2426 = vst [vmem:[%s3413_s2 + $0xa8] sm:$0xff] %v2266_v8  ;;  %v2308_v54 = vld [vmem:[#allocation2 + $0x1e0] sm:$0xff]  ;;  %v2314_v58 = vld [vmem:[#allocation2 + $0x348] sm:$0xff]  ;;  %v2318_v62 = vld [vmem:[#allocation2 + $0x1d8] sm:$0xff] }
 0x442   : > { %2427 = vst [vmem:[%s3413_s2 + $0xb0] sm:$0xff] %v2267_v13  ;;  %v2310_v49 = vld [vmem:[#allocation2 + $0x3a0] sm:$0xff]  ;;  %v2315_v61 = vld [vmem:[#allocation2 + $0x288] sm:$0xff]  ;;  %v2320_v4 = vld [vmem:[#allocation2 + $0x50] sm:$0xff] }
 0x443   : > { %2428 = vst [vmem:[%s3413_s2 + $0xb8] sm:$0xff] %v2268_v35  ;;  %v2311_v50 = vld [vmem:[#allocation2 + $0x80] sm:$0xff]  ;;  %v2321_v5 = vld [vmem:[#allocation2 + $0x1b0] sm:$0xff]  ;;  %v2323_v59 = vld [vmem:[#allocation2 + $0x4e8] sm:$0xff] }
 0x444   : > { %2429 = vst [vmem:[%s3413_s2 + $0xc0] sm:$0xff] %v2269_v36  ;;  %v2312_v1 = vld [vmem:[#allocation2 + $0x400] sm:$0xff]  ;;  %v2322_v6 = vld [vmem:[#allocation2 + $0x150] sm:$0xff]  ;;  %v2325_v60 = vld [vmem:[#allocation2 + $0x418] sm:$0xff] }
 0x445   : > { %2430 = vst [vmem:[%s3413_s2 + $0xc8] sm:$0xff] %v2270_v14  ;;  %v2316_v27 = vld [vmem:[#allocation2 + $0x460] sm:$0xff]  ;;  %v2324_v7 = vld [vmem:[#allocation2 + $0x190] sm:$0xff]  ;;  %v2326_v9 = vld [vmem:[#allocation2 + $0x338] sm:$0xff] }
 0x446   : > { %2431 = vst [vmem:[%s3413_s2 + $0xd0] sm:$0xff] %v2271_v15  ;;  %v2319_v3 = vld [vmem:[#allocation2 + $0x200] sm:$0xff]  ;;  %v2327_v10 = vld [vmem:[#allocation2 + $0x358] sm:$0xff]  ;;  %v2329_v0 = vld [vmem:[#allocation2 + $0x88] sm:$0xff] }
 0x447   : > { %2432 = vst [vmem:[%s3413_s2 + $0xd8] sm:$0xff] %v2272_v16  ;;  %v2328_v63 = vld [vmem:[#allocation2 + $0x158] sm:$0xff]  ;;  %v2330_v8 = vld [vmem:[#allocation2 + $0x448] sm:$0xff]  ;;  %v2331_v13 = vld [vmem:[#allocation2] sm:$0xff] }
 0x448   : > { %2433 = vst [vmem:[%s3413_s2 + $0xe0] sm:$0xff] %v2273_v17  ;;  %v2332_v35 = vld [vmem:[#allocation2 + $0x2d0] sm:$0xff]  ;;  %v2333_v36 = vld [vmem:[#allocation2 + $0x278] sm:$0xff] }
 0x449   : > { %2434 = vst [vmem:[%s3413_s2 + $0xe8] sm:$0xff] %v2274_v21  ;;  %v2334_v14 = vld [vmem:[#allocation2 + $0x478] sm:$0xff]  ;;  %v2335_v15 = vld [vmem:[#allocation2 + $0x90] sm:$0xff]  ;;  %v2338_v21 = vld [vmem:[#allocation2 + $0x2c8] sm:$0xff] }
 0x44a   : > { %2435 = vst [vmem:[%s3413_s2 + $0xf0] sm:$0xff] %v2275_v22  ;;  %v2336_v16 = vld [vmem:[#allocation2 + $0x138] sm:$0xff]  ;;  %v2339_v22 = vld [vmem:[#allocation2 + $0x3e0] sm:$0xff] }
 0x44b   : > { %2436 = vst [vmem:[%s3413_s2 + $0xf8] sm:$0xff] %v2276_v18  ;;  %v2337_v17 = vld [vmem:[#allocation2 + $0x438] sm:$0xff]  ;;  %v2340_v18 = vld [vmem:[#allocation2 + $0x130] sm:$0xff] }
 0x44c   : > { %2437 = vst [vmem:[%s3413_s2 + $0x100] sm:$0xff] %v2277_v23  ;;  %v2341_v23 = vld [vmem:[#allocation2 + $0x298] sm:$0xff] }
 0x44d   : > { %2438 = vst [vmem:[%s3413_s2 + $0x108] sm:$0xff] %v2278_v24  ;;  %v2342_v24 = vld [vmem:[#allocation2 + $0x2f8] sm:$0xff] }
 0x44e   : > { %2439 = vst [vmem:[%s3413_s2 + $0x110] sm:$0xff] %v2279_v25  ;;  %v2343_v25 = vld [vmem:[#allocation2 + $0x68] sm:$0xff] }
 0x44f   : > { %2440 = vst [vmem:[%s3413_s2 + $0x118] sm:$0xff] %v2280_v11  ;;  %v2344_v11 = vld [vmem:[#allocation2 + $0x3c0] sm:$0xff] }
 0x450   : > { %2441 = vst [vmem:[%s3413_s2 + $0x120] sm:$0xff] %v2281_v12  ;;  %v2345_v12 = vld [vmem:[#allocation2 + $0x368] sm:$0xff] }
 0x451   : > { %2442 = vst [vmem:[%s3413_s2 + $0x128] sm:$0xff] %v2282_v45  ;;  %v2346_v45 = vld [vmem:[#allocation2 + $0x2e0] sm:$0xff] }
 0x452   : > { %2443 = vst [vmem:[%s3413_s2 + $0x130] sm:$0xff] %v2283_v46  ;;  %v2347_v46 = vld [vmem:[#allocation2 + $0x3a8] sm:$0xff] }
 0x453   : > { %2444 = vst [vmem:[%s3413_s2 + $0x138] sm:$0xff] %v2284_v26  ;;  %v2348_v26 = vld [vmem:[#allocation2 + $0x1c8] sm:$0xff] }
 0x454   : > { %2445 = vst [vmem:[%s3413_s2 + $0x140] sm:$0xff] %v2285_v29  ;;  %v2349_v29 = vld [vmem:[#allocation2 + $0x3d8] sm:$0xff] }
 0x455   : > { %2446 = vst [vmem:[%s3413_s2 + $0x148] sm:$0xff] %v2286_v31  ;;  %v2350_v31 = vld [vmem:[#allocation2 + $0x408] sm:$0xff] }
 0x456   : > { %2447 = vst [vmem:[%s3413_s2 + $0x150] sm:$0xff] %v2287_v32  ;;  %v2351_v32 = vld [vmem:[#allocation2 + $0xe8] sm:$0xff] }
 0x457   : > { %2448 = vst [vmem:[%s3413_s2 + $0x158] sm:$0xff] %v2288_v39  ;;  %v2352_v39 = vld [vmem:[#allocation2 + $0x98] sm:$0xff] }
 0x458   : > { %2449 = vst [vmem:[%s3413_s2 + $0x160] sm:$0xff] %v2289_v40  ;;  %v2353_v40 = vld [vmem:[#allocation2 + $0x410] sm:$0xff] }
 0x459   : > { %2450 = vst [vmem:[%s3413_s2 + $0x168] sm:$0xff] %v2290_v30  ;;  %v2354_v30 = vld [vmem:[#allocation2 + $0xc8] sm:$0xff] }
 0x45a   : > { %2451 = vst [vmem:[%s3413_s2 + $0x170] sm:$0xff] %v2291_v33  ;;  %v2355_v33 = vld [vmem:[#allocation2 + $0x420] sm:$0xff] }
 0x45b   : > { %2452 = vst [vmem:[%s3413_s2 + $0x178] sm:$0xff] %v2292_v34  ;;  %v2356_v34 = vld [vmem:[#allocation2 + $0x28] sm:$0xff] }
 0x45c   : > { %2453 = vst [vmem:[%s3413_s2 + $0x180] sm:$0xff] %v2293_v37  ;;  %v2357_v37 = vld [vmem:[#allocation2 + $0x290] sm:$0xff] }
 0x45d   : > { %2454 = vst [vmem:[%s3413_s2 + $0x188] sm:$0xff] %v2294_v38  ;;  %v2358_v38 = vld [vmem:[#allocation2 + $0x330] sm:$0xff] }
 0x45e   : > { %2455 = vst [vmem:[%s3413_s2 + $0x190] sm:$0xff] %v2295_v43  ;;  %v2359_v43 = vld [vmem:[#allocation2 + $0x118] sm:$0xff] }
 0x45f   : > { %2456 = vst [vmem:[%s3413_s2 + $0x198] sm:$0xff] %v2296_v55  ;;  %v2360_v55 = vld [vmem:[#allocation2 + $0x490] sm:$0xff] }
 0x460   : > { %2457 = vst [vmem:[%s3413_s2 + $0x1a0] sm:$0xff] %v2297_v56  ;;  %v2361_v56 = vld [vmem:[#allocation2 + $0x4c8] sm:$0xff] }
 0x461   : > { %2458 = vst [vmem:[%s3413_s2 + $0x1a8] sm:$0xff] %v2298_v41  ;;  %v2362_v41 = vld [vmem:[#allocation2 + $0x120] sm:$0xff] }
 0x462   : > { %2459 = vst [vmem:[%s3413_s2 + $0x1b0] sm:$0xff] %v2299_v42  ;;  %v2363_v42 = vld [vmem:[#allocation2 + $0x1d0] sm:$0xff] }
 0x463   : > { %2460 = vst [vmem:[%s3413_s2 + $0x1b8] sm:$0xff] %v2300_v19  ;;  %v2364_v19 = vld [vmem:[#allocation2 + $0x208] sm:$0xff] }
 0x464   : > { %2461 = vst [vmem:[%s3413_s2 + $0x1c0] sm:$0xff] %v2301_v20  ;;  %v2365_v20 = vld [vmem:[#allocation2 + $0xa8] sm:$0xff] }
 0x465   : > { %2462 = vst [vmem:[%s3413_s2 + $0x1c8] sm:$0xff] %v2302_v44  ;;  %v2366_v44 = vld [vmem:[#allocation2 + $0x428] sm:$0xff] }
 0x466   : > { %2463 = vst [vmem:[%s3413_s2 + $0x1d0] sm:$0xff] %v2303_v47  ;;  %v2367_v47 = vld [vmem:[#allocation2 + $0x268] sm:$0xff] }
 0x467   : > { %2464 = vst [vmem:[%s3413_s2 + $0x1d8] sm:$0xff] %v2304_v48  ;;  %v2368_v48 = vld [vmem:[#allocation2 + $0x180] sm:$0xff] }
 0x468   : > { %2465 = vst [vmem:[%s3413_s2 + $0x1e0] sm:$0xff] %v2305_v53  ;;  %v2369_v53 = vld [vmem:[#allocation2 + $0x4b8] sm:$0xff] }
 0x469   : > { %2466 = vst [vmem:[%s3413_s2 + $0x1e8] sm:$0xff] %v2306_v51  ;;  %v2370_v51 = vld [vmem:[#allocation2 + $0x178] sm:$0xff] }
 0x46a   : > { %2467 = vst [vmem:[%s3413_s2 + $0x1f0] sm:$0xff] %v2307_v52  ;;  %v2371_v52 = vld [vmem:[#allocation2 + $0x1e8] sm:$0xff] }
 0x46b   : > { %2468 = vst [vmem:[%s3413_s2 + $0x1f8] sm:$0xff] %v2308_v54  ;;  %v2372_v54 = vld [vmem:[#allocation2 + $0x2f0] sm:$0xff] }
 0x46c   : > { %2469 = vst [vmem:[%s3413_s2 + $0x200] sm:$0xff] %v2309_v57  ;;  %v2373_v57 = vld [vmem:[#allocation2 + $0x3f0] sm:$0xff] }
 0x46d   : > { %2470 = vst [vmem:[%s3413_s2 + $0x208] sm:$0xff] %v2310_v49  ;;  %v2374_v49 = vld [vmem:[#allocation2 + $0x170] sm:$0xff] }
 0x46e   : > { %2471 = vst [vmem:[%s3413_s2 + $0x210] sm:$0xff] %v2311_v50  ;;  %v2375_v50 = vld [vmem:[#allocation2 + $0x198] sm:$0xff] }
 0x46f   : > { %2472 = vst [vmem:[%s3413_s2 + $0x218] sm:$0xff] %v2312_v1  ;;  %v2376_v1 = vld [vmem:[#allocation2 + $0x1b8] sm:$0xff] }
 0x470   : > { %2473 = vst [vmem:[%s3413_s2 + $0x220] sm:$0xff] %v2313_v2  ;;  %v2377_v2 = vld [vmem:[#allocation2 + $0xf0] sm:$0xff] }
 0x471   : > { %2474 = vst [vmem:[%s3413_s2 + $0x228] sm:$0xff] %v2314_v58  ;;  %v2378_v58 = vld [vmem:[#allocation2 + $0x238] sm:$0xff] }
 0x472   : > { %2475 = vst [vmem:[%s3413_s2 + $0x230] sm:$0xff] %v2315_v61  ;;  %v2379_v61 = vld [vmem:[#allocation2 + $0x248] sm:$0xff] }
 0x473   : > { %2476 = vst [vmem:[%s3413_s2 + $0x238] sm:$0xff] %v2316_v27  ;;  %v2380_v27 = vld [vmem:[#allocation2 + $0x4d0] sm:$0xff] }
 0x474   : > { %2477 = vst [vmem:[%s3413_s2 + $0x240] sm:$0xff] %v2317_v28  ;;  %v2381_v28 = vld [vmem:[#allocation2 + $0x498] sm:$0xff] }
 0x475   : > { %2478 = vst [vmem:[%s3413_s2 + $0x248] sm:$0xff] %v2318_v62  ;;  %v2382_v62 = vld [vmem:[#allocation2 + $0x240] sm:$0xff] }
 0x476   : > { %2479 = vst [vmem:[%s3413_s2 + $0x250] sm:$0xff] %v2319_v3  ;;  %v2383_v3 = vld [vmem:[#allocation2 + $0x100] sm:$0xff] }
 0x477   : > { %2480 = vst [vmem:[%s3413_s2 + $0x258] sm:$0xff] %v2320_v4  ;;  %v2384_v4 = vld [vmem:[#allocation2 + $0x2d8] sm:$0xff] }
 0x478   : > { %2481 = vst [vmem:[%s3413_s2 + $0x260] sm:$0xff] %v2321_v5  ;;  %v2385_v5 = vld [vmem:[#allocation2 + $0x4e0] sm:$0xff] }
 0x479   : > { %2482 = vst [vmem:[%s3413_s2 + $0x268] sm:$0xff] %v2322_v6  ;;  %v2386_v6 = vld [vmem:[#allocation2 + $0x30] sm:$0xff] }
 0x47a   : > { %2483 = vst [vmem:[%s3413_s2 + $0x270] sm:$0xff] %v2323_v59  ;;  %v2387_v59 = vld [vmem:[#allocation2 + $0x2b8] sm:$0xff] }
 0x47b   : > { %2484 = vst [vmem:[%s3413_s2 + $0x278] sm:$0xff] %v2324_v7  ;;  %v2388_v7 = vld [vmem:[#allocation2 + $0x1c0] sm:$0xff] }
 0x47c   : > { %2485 = vst [vmem:[%s3413_s2 + $0x280] sm:$0xff] %v2325_v60  ;;  %v2389_v60 = vld [vmem:[#allocation2 + $0x468] sm:$0xff] }
 0x47d   : > { %2486 = vst [vmem:[%s3413_s2 + $0x288] sm:$0xff] %v2326_v9  ;;  %v2390_v9 = vld [vmem:[#allocation2 + $0xe0] sm:$0xff] }
 0x47e   : > { %2487 = vst [vmem:[%s3413_s2 + $0x290] sm:$0xff] %v2327_v10  ;;  %v2391_v10 = vld [vmem:[#allocation2 + $0x58] sm:$0xff] }
 0x47f   : > { %2488 = vst [vmem:[%s3413_s2 + $0x298] sm:$0xff] %v2328_v63  ;;  %v2392_v63 = vld [vmem:[#allocation2 + $0x3d0] sm:$0xff] }
 0x480   : > { %2489 = vst [vmem:[%s3413_s2 + $0x2a0] sm:$0xff] %v2329_v0  ;;  %v2393_v0 = vld [vmem:[#allocation2 + $0x340] sm:$0xff] }
 0x481   : > { %2490 = vst [vmem:[%s3413_s2 + $0x2a8] sm:$0xff] %v2330_v8  ;;  %v2394_v8 = vld [vmem:[#allocation2 + $0x3e8] sm:$0xff] }
 0x482   : > { %2491 = vst [vmem:[%s3413_s2 + $0x2b0] sm:$0xff] %v2331_v13  ;;  %v2395_v13 = vld [vmem:[#allocation2 + $0x128] sm:$0xff] }
 0x483   : > { %2492 = vst [vmem:[%s3413_s2 + $0x2b8] sm:$0xff] %v2332_v35  ;;  %v2396_v35 = vld [vmem:[#allocation2 + $0x470] sm:$0xff] }
 0x484   : > { %2493 = vst [vmem:[%s3413_s2 + $0x2c0] sm:$0xff] %v2333_v36  ;;  %v2397_v36 = vld [vmem:[#allocation2 + $0x148] sm:$0xff] }
 0x485   : > { %2494 = vst [vmem:[%s3413_s2 + $0x2c8] sm:$0xff] %v2334_v14  ;;  %v2398_v14 = vld [vmem:[#allocation2 + $0xd0] sm:$0xff] }
 0x486   : > { %2495 = vst [vmem:[%s3413_s2 + $0x2d0] sm:$0xff] %v2335_v15  ;;  %v2399_v15 = vld [vmem:[#allocation2 + $0x230] sm:$0xff] }
 0x487   : > { %2496 = vst [vmem:[%s3413_s2 + $0x2d8] sm:$0xff] %v2336_v16  ;;  %v2400_v16 = vld [vmem:[#allocation2 + $0x430] sm:$0xff] }
 0x488   : > { %2497 = vst [vmem:[%s3413_s2 + $0x2e0] sm:$0xff] %v2337_v17  ;;  %v2401_v17 = vld [vmem:[#allocation2 + $0x370] sm:$0xff] }
 0x489   : > { %2498 = vst [vmem:[%s3413_s2 + $0x2e8] sm:$0xff] %v2338_v21  ;;  %v2402_v21 = vld [vmem:[#allocation2 + $0xc0] sm:$0xff] }
 0x48a   : > { %2499 = vst [vmem:[%s3413_s2 + $0x2f0] sm:$0xff] %v2339_v22  ;;  %v2403_v22 = vld [vmem:[#allocation2 + $0x110] sm:$0xff] }
 0x48b   : > { %2500 = vst [vmem:[%s3413_s2 + $0x2f8] sm:$0xff] %v2340_v18  ;;  %v2404_v18 = vld [vmem:[#allocation2 + $0x1a0] sm:$0xff] }
 0x48c   : > { %2501 = vst [vmem:[%s3413_s2 + $0x300] sm:$0xff] %v2341_v23 }
 0x48d   : > { %2502 = vst [vmem:[%s3413_s2 + $0x308] sm:$0xff] %v2342_v24 }
 0x48e   : > { %2503 = vst [vmem:[%s3413_s2 + $0x310] sm:$0xff] %v2343_v25 }
 0x48f   : > { %2504 = vst [vmem:[%s3413_s2 + $0x318] sm:$0xff] %v2344_v11 }
 0x490   : > { %2505 = vst [vmem:[%s3413_s2 + $0x320] sm:$0xff] %v2345_v12 }
 0x491   : > { %2506 = vst [vmem:[%s3413_s2 + $0x328] sm:$0xff] %v2346_v45 }
 0x492   : > { %2507 = vst [vmem:[%s3413_s2 + $0x330] sm:$0xff] %v2347_v46 }
 0x493   : > { %2508 = vst [vmem:[%s3413_s2 + $0x338] sm:$0xff] %v2348_v26 }
 0x494   : > { %2509 = vst [vmem:[%s3413_s2 + $0x340] sm:$0xff] %v2349_v29 }
 0x495   : > { %2510 = vst [vmem:[%s3413_s2 + $0x348] sm:$0xff] %v2350_v31 }
 0x496   : > { %2511 = vst [vmem:[%s3413_s2 + $0x350] sm:$0xff] %v2351_v32 }
 0x497   : > { %2512 = vst [vmem:[%s3413_s2 + $0x358] sm:$0xff] %v2352_v39 }
 0x498   : > { %2513 = vst [vmem:[%s3413_s2 + $0x360] sm:$0xff] %v2353_v40 }
 0x499   : > { %2514 = vst [vmem:[%s3413_s2 + $0x368] sm:$0xff] %v2354_v30 }
 0x49a   : > { %2515 = vst [vmem:[%s3413_s2 + $0x370] sm:$0xff] %v2355_v33 }
 0x49b   : > { %2516 = vst [vmem:[%s3413_s2 + $0x378] sm:$0xff] %v2356_v34 }
 0x49c   : > { %2517 = vst [vmem:[%s3413_s2 + $0x380] sm:$0xff] %v2357_v37 }
 0x49d   : > { %2518 = vst [vmem:[%s3413_s2 + $0x388] sm:$0xff] %v2358_v38 }
 0x49e   : > { %2519 = vst [vmem:[%s3413_s2 + $0x390] sm:$0xff] %v2359_v43 }
 0x49f   : > { %2520 = vst [vmem:[%s3413_s2 + $0x398] sm:$0xff] %v2360_v55 }
 0x4a0   : > { %2521 = vst [vmem:[%s3413_s2 + $0x3a0] sm:$0xff] %v2361_v56 }
 0x4a1   : > { %2522 = vst [vmem:[%s3413_s2 + $0x3a8] sm:$0xff] %v2362_v41 }
 0x4a2   : > { %2523 = vst [vmem:[%s3413_s2 + $0x3b0] sm:$0xff] %v2363_v42 }
 0x4a3   : > { %2524 = vst [vmem:[%s3413_s2 + $0x3b8] sm:$0xff] %v2364_v19 }
 0x4a4   : > { %2525 = vst [vmem:[%s3413_s2 + $0x3c0] sm:$0xff] %v2365_v20 }
 0x4a5   : > { %2526 = vst [vmem:[%s3413_s2 + $0x3c8] sm:$0xff] %v2366_v44 }
 0x4a6   : > { %2527 = vst [vmem:[%s3413_s2 + $0x3d0] sm:$0xff] %v2367_v47 }
 0x4a7   : > { %2528 = vst [vmem:[%s3413_s2 + $0x3d8] sm:$0xff] %v2368_v48 }
 0x4a8   : > { %2529 = vst [vmem:[%s3413_s2 + $0x3e0] sm:$0xff] %v2369_v53 }
 0x4a9   : > { %2530 = vst [vmem:[%s3413_s2 + $0x3e8] sm:$0xff] %v2370_v51 }
 0x4aa   : > { %2531 = vst [vmem:[%s3413_s2 + $0x3f0] sm:$0xff] %v2371_v52 }
 0x4ab   : > { %2532 = vst [vmem:[%s3413_s2 + $0x3f8] sm:$0xff] %v2372_v54 }
 0x4ac   : > { %2533 = vst [vmem:[%s3413_s2 + $0x400] sm:$0xff] %v2373_v57 }
 0x4ad   : > { %2534 = vst [vmem:[%s3413_s2 + $0x408] sm:$0xff] %v2374_v49 }
 0x4ae   : > { %2535 = vst [vmem:[%s3413_s2 + $0x410] sm:$0xff] %v2375_v50 }
 0x4af   : > { %2536 = vst [vmem:[%s3413_s2 + $0x418] sm:$0xff] %v2376_v1 }
 0x4b0   : > { %2537 = vst [vmem:[%s3413_s2 + $0x420] sm:$0xff] %v2377_v2 }
 0x4b1   : > { %2538 = vst [vmem:[%s3413_s2 + $0x428] sm:$0xff] %v2378_v58 }
 0x4b2   : > { %2539 = vst [vmem:[%s3413_s2 + $0x430] sm:$0xff] %v2379_v61 }
 0x4b3   : > { %2540 = vst [vmem:[%s3413_s2 + $0x438] sm:$0xff] %v2380_v27 }
 0x4b4   : > { %2541 = vst [vmem:[%s3413_s2 + $0x440] sm:$0xff] %v2381_v28 }
 0x4b5   : > { %2542 = vst [vmem:[%s3413_s2 + $0x448] sm:$0xff] %v2382_v62 }
 0x4b6   : > { %2543 = vst [vmem:[%s3413_s2 + $0x450] sm:$0xff] %v2383_v3 }
 0x4b7   : > { %2544 = vst [vmem:[%s3413_s2 + $0x458] sm:$0xff] %v2384_v4 }
 0x4b8   : > { %2545 = vst [vmem:[%s3413_s2 + $0x460] sm:$0xff] %v2385_v5 }
 0x4b9   : > { %2546 = vst [vmem:[%s3413_s2 + $0x468] sm:$0xff] %v2386_v6 }
 0x4ba   : > { %2547 = vst [vmem:[%s3413_s2 + $0x470] sm:$0xff] %v2387_v59 }
 0x4bb   : > { %2548 = vst [vmem:[%s3413_s2 + $0x478] sm:$0xff] %v2388_v7 }
 0x4bc   : > { %2549 = vst [vmem:[%s3413_s2 + $0x480] sm:$0xff] %v2389_v60 }
 0x4bd   : > { %2550 = vst [vmem:[%s3413_s2 + $0x488] sm:$0xff] %v2390_v9 }
 0x4be   : > { %2551 = vst [vmem:[%s3413_s2 + $0x490] sm:$0xff] %v2391_v10 }
 0x4bf   : > { %2552 = vst [vmem:[%s3413_s2 + $0x498] sm:$0xff] %v2392_v63 }
 0x4c0   : > { %2553 = vst [vmem:[%s3413_s2 + $0x4a0] sm:$0xff] %v2393_v0 }
 0x4c1   : > { %2554 = vst [vmem:[%s3413_s2 + $0x4a8] sm:$0xff] %v2394_v8 }
 0x4c2   : > { %2555 = vst [vmem:[%s3413_s2 + $0x4b0] sm:$0xff] %v2395_v13 }
 0x4c3   : > { %2556 = vst [vmem:[%s3413_s2 + $0x4b8] sm:$0xff] %v2396_v35 }
 0x4c4   : > { %2557 = vst [vmem:[%s3413_s2 + $0x4c0] sm:$0xff] %v2397_v36 }
 0x4c5   : > { %2558 = vst [vmem:[%s3413_s2 + $0x4c8] sm:$0xff] %v2398_v14 }
 0x4c6   : > { %2559 = vst [vmem:[%s3413_s2 + $0x4d0] sm:$0xff] %v2399_v15 }
 0x4c7   : > { %2560 = vst [vmem:[%s3413_s2 + $0x4d8] sm:$0xff] %v2400_v16 }
 0x4c8   : > { %2561 = vst [vmem:[%s3413_s2 + $0x4e0] sm:$0xff] %v2401_v17 }
 0x4c9   : > { %2562 = vst [vmem:[%s3413_s2 + $0x4e8] sm:$0xff] %v2402_v21 }
 0x4ca   : > { %2563 = vst [vmem:[%s3413_s2 + $0x4f0] sm:$0xff] %v2403_v22 }
 0x4cb   : > { %2564 = vst [vmem:[%s3413_s2 + $0x4f8] sm:$0xff] %v2404_v18 }
 0x4cc PF: > { %s2760_s14 = smul.u32 1280, %s3192_s19  ;;  %s2581_s18 = sshll.u32 %s3413_s2, 4  ;;  %s2582_s18 = int_to_ptr.vmem [resolvable:$true] %s2581_s18 }
 0x4cd   : > { %s4317_s8 = sld [smem:[#allocation22_spill]]  ;;  %s2566_s6 = scalar_lea.sflag [#allocation5], %s234_s20 }
 0x4d3   : > { %s2580_s26 = scalar_lea.hbm %s4317_s8, %s2760_s14  ;;  %s3074_s19 = scalar_lea.hbm %s4317_s8, 2560 }
 0x4d4   : > { %s2583_s27 = sshll.u32 %s2580_s26, 4  ;;  %s2584_s27 = int_to_ptr.hbm [resolvable:$true] %s2583_s27 }
 0x4d5   : > { %s3068_s5 = sshra.s32 %s2584_s27, 4  ;;  %s3069_s5 = int_to_ptr.hbm [resolvable:$true] %s3068_s5 }
 0x4d6   : > { %s3070_s29 = scalar_lea.hbm %s3069_s5, 1280  ;;  %p3075_p10 = scmp.lt.s32.totalorder %s3069_s5, %s4317_s8 }
 0x4d7   : > { %p3071_p7 = scmp.ne.s32.totalorder %s3069_s5, %s3070_s29  ;;  %p3076_p11 = scmp.lt.s32.totalorder %s3074_s19, %s3070_s29 }
 0x4d9   : > { %p3072_p8 = pnand %p3071_p7, %p3342_p13  ;;  %p3077_p12 = por %p3076_p11, %p3075_p10 }
 0x4db   : > { %p3073_p4 = pneg %p3072_p8 }
 0x4dd   : > { %p3078_p0 = pnand %p3077_p12, %p3073_p4 }
 0x4df   : > { %3081 = shalt.err (!%p3078_p0)
}
 0x4e0   : > { %s3210_s24 = smov 640   ;;  %s3211_s21 = smov 40  }
 0x4e1   : > { %2765 = dma.vmem_to_hbm [thread:$0]  (%p3342_p13), %s2582_s18, 20480, %s2584_s27, %s2566_s6, %s3210_s24, %s3210_s24, %s3211_s21  }
 0x4e2 PF: > { %p2779_p1 = scmp.ge.s32.totalorder %s3204_s22, 2  ;;  %s2598_s0 = sand.u32 1, %s3152_s9  }
 0x4e3   : > { %s2599_s7 = scalar_lea.sflag [#allocation5], %s2598_s0 }
 0x4e4   : > { %p2775_p9 = pnand %p2779_p1, %p3350_p5 }
 0x4e6   : > { %p2776_p3 = pneg %p2775_p9 }
 0x4e8   : > { %3147 = dma.done.wait (%p2776_p3), %s2599_s7, 20480  }
 0x4e9   : > { %3149 = vsyncadd (%p2776_p3), %s2599_s7, 4294946816  ;;  %s21_s22 = sadd.s32 1, %s3204_s22   ;;  %s4319_s15 = sld [smem:[#allocation18_spill]] }
 0x4ea   : > { %p4239_p2 = scmp.ge.s32.totalorder %s21_s22, 8   ;;  %s4320_s4 = sld [smem:[#allocation12_spill]] }
 0x4eb   : > { %s4321_s14 = sld [smem:[#allocation20_spill]]  ;;  %s4329_s9 = smov %s3156_s10 }
 0x4ec   : > { %s4322_s2 = sld [smem:[#allocation13_spill]]  ;;  %s4330_s10 = smov %s3160_s11 }
 0x4ed   : > { %s4323_s17 = sld [smem:[#allocation19_spill]]  ;;  %s4332_s12 = smov %s3168_s13 }
 0x4ee   : > { %s4324_s18 = sld [smem:[#allocation14_spill]] }
 0x4ef   : > { %s4325_s19 = sld [smem:[#allocation15_spill]]  ;;  %s4331_s11 = smov %s4319_s15 }
 0x4f0   : > { %s4326_s25 = sld [smem:[#allocation16_spill]]  ;;  %s4333_s13 = smov %s4320_s4 }
 0x4f1   : > { %s4327_s21 = sld [smem:[#allocation17_spill]]  ;;  %s4334_s15 = smov %s3180_s16 }
 0x4f2   : > { %s4335_s16 = smov %s4322_s2  ;;  %20 = sbr.rel (!%p4239_p2) target bundleno = 15 (0xf), region = 94 }
 0x4f6   : > { %s4336_s20 = smov %s4326_s25 }
 0x4f7   :  { %2605 = vsyncpa [#allocation4], 1 }
 0x4f8   :  { %2607 = vsyncpa [#allocation4 + $0x1], 1 }
 0x4f9   :  { %2608 = vsyncpa [#allocation7], 1 }
 0x4fa   :  { %2610 = vsyncpa [#allocation7 + $0x1], 1 }
 0x4fb   :  { %2611 = vsyncpa [#allocation5], 1 }
 0x4fc   :  { %2613 = vsyncpa [#allocation5 + $0x1], 1 }

</bundles_post_ra>
